<compile_context>
chip_gen: v7x
topology: tpu7x:2x2x1
jax: 0.10.0
libtpu: 0.0.40
codegen_flags: <defaults>
</compile_context>

<pallas_src>
import functools

import jax
import jax.numpy as jnp
from jax.experimental import pallas as pl
from jax.experimental.pallas import tpu as pltpu

KSIZE = 4
BN_EPS = 1e-5
LANE = 128


def _round_up(n, m):
    return ((n + m - 1) // m) * m


def _vmem_limit_bytes():
    # Per-generation cap: ~65% of physical VMEM (v7x: 64 MiB -> ~41 MiB;
    # v5e/v6e: 128 MiB -> capped at 96 MiB).  Falls back to a v7x-safe value.
    try:
        cap = int(pltpu.get_tpu_info().vmem_capacity_bytes)
    except Exception:
        cap = 64 * 1024 * 1024
    return max(32 * 1024 * 1024, min(int(cap * 0.65), 96 * 1024 * 1024))


_VMEM_LIMIT = _vmem_limit_bytes()


def _cparams(n_grid_dims):
    # Every grid axis here is independent (no cross-step accumulation), so
    # all axes are "parallel" (lets v7x split them across its 2 TensorCores).
    return pltpu.CompilerParams(
        dimension_semantics=("parallel",) * n_grid_dims,
        vmem_limit_bytes=_VMEM_LIMIT,
    )


def _pick_tile_m(rows, k, n, vmem_budget=_VMEM_LIMIT // 4):
    """Largest power-of-two row tile that divides `rows` and fits the budget."""
    per_row = 2 * 2 * (k + n) + 4 * n          # dbl-buffered bf16 in/out + f32 acc
    cap = max(16, min(4096, vmem_budget // max(per_row, 1)))
    if rows <= cap:
        return rows                            # full-dim block: always legal
    t = 1
    while t * 2 <= cap and rows % (t * 2) == 0:
        t *= 2
    return t if t % 8 == 0 else rows


def _pick_tile_n(n, cap=512):
    """Largest multiple-of-128 column tile (<= cap) that divides n."""
    if n < LANE or n % LANE:
        return n
    t = LANE
    while t * 2 <= min(n, cap) and n % (t * 2) == 0:
        t *= 2
    return t


# ---------------- Pallas kernels --------------------------------------------

def _mm_stats_kernel(p_ref, w_ref, y_ref, s_ref):
    """bf16 matmul (f32 accumulate) + single-pass BN partial statistics.

    Stats come from the f32 accumulator; y is stored bf16 to halve HBM traffic.
    """
    y = jnp.dot(p_ref[...], w_ref[...], preferred_element_type=jnp.float32)
    y_ref[...] = y.astype(y_ref.dtype)
    s_ref[...] = jnp.concatenate(
        [jnp.sum(y, axis=0, keepdims=True),
         jnp.sum(y * y, axis=0, keepdims=True)], axis=0)


def _bn_relu_kernel(y_ref, sc_ref, sh_ref, x_ref):
    """y * scale + shift, ReLU, bf16 output (scale/shift precomputed)."""
    y = y_ref[...].astype(jnp.float32)
    x_ref[...] = jnp.maximum(y * sc_ref[...] + sh_ref[...], 0.0).astype(x_ref.dtype)


def _mm_tanh_kernel(p_ref, w_ref, o_ref):
    """Final layer: matmul + tanh, lane-dense (full 128-wide) bf16 store."""
    y = jnp.dot(p_ref[...], w_ref[...], preferred_element_type=jnp.float32)
    o_ref[...] = jnp.tanh(y).astype(o_ref.dtype)


# ---------------- pallas_call wrappers --------------------------------------

def _mm_stats(patches, wmat, tile_m, tile_n):
    p, rows, k = patches.shape
    _, _, n = wmat.shape
    rt, nt = rows // tile_m, n // tile_n
    return pl.pallas_call(
        _mm_stats_kernel,
        out_shape=(
            jax.ShapeDtypeStruct((p, rows, n), jnp.bfloat16),
            jax.ShapeDtypeStruct((p, rt, 2, n), jnp.float32),
        ),
        grid=(p, rt, nt),
        in_specs=[
            pl.BlockSpec((None, tile_m, k), lambda ph, r, c: (ph, r, 0)),
            pl.BlockSpec((None, k, tile_n), lambda ph, r, c: (ph, 0, c)),
        ],
        out_specs=(
            pl.BlockSpec((None, tile_m, tile_n), lambda ph, r, c: (ph, r, c)),
            pl.BlockSpec((None, None, 2, tile_n), lambda ph, r, c: (ph, r, 0, c)),
        ),
        compiler_params=_cparams(3),
    )(patches, wmat)


def _bn_relu(y, scale, shift, tile_m, tile_n):
    p, rows, n = y.shape
    rt, nt = rows // tile_m, n // tile_n
    return pl.pallas_call(
        _bn_relu_kernel,
        out_shape=jax.ShapeDtypeStruct((p, rows, n), jnp.bfloat16),
        grid=(p, rt, nt),
        in_specs=[
            pl.BlockSpec((None, tile_m, tile_n), lambda ph, r, c: (ph, r, c)),
            pl.BlockSpec((1, tile_n), lambda ph, r, c: (0, c)),
            pl.BlockSpec((1, tile_n), lambda ph, r, c: (0, c)),
        ],
        out_specs=pl.BlockSpec((None, tile_m, tile_n), lambda ph, r, c: (ph, r, c)),
        compiler_params=_cparams(3),
    )(y, scale, shift)


def _mm_tanh(patches, wmat, tile_m):
    p, rows, k = patches.shape
    _, _, n = wmat.shape                       # n = 128 (lane-dense)
    rt = rows // tile_m
    return pl.pallas_call(
        _mm_tanh_kernel,
        out_shape=jax.ShapeDtypeStruct((p, rows, n), jnp.bfloat16),
        grid=(p, rt),
        in_specs=[
            pl.BlockSpec((None, tile_m, k), lambda ph, r: (ph, r, 0)),
            pl.BlockSpec((None, k, n), lambda ph, r: (ph, 0, 0)),
        ],
        out_specs=pl.BlockSpec((None, tile_m, n), lambda ph, r: (ph, r, 0)),
        compiler_params=_cparams(2),
    )(patches, wmat)


# ---------------- JAX glue: sub-pixel patches & parameter prep --------------

def _build_phase_patches_s2(x):
    """Sub-pixel patches for a k=4, s=2, p=1 transposed conv.

    x: (B, H, W, IC) bf16 -> (4, B*H*W, 4*IC) bf16 (no K padding).  Phase
    (ph_h, ph_w) holds output pixels (2i+ph_h, 2j+ph_w); each needs only a
    2x2-tap window of the un-dilated input.
    """
    b, h, w, ic = x.shape
    xp = jnp.pad(x, ((0, 0), (1, 1), (1, 1), (0, 0)))
    rows = b * h * w
    phases = []
    for ph_h in range(2):
        for ph_w in range(2):
            taps = [xp[:, ph_h + dh:ph_h + dh + h, ph_w + dw:ph_w + dw + w, :]
                    for dh in range(2) for dw in range(2)]
            phases.append(jnp.concatenate(taps, axis=-1).reshape(rows, 4 * ic))
    return jnp.stack(phases, axis=0)


def prepare_params(raw, layer_cfg):
    """One-time repack of ConvTranspose2d weights into per-phase bf16 mats."""
    prepared = {}
    n_layers = len(layer_cfg)
    for i, (ic, oc, stride, _pad) in enumerate(layer_cfg):
        w = raw[f"w{i}"]                                  # (ic, oc, 4, 4) f32
        if stride == 1:
            # Layer 1 collapsed: columns grouped phase-major, p = kh*4 + kw.
            n1 = KSIZE * KSIZE * oc
            n1p = _round_up(n1, LANE)
            wm = jnp.transpose(w, (0, 2, 3, 1)).reshape(ic, n1)
            wm = jnp.pad(wm, ((0, 0), (0, n1p - n1)))[None]       # (1, ic, n1p)
        else:
            # Phase (ph_h, ph_w), tap d = dh*2+dw uses kernel index
            # (3 - ph_h - 2*dh, 3 - ph_w - 2*dw); taps stacked along K=4*ic.
            ocp = _round_up(oc, LANE)
            blocks = []
            for ph_h in range(2):
                for ph_w in range(2):
                    taps = [w[:, :, 3 - ph_h - 2 * dh, 3 - ph_w - 2 * dw]
                            for dh in range(2) for dw in range(2)]
                    blocks.append(jnp.concatenate(taps, axis=0))   # (4*ic, oc)
            wm = jnp.stack(blocks, axis=0)                         # (4, 4*ic, oc)
            wm = jnp.pad(wm, ((0, 0), (0, 0), (0, ocp - oc)))
        prepared[f"w{i}"] = wm.astype(jnp.bfloat16)
        if i < n_layers - 1:
            prepared[f"gamma{i}"] = raw[f"gamma{i}"]
            prepared[f"beta{i}"] = raw[f"beta{i}"]
    return prepared


# ---------------- Forward pass ----------------------------------------------

def generator_forward(z, params, layer_cfg):
    """z: (B, nz) f32 -> (B, nc, 64, 64) f32, matching Generator.forward."""
    if z.ndim != 2:
        raise ValueError("Input must have 2 dim but found {}".format(z.shape))
    batch = z.shape[0]
    n_layers = len(layer_cfg)
    x = None
    for i, (_ic, oc, stride, _pad) in enumerate(layer_cfg):
        wm = params[f"w{i}"]                              # (P, K, N) bf16
        k, n = wm.shape[1], wm.shape[2]
        if stride == 1:                                   # layer 1: collapsed FC
            h = w_ = 1
            oh = ow = KSIZE
            rows = batch
            patches = z.astype(jnp.bfloat16)[None]        # (1, B, nz)
        else:                                             # k=4, s=2, p=1
            _, h, w_, _ = x.shape
            oh, ow = 2 * h, 2 * w_
            rows = batch * h * w_
            patches = _build_phase_patches_s2(x)          # (4, rows, 4*ic)
        tile_m = _pick_tile_m(rows, k, n)
        tile_n = _pick_tile_n(n)

        if i < n_layers - 1:
            y, stats = _mm_stats(patches, wm, tile_m, tile_n)
            # --- BN finalize (training-mode batch stats, tiny JAX) ---------
            count = float(batch * oh * ow)
            s = jnp.sum(stats, axis=(0, 1))               # (2, N)
            if stride == 1:
                n_real = KSIZE * KSIZE * oc
                s = jnp.sum(s[:, :n_real].reshape(2, KSIZE * KSIZE, oc), axis=1)
            else:
                s = s[:, :oc]
            mean = s[0] / count
            var = jnp.maximum(s[1] / count - mean * mean, 0.0)   # biased (train)
            inv = jax.lax.rsqrt(var + BN_EPS)
            scale = params[f"gamma{i}"] * inv
            shift = params[f"beta{i}"] - mean * scale
            if stride == 1:
                scale = jnp.tile(scale, KSIZE * KSIZE)
                shift = jnp.tile(shift, KSIZE * KSIZE)
            scale = jnp.pad(scale, (0, n - scale.shape[0])).reshape(1, n)
            shift = jnp.pad(shift, (0, n - shift.shape[0])).reshape(1, n)
            act = _bn_relu(y, scale, shift, tile_m, tile_n)      # bf16
            # --- phase interleave back to NHWC -----------------------------
            if stride == 1:
                x = act[0, :, :KSIZE * KSIZE * oc].reshape(
                    batch, KSIZE, KSIZE, oc)
            else:
                x = jnp.transpose(
                    act[:, :, :oc].reshape(2, 2, batch, h, w_, oc),
                    (2, 3, 0, 4, 1, 5)).reshape(batch, oh, ow, oc)
        else:
            out = _mm_tanh(patches, wm, tile_m)                  # (4, rows, 128)
            x = jnp.transpose(
                out[:, :, :oc].reshape(2, 2, batch, h, w_, oc),
                (2, 3, 0, 4, 1, 5)).reshape(batch, oh, ow, oc).astype(jnp.float32)
    return jnp.transpose(x, (0, 3, 1, 2))                 # NHWC -> NCHW


# ---------------- Pure-JAX reference (f32) for verification ------------------

def _reference_forward(z, raw, layer_cfg):
    b = z.shape[0]
    x = z.reshape(b, z.shape[1], 1, 1)
    n_layers = len(layer_cfg)
    for i, (_ic, oc, stride, pad) in enumerate(layer_cfg):
        w = raw[f"w{i}"]
        x = jax.lax.conv_general_dilated(
            x, jnp.flip(w, axis=(2, 3)),
            window_strides=(1, 1),
            padding=((KSIZE - 1 - pad,) * 2,) * 2,
            lhs_dilation=(stride, stride),
            dimension_numbers=("NCHW", "IOHW", "NCHW"),
            precision=jax.lax.Precision.HIGHEST)
        if i < n_layers - 1:
            mean = jnp.mean(x, axis=(0, 2, 3), keepdims=True)
            var = jnp.mean(jnp.square(x - mean), axis=(0, 2, 3), keepdims=True)
            xh = (x - mean) * jax.lax.rsqrt(var + BN_EPS)
            x = jnp.maximum(
                xh * raw[f"gamma{i}"].reshape(1, oc, 1, 1)
                + raw[f"beta{i}"].reshape(1, oc, 1, 1), 0.0)
        else:
            x = jnp.tanh(x)
    return x


if __name__ == "__main__":
    # Small-but-faithful config: nz=32, ngf=8, nc=1, batch=2.
    B, NZ, NGF, NC = 2, 32, 8, 1
    layer_cfg = (
        (NZ,      NGF * 8, 1, 0),   # -> 4x4
        (NGF * 8, NGF * 4, 2, 1),   # -> 8x8
        (NGF * 4, NGF * 2, 2, 1),   # -> 16x16
        (NGF * 2, NGF,     2, 1),   # -> 32x32
        (NGF,     NC,      2, 1),   # -> 64x64, Tanh
    )

    # Deterministic weights_init: Conv ~ N(0, 0.02), BN gamma ~ N(1, 0.02), beta = 0.
    key = jax.random.PRNGKey(0)
    raw = {}
    for i, (ic, oc, _, _) in enumerate(layer_cfg):
        key, kw, kg = jax.random.split(key, 3)
        raw[f"w{i}"] = 0.02 * jax.random.normal(
            kw, (ic, oc, KSIZE, KSIZE), jnp.float32)
        if i < len(layer_cfg) - 1:
            raw[f"gamma{i}"] = 1.0 + 0.02 * jax.random.normal(
                kg, (oc,), jnp.float32)
            raw[f"beta{i}"] = jnp.zeros((oc,), jnp.float32)

    key, kz = jax.random.split(key)
    z = jax.random.normal(kz, (B, NZ), jnp.float32)

    # One-time weight repack/pad (kept out of the per-call graph).
    params = jax.block_until_ready(prepare_params(raw, layer_cfg))

    fwd = jax.jit(functools.partial(generator_forward, layer_cfg=layer_cfg))
    out = jax.block_until_ready(fwd(z, params))

    assert out.shape == (B, NC, 64, 64), out.shape
    assert bool(jnp.all(jnp.isfinite(out)))

    # Verify the sub-pixel tap/kernel mapping against an f32 lax reference
    # (kernel runs in bf16, so tolerances are loose but bug-discriminative).
    ref_fn = jax.jit(functools.partial(_reference_forward, layer_cfg=layer_cfg))
    ref = jax.block_until_ready(ref_fn(z, raw))
    max_err = float(jnp.max(jnp.abs(out - ref)))
    mean_err = float(jnp.mean(jnp.abs(out - ref)))
    assert max_err < 0.1 and mean_err < 0.02, (max_err, mean_err)

    print("KERNEL_OK")
</pallas_src>

<mosaic_0001>
module attributes {stable_mosaic.version = 11 : i64} {
  func.func @_mm_stats_kernel(%arg0: i32, %arg1: i32, %arg2: i32, %arg3: memref<1x2x32xbf16, #tpu.memory_space<vmem>>, %arg4: memref<1x32x512xbf16, #tpu.memory_space<vmem>>, %arg5: memref<1x2x512xbf16, #tpu.memory_space<vmem>>, %arg6: memref<1x1x2x512xf32, #tpu.memory_space<vmem>>) attributes {dimension_semantics = [#tpu.dimension_semantics<parallel>, #tpu.dimension_semantics<parallel>, #tpu.dimension_semantics<parallel>], iteration_bounds = array<i64: 1, 1, 2>, scalar_prefetch = 0 : i64, scratch_operands = 0 : i64, tpu.core_type = #tpu.core_type<tc>, window_params = [{transform_indices = @transform_0, window_bounds = array<i64: 1, 2, 32>}, {transform_indices = @transform_1, window_bounds = array<i64: 1, 32, 512>}, {transform_indices = @transform_2, window_bounds = array<i64: 1, 2, 512>}, {transform_indices = @transform_3, window_bounds = array<i64: 1, 1, 2, 512>}]} {
    %c0 = arith.constant 0 : index
    %c0_0 = arith.constant 0 : index
    %c0_1 = arith.constant 0 : index
    %0 = vector.load %arg3[%c0, %c0_0, %c0_1] : memref<1x2x32xbf16, #tpu.memory_space<vmem>>, vector<1x2x32xbf16>
    %1 = vector.shape_cast %0 : vector<1x2x32xbf16> to vector<2x32xbf16>
    %c0_2 = arith.constant 0 : index
    %c0_3 = arith.constant 0 : index
    %c0_4 = arith.constant 0 : index
    %2 = vector.load %arg4[%c0_2, %c0_3, %c0_4] : memref<1x32x512xbf16, #tpu.memory_space<vmem>>, vector<1x32x512xbf16>
    %3 = vector.shape_cast %2 : vector<1x32x512xbf16> to vector<32x512xbf16>
    %cst = arith.constant dense<0.000000e+00> : vector<2x512xf32>
    %4 = tpu.matmul %1, %3, %cst {dimension_numbers = #tpu.dot_dimension_numbers<[1], [0], [0], [1], [0, 0, 1, 1], [], []>} : vector<2x32xbf16>, vector<32x512xbf16>, vector<2x512xf32> -> vector<2x512xf32>
    %5 = arith.truncf %4 : vector<2x512xf32> to vector<2x512xbf16>
    %c0_5 = arith.constant 0 : index
    %c0_6 = arith.constant 0 : index
    %c0_7 = arith.constant 0 : index
    %6 = vector.load %arg5[%c0_5, %c0_6, %c0_7] : memref<1x2x512xbf16, #tpu.memory_space<vmem>>, vector<1x2x512xbf16>
    %7 = vector.shape_cast %6 : vector<1x2x512xbf16> to vector<2x512xbf16>
    %8 = vector.shape_cast %5 : vector<2x512xbf16> to vector<1x2x512xbf16>
    tpu.vector_store %arg5[%c0_5, %c0_6, %c0_7], %8 {strides = array<i32>} : memref<1x2x512xbf16, #tpu.memory_space<vmem>>, vector<1x2x512xbf16>,
    %cst_8 = arith.constant dense<0.000000e+00> : vector<512xf32>
    %9 = vector.multi_reduction <add>, %4, %cst_8 [0] : vector<2x512xf32> to vector<512xf32>
    %10 = vector.shape_cast %9 : vector<512xf32> to vector<1x512xf32>
    %11 = arith.mulf %4, %4 : vector<2x512xf32>
    %cst_9 = arith.constant dense<0.000000e+00> : vector<512xf32>
    %12 = vector.multi_reduction <add>, %11, %cst_9 [0] : vector<2x512xf32> to vector<512xf32>
    %13 = vector.shape_cast %12 : vector<512xf32> to vector<1x512xf32>
    %14 = tpu.concatenate %10, %13 in 0 : vector<1x512xf32>, vector<1x512xf32> -> vector<2x512xf32>
    %c0_10 = arith.constant 0 : index
    %c0_11 = arith.constant 0 : index
    %c0_12 = arith.constant 0 : index
    %c0_13 = arith.constant 0 : index
    %15 = vector.load %arg6[%c0_10, %c0_11, %c0_12, %c0_13] : memref<1x1x2x512xf32, #tpu.memory_space<vmem>>, vector<1x1x2x512xf32>
    %16 = vector.shape_cast %15 : vector<1x1x2x512xf32> to vector<2x512xf32>
    %17 = vector.shape_cast %14 : vector<2x512xf32> to vector<1x1x2x512xf32>
    tpu.vector_store %arg6[%c0_10, %c0_11, %c0_12, %c0_13], %17 {strides = array<i32>} : memref<1x1x2x512xf32, #tpu.memory_space<vmem>>, vector<1x1x2x512xf32>,
    return
  }
  func.func @transform_0(%arg0: i32, %arg1: i32, %arg2: i32) -> (i32, i32, i32) {
    %c0_i32 = arith.constant 0 : i32
    %c0_i32_0 = arith.constant 0 : i32
    return %arg0, %arg1, %c0_i32 : i32, i32, i32
  }
  func.func @transform_1(%arg0: i32, %arg1: i32, %arg2: i32) -> (i32, i32, i32) {
    %c0_i32 = arith.constant 0 : i32
    %c0_i32_0 = arith.constant 0 : i32
    return %arg0, %c0_i32, %arg2 : i32, i32, i32
  }
  func.func @transform_2(%arg0: i32, %arg1: i32, %arg2: i32) -> (i32, i32, i32) {
    %c0_i32 = arith.constant 0 : i32
    return %arg0, %arg1, %arg2 : i32, i32, i32
  }
  func.func @transform_3(%arg0: i32, %arg1: i32, %arg2: i32) -> (i32, i32, i32, i32) {
    %c0_i32 = arith.constant 0 : i32
    %c0_i32_0 = arith.constant 0 : i32
    return %arg0, %arg1, %c0_i32, %arg2 : i32, i32, i32, i32
  }
}

module attributes {stable_mosaic.version = 11 : i64} {
  func.func @_bn_relu_kernel(%arg0: i32, %arg1: i32, %arg2: i32, %arg3: memref<1x2x512xbf16, #tpu.memory_space<vmem>>, %arg4: memref<1x512xf32, #tpu.memory_space<vmem>>, %arg5: memref<1x512xf32, #tpu.memory_space<vmem>>, %arg6: memref<1x2x512xbf16, #tpu.memory_space<vmem>>) attributes {dimension_semantics = [#tpu.dimension_semantics<parallel>, #tpu.dimension_semantics<parallel>, #tpu.dimension_semantics<parallel>], iteration_bounds = array<i64: 1, 1, 2>, scalar_prefetch = 0 : i64, scratch_operands = 0 : i64, tpu.core_type = #tpu.core_type<tc>, window_params = [{transform_indices = @transform_0, window_bounds = array<i64: 1, 2, 512>}, {transform_indices = @transform_1, window_bounds = array<i64: 1, 512>}, {transform_indices = @transform_2, window_bounds = array<i64: 1, 512>}, {transform_indices = @transform_3, window_bounds = array<i64: 1, 2, 512>}]} {
    %c0 = arith.constant 0 : index
    %c0_0 = arith.constant 0 : index
    %c0_1 = arith.constant 0 : index
    %0 = vector.load %arg3[%c0, %c0_0, %c0_1] : memref<1x2x512xbf16, #tpu.memory_space<vmem>>, vector<1x2x512xbf16>
    %1 = vector.shape_cast %0 : vector<1x2x512xbf16> to vector<2x512xbf16>
    %2 = arith.extf %1 : vector<2x512xbf16> to vector<2x512xf32>
    %c0_2 = arith.constant 0 : index
    %c0_3 = arith.constant 0 : index
    %3 = vector.load %arg4[%c0_2, %c0_3] : memref<1x512xf32, #tpu.memory_space<vmem>>, vector<1x512xf32>
    %4 = vector.broadcast %3 : vector<1x512xf32> to vector<2x512xf32>
    %5 = arith.mulf %2, %4 : vector<2x512xf32>
    %c0_4 = arith.constant 0 : index
    %c0_5 = arith.constant 0 : index
    %6 = vector.load %arg5[%c0_4, %c0_5] : memref<1x512xf32, #tpu.memory_space<vmem>>, vector<1x512xf32>
    %7 = vector.broadcast %6 : vector<1x512xf32> to vector<2x512xf32>
    %8 = arith.addf %5, %7 : vector<2x512xf32>
    %cst = arith.constant 0.000000e+00 : f32
    %9 = vector.broadcast %cst : f32 to vector<2x512xf32>
    %10 = arith.maximumf %8, %9 : vector<2x512xf32>
    %11 = arith.truncf %10 : vector<2x512xf32> to vector<2x512xbf16>
    %c0_6 = arith.constant 0 : index
    %c0_7 = arith.constant 0 : index
    %c0_8 = arith.constant 0 : index
    %12 = vector.load %arg6[%c0_6, %c0_7, %c0_8] : memref<1x2x512xbf16, #tpu.memory_space<vmem>>, vector<1x2x512xbf16>
    %13 = vector.shape_cast %12 : vector<1x2x512xbf16> to vector<2x512xbf16>
    %14 = vector.shape_cast %11 : vector<2x512xbf16> to vector<1x2x512xbf16>
    tpu.vector_store %arg6[%c0_6, %c0_7, %c0_8], %14 {strides = array<i32>} : memref<1x2x512xbf16, #tpu.memory_space<vmem>>, vector<1x2x512xbf16>,
    return
  }
  func.func @transform_0(%arg0: i32, %arg1: i32, %arg2: i32) -> (i32, i32, i32) {
    %c0_i32 = arith.constant 0 : i32
    return %arg0, %arg1, %arg2 : i32, i32, i32
  }
  func.func @transform_1(%arg0: i32, %arg1: i32, %arg2: i32) -> (i32, i32) {
    %c0_i32 = arith.constant 0 : i32
    %c0_i32_0 = arith.constant 0 : i32
    return %c0_i32, %arg2 : i32, i32
  }
  func.func @transform_2(%arg0: i32, %arg1: i32, %arg2: i32) -> (i32, i32) {
    %c0_i32 = arith.constant 0 : i32
    %c0_i32_0 = arith.constant 0 : i32
    return %c0_i32, %arg2 : i32, i32
  }
  func.func @transform_3(%arg0: i32, %arg1: i32, %arg2: i32) -> (i32, i32, i32) {
    %c0_i32 = arith.constant 0 : i32
    return %arg0, %arg1, %arg2 : i32, i32, i32
  }
}

module attributes {stable_mosaic.version = 11 : i64} {
  func.func @_mm_stats_kernel(%arg0: i32, %arg1: i32, %arg2: i32, %arg3: memref<1x32x256xbf16, #tpu.memory_space<vmem>>, %arg4: memref<1x256x128xbf16, #tpu.memory_space<vmem>>, %arg5: memref<1x32x128xbf16, #tpu.memory_space<vmem>>, %arg6: memref<1x1x2x128xf32, #tpu.memory_space<vmem>>) attributes {dimension_semantics = [#tpu.dimension_semantics<parallel>, #tpu.dimension_semantics<parallel>, #tpu.dimension_semantics<parallel>], iteration_bounds = array<i64: 4, 1, 1>, scalar_prefetch = 0 : i64, scratch_operands = 0 : i64, tpu.core_type = #tpu.core_type<tc>, window_params = [{transform_indices = @transform_0, window_bounds = array<i64: 1, 32, 256>}, {transform_indices = @transform_1, window_bounds = array<i64: 1, 256, 128>}, {transform_indices = @transform_2, window_bounds = array<i64: 1, 32, 128>}, {transform_indices = @transform_3, window_bounds = array<i64: 1, 1, 2, 128>}]} {
    %c0 = arith.constant 0 : index
    %c0_0 = arith.constant 0 : index
    %c0_1 = arith.constant 0 : index
    %0 = vector.load %arg3[%c0, %c0_0, %c0_1] : memref<1x32x256xbf16, #tpu.memory_space<vmem>>, vector<1x32x256xbf16>
    %1 = vector.shape_cast %0 : vector<1x32x256xbf16> to vector<32x256xbf16>
    %c0_2 = arith.constant 0 : index
    %c0_3 = arith.constant 0 : index
    %c0_4 = arith.constant 0 : index
    %2 = vector.load %arg4[%c0_2, %c0_3, %c0_4] : memref<1x256x128xbf16, #tpu.memory_space<vmem>>, vector<1x256x128xbf16>
    %3 = vector.shape_cast %2 : vector<1x256x128xbf16> to vector<256x128xbf16>
    %cst = arith.constant dense<0.000000e+00> : vector<32x128xf32>
    %4 = tpu.matmul %1, %3, %cst {dimension_numbers = #tpu.dot_dimension_numbers<[1], [0], [0], [1], [0, 0, 1, 1], [], []>} : vector<32x256xbf16>, vector<256x128xbf16>, vector<32x128xf32> -> vector<32x128xf32>
    %5 = arith.truncf %4 : vector<32x128xf32> to vector<32x128xbf16>
    %c0_5 = arith.constant 0 : index
    %c0_6 = arith.constant 0 : index
    %c0_7 = arith.constant 0 : index
    %6 = vector.load %arg5[%c0_5, %c0_6, %c0_7] : memref<1x32x128xbf16, #tpu.memory_space<vmem>>, vector<1x32x128xbf16>
    %7 = vector.shape_cast %6 : vector<1x32x128xbf16> to vector<32x128xbf16>
    %8 = vector.shape_cast %5 : vector<32x128xbf16> to vector<1x32x128xbf16>
    tpu.vector_store %arg5[%c0_5, %c0_6, %c0_7], %8 {strides = array<i32>} : memref<1x32x128xbf16, #tpu.memory_space<vmem>>, vector<1x32x128xbf16>,
    %cst_8 = arith.constant dense<0.000000e+00> : vector<128xf32>
    %9 = vector.multi_reduction <add>, %4, %cst_8 [0] : vector<32x128xf32> to vector<128xf32>
    %10 = vector.shape_cast %9 : vector<128xf32> to vector<1x128xf32>
    %11 = arith.mulf %4, %4 : vector<32x128xf32>
    %cst_9 = arith.constant dense<0.000000e+00> : vector<128xf32>
    %12 = vector.multi_reduction <add>, %11, %cst_9 [0] : vector<32x128xf32> to vector<128xf32>
    %13 = vector.shape_cast %12 : vector<128xf32> to vector<1x128xf32>
    %14 = tpu.concatenate %10, %13 in 0 : vector<1x128xf32>, vector<1x128xf32> -> vector<2x128xf32>
    %c0_10 = arith.constant 0 : index
    %c0_11 = arith.constant 0 : index
    %c0_12 = arith.constant 0 : index
    %c0_13 = arith.constant 0 : index
    %15 = vector.load %arg6[%c0_10, %c0_11, %c0_12, %c0_13] : memref<1x1x2x128xf32, #tpu.memory_space<vmem>>, vector<1x1x2x128xf32>
    %16 = vector.shape_cast %15 : vector<1x1x2x128xf32> to vector<2x128xf32>
    %17 = vector.shape_cast %14 : vector<2x128xf32> to vector<1x1x2x128xf32>
    tpu.vector_store %arg6[%c0_10, %c0_11, %c0_12, %c0_13], %17 {strides = array<i32>} : memref<1x1x2x128xf32, #tpu.memory_space<vmem>>, vector<1x1x2x128xf32>,
    return
  }
  func.func @transform_0(%arg0: i32, %arg1: i32, %arg2: i32) -> (i32, i32, i32) {
    %c0_i32 = arith.constant 0 : i32
    %c0_i32_0 = arith.constant 0 : i32
    return %arg0, %arg1, %c0_i32 : i32, i32, i32
  }
  func.func @transform_1(%arg0: i32, %arg1: i32, %arg2: i32) -> (i32, i32, i32) {
    %c0_i32 = arith.constant 0 : i32
    %c0_i32_0 = arith.constant 0 : i32
    return %arg0, %c0_i32, %arg2 : i32, i32, i32
  }
  func.func @transform_2(%arg0: i32, %arg1: i32, %arg2: i32) -> (i32, i32, i32) {
    %c0_i32 = arith.constant 0 : i32
    return %arg0, %arg1, %arg2 : i32, i32, i32
  }
  func.func @transform_3(%arg0: i32, %arg1: i32, %arg2: i32) -> (i32, i32, i32, i32) {
    %c0_i32 = arith.constant 0 : i32
    %c0_i32_0 = arith.constant 0 : i32
    return %arg0, %arg1, %c0_i32, %arg2 : i32, i32, i32, i32
  }
}

module attributes {stable_mosaic.version = 11 : i64} {
  func.func @_bn_relu_kernel(%arg0: i32, %arg1: i32, %arg2: i32, %arg3: memref<1x32x128xbf16, #tpu.memory_space<vmem>>, %arg4: memref<1x128xf32, #tpu.memory_space<vmem>>, %arg5: memref<1x128xf32, #tpu.memory_space<vmem>>, %arg6: memref<1x32x128xbf16, #tpu.memory_space<vmem>>) attributes {dimension_semantics = [#tpu.dimension_semantics<parallel>, #tpu.dimension_semantics<parallel>, #tpu.dimension_semantics<parallel>], iteration_bounds = array<i64: 4, 1, 1>, scalar_prefetch = 0 : i64, scratch_operands = 0 : i64, tpu.core_type = #tpu.core_type<tc>, window_params = [{transform_indices = @transform_0, window_bounds = array<i64: 1, 32, 128>}, {transform_indices = @transform_1, window_bounds = array<i64: 1, 128>}, {transform_indices = @transform_2, window_bounds = array<i64: 1, 128>}, {transform_indices = @transform_3, window_bounds = array<i64: 1, 32, 128>}]} {
    %c0 = arith.constant 0 : index
    %c0_0 = arith.constant 0 : index
    %c0_1 = arith.constant 0 : index
    %0 = vector.load %arg3[%c0, %c0_0, %c0_1] : memref<1x32x128xbf16, #tpu.memory_space<vmem>>, vector<1x32x128xbf16>
    %1 = vector.shape_cast %0 : vector<1x32x128xbf16> to vector<32x128xbf16>
    %2 = arith.extf %1 : vector<32x128xbf16> to vector<32x128xf32>
    %c0_2 = arith.constant 0 : index
    %c0_3 = arith.constant 0 : index
    %3 = vector.load %arg4[%c0_2, %c0_3] : memref<1x128xf32, #tpu.memory_space<vmem>>, vector<1x128xf32>
    %4 = vector.broadcast %3 : vector<1x128xf32> to vector<32x128xf32>
    %5 = arith.mulf %2, %4 : vector<32x128xf32>
    %c0_4 = arith.constant 0 : index
    %c0_5 = arith.constant 0 : index
    %6 = vector.load %arg5[%c0_4, %c0_5] : memref<1x128xf32, #tpu.memory_space<vmem>>, vector<1x128xf32>
    %7 = vector.broadcast %6 : vector<1x128xf32> to vector<32x128xf32>
    %8 = arith.addf %5, %7 : vector<32x128xf32>
    %cst = arith.constant 0.000000e+00 : f32
    %9 = vector.broadcast %cst : f32 to vector<32x128xf32>
    %10 = arith.maximumf %8, %9 : vector<32x128xf32>
    %11 = arith.truncf %10 : vector<32x128xf32> to vector<32x128xbf16>
    %c0_6 = arith.constant 0 : index
    %c0_7 = arith.constant 0 : index
    %c0_8 = arith.constant 0 : index
    %12 = vector.load %arg6[%c0_6, %c0_7, %c0_8] : memref<1x32x128xbf16, #tpu.memory_space<vmem>>, vector<1x32x128xbf16>
    %13 = vector.shape_cast %12 : vector<1x32x128xbf16> to vector<32x128xbf16>
    %14 = vector.shape_cast %11 : vector<32x128xbf16> to vector<1x32x128xbf16>
    tpu.vector_store %arg6[%c0_6, %c0_7, %c0_8], %14 {strides = array<i32>} : memref<1x32x128xbf16, #tpu.memory_space<vmem>>, vector<1x32x128xbf16>,
    return
  }
  func.func @transform_0(%arg0: i32, %arg1: i32, %arg2: i32) -> (i32, i32, i32) {
    %c0_i32 = arith.constant 0 : i32
    return %arg0, %arg1, %arg2 : i32, i32, i32
  }
  func.func @transform_1(%arg0: i32, %arg1: i32, %arg2: i32) -> (i32, i32) {
    %c0_i32 = arith.constant 0 : i32
    %c0_i32_0 = arith.constant 0 : i32
    return %c0_i32, %arg2 : i32, i32
  }
  func.func @transform_2(%arg0: i32, %arg1: i32, %arg2: i32) -> (i32, i32) {
    %c0_i32 = arith.constant 0 : i32
    %c0_i32_0 = arith.constant 0 : i32
    return %c0_i32, %arg2 : i32, i32
  }
  func.func @transform_3(%arg0: i32, %arg1: i32, %arg2: i32) -> (i32, i32, i32) {
    %c0_i32 = arith.constant 0 : i32
    return %arg0, %arg1, %arg2 : i32, i32, i32
  }
}

module attributes {stable_mosaic.version = 11 : i64} {
  func.func @_mm_stats_kernel(%arg0: i32, %arg1: i32, %arg2: i32, %arg3: memref<1x128x128xbf16, #tpu.memory_space<vmem>>, %arg4: memref<1x128x128xbf16, #tpu.memory_space<vmem>>, %arg5: memref<1x128x128xbf16, #tpu.memory_space<vmem>>, %arg6: memref<1x1x2x128xf32, #tpu.memory_space<vmem>>) attributes {dimension_semantics = [#tpu.dimension_semantics<parallel>, #tpu.dimension_semantics<parallel>, #tpu.dimension_semantics<parallel>], iteration_bounds = array<i64: 4, 1, 1>, scalar_prefetch = 0 : i64, scratch_operands = 0 : i64, tpu.core_type = #tpu.core_type<tc>, window_params = [{transform_indices = @transform_0, window_bounds = array<i64: 1, 128, 128>}, {transform_indices = @transform_1, window_bounds = array<i64: 1, 128, 128>}, {transform_indices = @transform_2, window_bounds = array<i64: 1, 128, 128>}, {transform_indices = @transform_3, window_bounds = array<i64: 1, 1, 2, 128>}]} {
    %c0 = arith.constant 0 : index
    %c0_0 = arith.constant 0 : index
    %c0_1 = arith.constant 0 : index
    %0 = vector.load %arg3[%c0, %c0_0, %c0_1] : memref<1x128x128xbf16, #tpu.memory_space<vmem>>, vector<1x128x128xbf16>
    %1 = vector.shape_cast %0 : vector<1x128x128xbf16> to vector<128x128xbf16>
    %c0_2 = arith.constant 0 : index
    %c0_3 = arith.constant 0 : index
    %c0_4 = arith.constant 0 : index
    %2 = vector.load %arg4[%c0_2, %c0_3, %c0_4] : memref<1x128x128xbf16, #tpu.memory_space<vmem>>, vector<1x128x128xbf16>
    %3 = vector.shape_cast %2 : vector<1x128x128xbf16> to vector<128x128xbf16>
    %cst = arith.constant dense<0.000000e+00> : vector<128x128xf32>
    %4 = tpu.matmul %1, %3, %cst {dimension_numbers = #tpu.dot_dimension_numbers<[1], [0], [0], [1], [0, 0, 1, 1], [], []>} : vector<128x128xbf16>, vector<128x128xbf16>, vector<128x128xf32> -> vector<128x128xf32>
    %5 = arith.truncf %4 : vector<128x128xf32> to vector<128x128xbf16>
    %c0_5 = arith.constant 0 : index
    %c0_6 = arith.constant 0 : index
    %c0_7 = arith.constant 0 : index
    %6 = vector.load %arg5[%c0_5, %c0_6, %c0_7] : memref<1x128x128xbf16, #tpu.memory_space<vmem>>, vector<1x128x128xbf16>
    %7 = vector.shape_cast %6 : vector<1x128x128xbf16> to vector<128x128xbf16>
    %8 = vector.shape_cast %5 : vector<128x128xbf16> to vector<1x128x128xbf16>
    tpu.vector_store %arg5[%c0_5, %c0_6, %c0_7], %8 {strides = array<i32>} : memref<1x128x128xbf16, #tpu.memory_space<vmem>>, vector<1x128x128xbf16>,
    %cst_8 = arith.constant dense<0.000000e+00> : vector<128xf32>
    %9 = vector.multi_reduction <add>, %4, %cst_8 [0] : vector<128x128xf32> to vector<128xf32>
    %10 = vector.shape_cast %9 : vector<128xf32> to vector<1x128xf32>
    %11 = arith.mulf %4, %4 : vector<128x128xf32>
    %cst_9 = arith.constant dense<0.000000e+00> : vector<128xf32>
    %12 = vector.multi_reduction <add>, %11, %cst_9 [0] : vector<128x128xf32> to vector<128xf32>
    %13 = vector.shape_cast %12 : vector<128xf32> to vector<1x128xf32>
    %14 = tpu.concatenate %10, %13 in 0 : vector<1x128xf32>, vector<1x128xf32> -> vector<2x128xf32>
    %c0_10 = arith.constant 0 : index
    %c0_11 = arith.constant 0 : index
    %c0_12 = arith.constant 0 : index
    %c0_13 = arith.constant 0 : index
    %15 = vector.load %arg6[%c0_10, %c0_11, %c0_12, %c0_13] : memref<1x1x2x128xf32, #tpu.memory_space<vmem>>, vector<1x1x2x128xf32>
    %16 = vector.shape_cast %15 : vector<1x1x2x128xf32> to vector<2x128xf32>
    %17 = vector.shape_cast %14 : vector<2x128xf32> to vector<1x1x2x128xf32>
    tpu.vector_store %arg6[%c0_10, %c0_11, %c0_12, %c0_13], %17 {strides = array<i32>} : memref<1x1x2x128xf32, #tpu.memory_space<vmem>>, vector<1x1x2x128xf32>,
    return
  }
  func.func @transform_0(%arg0: i32, %arg1: i32, %arg2: i32) -> (i32, i32, i32) {
    %c0_i32 = arith.constant 0 : i32
    %c0_i32_0 = arith.constant 0 : i32
    return %arg0, %arg1, %c0_i32 : i32, i32, i32
  }
  func.func @transform_1(%arg0: i32, %arg1: i32, %arg2: i32) -> (i32, i32, i32) {
    %c0_i32 = arith.constant 0 : i32
    %c0_i32_0 = arith.constant 0 : i32
    return %arg0, %c0_i32, %arg2 : i32, i32, i32
  }
  func.func @transform_2(%arg0: i32, %arg1: i32, %arg2: i32) -> (i32, i32, i32) {
    %c0_i32 = arith.constant 0 : i32
    return %arg0, %arg1, %arg2 : i32, i32, i32
  }
  func.func @transform_3(%arg0: i32, %arg1: i32, %arg2: i32) -> (i32, i32, i32, i32) {
    %c0_i32 = arith.constant 0 : i32
    %c0_i32_0 = arith.constant 0 : i32
    return %arg0, %arg1, %c0_i32, %arg2 : i32, i32, i32, i32
  }
}

module attributes {stable_mosaic.version = 11 : i64} {
  func.func @_bn_relu_kernel(%arg0: i32, %arg1: i32, %arg2: i32, %arg3: memref<1x128x128xbf16, #tpu.memory_space<vmem>>, %arg4: memref<1x128xf32, #tpu.memory_space<vmem>>, %arg5: memref<1x128xf32, #tpu.memory_space<vmem>>, %arg6: memref<1x128x128xbf16, #tpu.memory_space<vmem>>) attributes {dimension_semantics = [#tpu.dimension_semantics<parallel>, #tpu.dimension_semantics<parallel>, #tpu.dimension_semantics<parallel>], iteration_bounds = array<i64: 4, 1, 1>, scalar_prefetch = 0 : i64, scratch_operands = 0 : i64, tpu.core_type = #tpu.core_type<tc>, window_params = [{transform_indices = @transform_0, window_bounds = array<i64: 1, 128, 128>}, {transform_indices = @transform_1, window_bounds = array<i64: 1, 128>}, {transform_indices = @transform_2, window_bounds = array<i64: 1, 128>}, {transform_indices = @transform_3, window_bounds = array<i64: 1, 128, 128>}]} {
    %c0 = arith.constant 0 : index
    %c0_0 = arith.constant 0 : index
    %c0_1 = arith.constant 0 : index
    %0 = vector.load %arg3[%c0, %c0_0, %c0_1] : memref<1x128x128xbf16, #tpu.memory_space<vmem>>, vector<1x128x128xbf16>
    %1 = vector.shape_cast %0 : vector<1x128x128xbf16> to vector<128x128xbf16>
    %2 = arith.extf %1 : vector<128x128xbf16> to vector<128x128xf32>
    %c0_2 = arith.constant 0 : index
    %c0_3 = arith.constant 0 : index
    %3 = vector.load %arg4[%c0_2, %c0_3] : memref<1x128xf32, #tpu.memory_space<vmem>>, vector<1x128xf32>
    %4 = vector.broadcast %3 : vector<1x128xf32> to vector<128x128xf32>
    %5 = arith.mulf %2, %4 : vector<128x128xf32>
    %c0_4 = arith.constant 0 : index
    %c0_5 = arith.constant 0 : index
    %6 = vector.load %arg5[%c0_4, %c0_5] : memref<1x128xf32, #tpu.memory_space<vmem>>, vector<1x128xf32>
    %7 = vector.broadcast %6 : vector<1x128xf32> to vector<128x128xf32>
    %8 = arith.addf %5, %7 : vector<128x128xf32>
    %cst = arith.constant 0.000000e+00 : f32
    %9 = vector.broadcast %cst : f32 to vector<128x128xf32>
    %10 = arith.maximumf %8, %9 : vector<128x128xf32>
    %11 = arith.truncf %10 : vector<128x128xf32> to vector<128x128xbf16>
    %c0_6 = arith.constant 0 : index
    %c0_7 = arith.constant 0 : index
    %c0_8 = arith.constant 0 : index
    %12 = vector.load %arg6[%c0_6, %c0_7, %c0_8] : memref<1x128x128xbf16, #tpu.memory_space<vmem>>, vector<1x128x128xbf16>
    %13 = vector.shape_cast %12 : vector<1x128x128xbf16> to vector<128x128xbf16>
    %14 = vector.shape_cast %11 : vector<128x128xbf16> to vector<1x128x128xbf16>
    tpu.vector_store %arg6[%c0_6, %c0_7, %c0_8], %14 {strides = array<i32>} : memref<1x128x128xbf16, #tpu.memory_space<vmem>>, vector<1x128x128xbf16>,
    return
  }
  func.func @transform_0(%arg0: i32, %arg1: i32, %arg2: i32) -> (i32, i32, i32) {
    %c0_i32 = arith.constant 0 : i32
    return %arg0, %arg1, %arg2 : i32, i32, i32
  }
  func.func @transform_1(%arg0: i32, %arg1: i32, %arg2: i32) -> (i32, i32) {
    %c0_i32 = arith.constant 0 : i32
    %c0_i32_0 = arith.constant 0 : i32
    return %c0_i32, %arg2 : i32, i32
  }
  func.func @transform_2(%arg0: i32, %arg1: i32, %arg2: i32) -> (i32, i32) {
    %c0_i32 = arith.constant 0 : i32
    %c0_i32_0 = arith.constant 0 : i32
    return %c0_i32, %arg2 : i32, i32
  }
  func.func @transform_3(%arg0: i32, %arg1: i32, %arg2: i32) -> (i32, i32, i32) {
    %c0_i32 = arith.constant 0 : i32
    return %arg0, %arg1, %arg2 : i32, i32, i32
  }
}

module attributes {stable_mosaic.version = 11 : i64} {
  func.func @_mm_stats_kernel(%arg0: i32, %arg1: i32, %arg2: i32, %arg3: memref<1x512x64xbf16, #tpu.memory_space<vmem>>, %arg4: memref<1x64x128xbf16, #tpu.memory_space<vmem>>, %arg5: memref<1x512x128xbf16, #tpu.memory_space<vmem>>, %arg6: memref<1x1x2x128xf32, #tpu.memory_space<vmem>>) attributes {dimension_semantics = [#tpu.dimension_semantics<parallel>, #tpu.dimension_semantics<parallel>, #tpu.dimension_semantics<parallel>], iteration_bounds = array<i64: 4, 1, 1>, scalar_prefetch = 0 : i64, scratch_operands = 0 : i64, tpu.core_type = #tpu.core_type<tc>, window_params = [{transform_indices = @transform_0, window_bounds = array<i64: 1, 512, 64>}, {transform_indices = @transform_1, window_bounds = array<i64: 1, 64, 128>}, {transform_indices = @transform_2, window_bounds = array<i64: 1, 512, 128>}, {transform_indices = @transform_3, window_bounds = array<i64: 1, 1, 2, 128>}]} {
    %c0 = arith.constant 0 : index
    %c0_0 = arith.constant 0 : index
    %c0_1 = arith.constant 0 : index
    %0 = vector.load %arg3[%c0, %c0_0, %c0_1] : memref<1x512x64xbf16, #tpu.memory_space<vmem>>, vector<1x512x64xbf16>
    %1 = vector.shape_cast %0 : vector<1x512x64xbf16> to vector<512x64xbf16>
    %c0_2 = arith.constant 0 : index
    %c0_3 = arith.constant 0 : index
    %c0_4 = arith.constant 0 : index
    %2 = vector.load %arg4[%c0_2, %c0_3, %c0_4] : memref<1x64x128xbf16, #tpu.memory_space<vmem>>, vector<1x64x128xbf16>
    %3 = vector.shape_cast %2 : vector<1x64x128xbf16> to vector<64x128xbf16>
    %cst = arith.constant dense<0.000000e+00> : vector<512x128xf32>
    %4 = tpu.matmul %1, %3, %cst {dimension_numbers = #tpu.dot_dimension_numbers<[1], [0], [0], [1], [0, 0, 1, 1], [], []>} : vector<512x64xbf16>, vector<64x128xbf16>, vector<512x128xf32> -> vector<512x128xf32>
    %5 = arith.truncf %4 : vector<512x128xf32> to vector<512x128xbf16>
    %c0_5 = arith.constant 0 : index
    %c0_6 = arith.constant 0 : index
    %c0_7 = arith.constant 0 : index
    %6 = vector.load %arg5[%c0_5, %c0_6, %c0_7] : memref<1x512x128xbf16, #tpu.memory_space<vmem>>, vector<1x512x128xbf16>
    %7 = vector.shape_cast %6 : vector<1x512x128xbf16> to vector<512x128xbf16>
    %8 = vector.shape_cast %5 : vector<512x128xbf16> to vector<1x512x128xbf16>
    tpu.vector_store %arg5[%c0_5, %c0_6, %c0_7], %8 {strides = array<i32>} : memref<1x512x128xbf16, #tpu.memory_space<vmem>>, vector<1x512x128xbf16>,
    %cst_8 = arith.constant dense<0.000000e+00> : vector<128xf32>
    %9 = vector.multi_reduction <add>, %4, %cst_8 [0] : vector<512x128xf32> to vector<128xf32>
    %10 = vector.shape_cast %9 : vector<128xf32> to vector<1x128xf32>
    %11 = arith.mulf %4, %4 : vector<512x128xf32>
    %cst_9 = arith.constant dense<0.000000e+00> : vector<128xf32>
    %12 = vector.multi_reduction <add>, %11, %cst_9 [0] : vector<512x128xf32> to vector<128xf32>
    %13 = vector.shape_cast %12 : vector<128xf32> to vector<1x128xf32>
    %14 = tpu.concatenate %10, %13 in 0 : vector<1x128xf32>, vector<1x128xf32> -> vector<2x128xf32>
    %c0_10 = arith.constant 0 : index
    %c0_11 = arith.constant 0 : index
    %c0_12 = arith.constant 0 : index
    %c0_13 = arith.constant 0 : index
    %15 = vector.load %arg6[%c0_10, %c0_11, %c0_12, %c0_13] : memref<1x1x2x128xf32, #tpu.memory_space<vmem>>, vector<1x1x2x128xf32>
    %16 = vector.shape_cast %15 : vector<1x1x2x128xf32> to vector<2x128xf32>
    %17 = vector.shape_cast %14 : vector<2x128xf32> to vector<1x1x2x128xf32>
    tpu.vector_store %arg6[%c0_10, %c0_11, %c0_12, %c0_13], %17 {strides = array<i32>} : memref<1x1x2x128xf32, #tpu.memory_space<vmem>>, vector<1x1x2x128xf32>,
    return
  }
  func.func @transform_0(%arg0: i32, %arg1: i32, %arg2: i32) -> (i32, i32, i32) {
    %c0_i32 = arith.constant 0 : i32
    %c0_i32_0 = arith.constant 0 : i32
    return %arg0, %arg1, %c0_i32 : i32, i32, i32
  }
  func.func @transform_1(%arg0: i32, %arg1: i32, %arg2: i32) -> (i32, i32, i32) {
    %c0_i32 = arith.constant 0 : i32
    %c0_i32_0 = arith.constant 0 : i32
    return %arg0, %c0_i32, %arg2 : i32, i32, i32
  }
  func.func @transform_2(%arg0: i32, %arg1: i32, %arg2: i32) -> (i32, i32, i32) {
    %c0_i32 = arith.constant 0 : i32
    return %arg0, %arg1, %arg2 : i32, i32, i32
  }
  func.func @transform_3(%arg0: i32, %arg1: i32, %arg2: i32) -> (i32, i32, i32, i32) {
    %c0_i32 = arith.constant 0 : i32
    %c0_i32_0 = arith.constant 0 : i32
    return %arg0, %arg1, %c0_i32, %arg2 : i32, i32, i32, i32
  }
}

module attributes {stable_mosaic.version = 11 : i64} {
  func.func @_bn_relu_kernel(%arg0: i32, %arg1: i32, %arg2: i32, %arg3: memref<1x512x128xbf16, #tpu.memory_space<vmem>>, %arg4: memref<1x128xf32, #tpu.memory_space<vmem>>, %arg5: memref<1x128xf32, #tpu.memory_space<vmem>>, %arg6: memref<1x512x128xbf16, #tpu.memory_space<vmem>>) attributes {dimension_semantics = [#tpu.dimension_semantics<parallel>, #tpu.dimension_semantics<parallel>, #tpu.dimension_semantics<parallel>], iteration_bounds = array<i64: 4, 1, 1>, scalar_prefetch = 0 : i64, scratch_operands = 0 : i64, tpu.core_type = #tpu.core_type<tc>, window_params = [{transform_indices = @transform_0, window_bounds = array<i64: 1, 512, 128>}, {transform_indices = @transform_1, window_bounds = array<i64: 1, 128>}, {transform_indices = @transform_2, window_bounds = array<i64: 1, 128>}, {transform_indices = @transform_3, window_bounds = array<i64: 1, 512, 128>}]} {
    %c0 = arith.constant 0 : index
    %c0_0 = arith.constant 0 : index
    %c0_1 = arith.constant 0 : index
    %0 = vector.load %arg3[%c0, %c0_0, %c0_1] : memref<1x512x128xbf16, #tpu.memory_space<vmem>>, vector<1x512x128xbf16>
    %1 = vector.shape_cast %0 : vector<1x512x128xbf16> to vector<512x128xbf16>
    %2 = arith.extf %1 : vector<512x128xbf16> to vector<512x128xf32>
    %c0_2 = arith.constant 0 : index
    %c0_3 = arith.constant 0 : index
    %3 = vector.load %arg4[%c0_2, %c0_3] : memref<1x128xf32, #tpu.memory_space<vmem>>, vector<1x128xf32>
    %4 = vector.broadcast %3 : vector<1x128xf32> to vector<512x128xf32>
    %5 = arith.mulf %2, %4 : vector<512x128xf32>
    %c0_4 = arith.constant 0 : index
    %c0_5 = arith.constant 0 : index
    %6 = vector.load %arg5[%c0_4, %c0_5] : memref<1x128xf32, #tpu.memory_space<vmem>>, vector<1x128xf32>
    %7 = vector.broadcast %6 : vector<1x128xf32> to vector<512x128xf32>
    %8 = arith.addf %5, %7 : vector<512x128xf32>
    %cst = arith.constant 0.000000e+00 : f32
    %9 = vector.broadcast %cst : f32 to vector<512x128xf32>
    %10 = arith.maximumf %8, %9 : vector<512x128xf32>
    %11 = arith.truncf %10 : vector<512x128xf32> to vector<512x128xbf16>
    %c0_6 = arith.constant 0 : index
    %c0_7 = arith.constant 0 : index
    %c0_8 = arith.constant 0 : index
    %12 = vector.load %arg6[%c0_6, %c0_7, %c0_8] : memref<1x512x128xbf16, #tpu.memory_space<vmem>>, vector<1x512x128xbf16>
    %13 = vector.shape_cast %12 : vector<1x512x128xbf16> to vector<512x128xbf16>
    %14 = vector.shape_cast %11 : vector<512x128xbf16> to vector<1x512x128xbf16>
    tpu.vector_store %arg6[%c0_6, %c0_7, %c0_8], %14 {strides = array<i32>} : memref<1x512x128xbf16, #tpu.memory_space<vmem>>, vector<1x512x128xbf16>,
    return
  }
  func.func @transform_0(%arg0: i32, %arg1: i32, %arg2: i32) -> (i32, i32, i32) {
    %c0_i32 = arith.constant 0 : i32
    return %arg0, %arg1, %arg2 : i32, i32, i32
  }
  func.func @transform_1(%arg0: i32, %arg1: i32, %arg2: i32) -> (i32, i32) {
    %c0_i32 = arith.constant 0 : i32
    %c0_i32_0 = arith.constant 0 : i32
    return %c0_i32, %arg2 : i32, i32
  }
  func.func @transform_2(%arg0: i32, %arg1: i32, %arg2: i32) -> (i32, i32) {
    %c0_i32 = arith.constant 0 : i32
    %c0_i32_0 = arith.constant 0 : i32
    return %c0_i32, %arg2 : i32, i32
  }
  func.func @transform_3(%arg0: i32, %arg1: i32, %arg2: i32) -> (i32, i32, i32) {
    %c0_i32 = arith.constant 0 : i32
    return %arg0, %arg1, %arg2 : i32, i32, i32
  }
}

module attributes {stable_mosaic.version = 11 : i64} {
  func.func @_mm_tanh_kernel(%arg0: i32, %arg1: i32, %arg2: memref<1x2048x32xbf16, #tpu.memory_space<vmem>>, %arg3: memref<1x32x128xbf16, #tpu.memory_space<vmem>>, %arg4: memref<1x2048x128xbf16, #tpu.memory_space<vmem>>) attributes {dimension_semantics = [#tpu.dimension_semantics<parallel>, #tpu.dimension_semantics<parallel>], iteration_bounds = array<i64: 4, 1>, scalar_prefetch = 0 : i64, scratch_operands = 0 : i64, tpu.core_type = #tpu.core_type<tc>, window_params = [{transform_indices = @transform_0, window_bounds = array<i64: 1, 2048, 32>}, {transform_indices = @transform_1, window_bounds = array<i64: 1, 32, 128>}, {transform_indices = @transform_2, window_bounds = array<i64: 1, 2048, 128>}]} {
    %c0 = arith.constant 0 : index
    %c0_0 = arith.constant 0 : index
    %c0_1 = arith.constant 0 : index
    %0 = vector.load %arg2[%c0, %c0_0, %c0_1] : memref<1x2048x32xbf16, #tpu.memory_space<vmem>>, vector<1x2048x32xbf16>
    %1 = vector.shape_cast %0 : vector<1x2048x32xbf16> to vector<2048x32xbf16>
    %c0_2 = arith.constant 0 : index
    %c0_3 = arith.constant 0 : index
    %c0_4 = arith.constant 0 : index
    %2 = vector.load %arg3[%c0_2, %c0_3, %c0_4] : memref<1x32x128xbf16, #tpu.memory_space<vmem>>, vector<1x32x128xbf16>
    %3 = vector.shape_cast %2 : vector<1x32x128xbf16> to vector<32x128xbf16>
    %cst = arith.constant dense<0.000000e+00> : vector<2048x128xf32>
    %4 = tpu.matmul %1, %3, %cst {dimension_numbers = #tpu.dot_dimension_numbers<[1], [0], [0], [1], [0, 0, 1, 1], [], []>} : vector<2048x32xbf16>, vector<32x128xbf16>, vector<2048x128xf32> -> vector<2048x128xf32>
    %5 = math.tanh %4 : vector<2048x128xf32>
    %6 = arith.truncf %5 : vector<2048x128xf32> to vector<2048x128xbf16>
    %c0_5 = arith.constant 0 : index
    %c0_6 = arith.constant 0 : index
    %c0_7 = arith.constant 0 : index
    %7 = vector.load %arg4[%c0_5, %c0_6, %c0_7] : memref<1x2048x128xbf16, #tpu.memory_space<vmem>>, vector<1x2048x128xbf16>
    %8 = vector.shape_cast %7 : vector<1x2048x128xbf16> to vector<2048x128xbf16>
    %9 = vector.shape_cast %6 : vector<2048x128xbf16> to vector<1x2048x128xbf16>
    tpu.vector_store %arg4[%c0_5, %c0_6, %c0_7], %9 {strides = array<i32>} : memref<1x2048x128xbf16, #tpu.memory_space<vmem>>, vector<1x2048x128xbf16>,
    return
  }
  func.func @transform_0(%arg0: i32, %arg1: i32) -> (i32, i32, i32) {
    %c0_i32 = arith.constant 0 : i32
    %c0_i32_0 = arith.constant 0 : i32
    return %arg0, %arg1, %c0_i32 : i32, i32, i32
  }
  func.func @transform_1(%arg0: i32, %arg1: i32) -> (i32, i32, i32) {
    %c0_i32 = arith.constant 0 : i32
    %c0_i32_0 = arith.constant 0 : i32
    %c0_i32_1 = arith.constant 0 : i32
    return %arg0, %c0_i32, %c0_i32_0 : i32, i32, i32
  }
  func.func @transform_2(%arg0: i32, %arg1: i32) -> (i32, i32, i32) {
    %c0_i32 = arith.constant 0 : i32
    %c0_i32_0 = arith.constant 0 : i32
    return %arg0, %arg1, %c0_i32 : i32, i32, i32
  }
}

</mosaic_0001>

<bundles_post_ra>
// kernel: tile.18
= control target key start
LH: loop header
LB: loop body
LE: loop exit
PB: predicated region body
PF: predicated region fallthrough
CT: control target
= control target key end

     0   :  { %s28_s0 = inlined_call_operand.vmem [shape: f32[64], index: 0, kind: input, shape index: {}]   ;;  %s29_s1 = inlined_call_operand.vmem [shape: f32[16,64], index: 1, kind: output, shape index: {}]  }
   0x1   :  { %v4_v0 = vld [vmem:[%s28_s0] ss:$0 sm:$0xff] }
   0x2   :  { %5 = vst [vmem:[%s29_s1] sm:$0xff] %v4_v0  ;;  %8 = vst [vmem:[%s29_s1 + $0x8] sm:$0xff] %v4_v0 }

// kernel: squeeze.11
= control target key start
LH: loop header
LB: loop body
LE: loop exit
PB: predicated region body
PF: predicated region fallthrough
CT: control target
= control target key end

     0   :  { %vm130_vm0 = vcmask 523264   ;;  %vm185_vm1 = vcmask 1047556   ;;  %v305_v37 = vmov 0.0   ;;  %s390_s0 = inlined_call_operand.vmem [shape: bf16[1,2,1024], index: 0, kind: input, shape index: {}]   ;;  %s391_s1 = inlined_call_operand.vmem [shape: bf16[2,4,4,64], index: 1, kind: output, shape index: {}]  }
   0x1   :  { %v283_v0 = vld [vmem:[%s390_s0 + $0x7] sm:$0x1]  ;;  %v284_v1 = vld [vmem:[%s390_s0 + $0x6] sm:$0x1]  ;;  %v285_v2 = vld [vmem:[%s390_s0 + $0x5] sm:$0x1] }
   0x2   :  { %v17_v3 = vunpack.c.l.bf16 %v283_v0  ;;  %v33_v4 = vunpack.c.l.bf16 %v284_v1  ;;  %v49_v5 = vunpack.c.l.bf16 %v285_v2  ;;  %v286_v6 = vld [vmem:[%s390_s0 + $0x4] sm:$0x1]  ;;  %v287_v7 = vld [vmem:[%s390_s0 + $0x3] sm:$0x1]  ;;  %v288_v8 = vld [vmem:[%s390_s0 + $0x2] sm:$0x1] }
   0x3   :  { %v65_v9 = vunpack.c.l.bf16 %v286_v6  ;;  %v81_v10 = vunpack.c.l.bf16 %v287_v7  ;;  %v97_v11 = vunpack.c.l.bf16 %v288_v8  ;;  %v289_v12 = vld [vmem:[%s390_s0 + $0x1] sm:$0x1]  ;;  %v125_v13 = vld [vmem:[%s390_s0] sm:$0x1]  ;;  %s304_s0 = smov 64  }
   0x4   :  { %20 = vst [vmem:[#allocation1 + $0x38] sm:$0x3] %v17_v3  ;;  %36 = vst [vmem:[#allocation1 + $0x30] sm:$0x3] %v33_v4  ;;  %v112_v14 = vunpack.c.l.bf16 %v289_v12  ;;  %v126_v15 = vunpack.c.l.bf16 %v125_v13 }
   0x5   :  { %52 = vst [vmem:[#allocation1 + $0x28] sm:$0x3] %v49_v5  ;;  %68 = vst [vmem:[#allocation1 + $0x20] sm:$0x3] %v65_v9 }
   0x6   :  { %84 = vst [vmem:[#allocation1 + $0x18] sm:$0x3] %v81_v10  ;;  %100 = vst [vmem:[#allocation1 + $0x10] sm:$0x3] %v97_v11 }
   0x7   :  { %115 = vst [vmem:[#allocation1 + $0x8] sm:$0x3] %v112_v14  ;;  %128 = vst [vmem:[#allocation1] sm:$0x3] %v126_v15 }
   0xb   :  { %v170_v17 = vld [vmem:[#allocation1 + $0x30] sm:$0x3]   ;;  %v177_v18 = vld [vmem:[#allocation1 + $0x38] sm:$0x3]  }
   0xc   :  { %v163_v16 = vld [vmem:[#allocation1 + $0x28] sm:$0x3]   ;;  %v156_v21 = vld [vmem:[#allocation1 + $0x20] sm:$0x3]   ;;  %173 = vst.msk [vmem:[#allocation0 + $0x18] sm:$0x1] %vm130_vm0, %v170_v17  }
   0xd   :  { %v142_v19 = vld [vmem:[#allocation1 + $0x10] sm:$0x3]   ;;  %v149_v20 = vld [vmem:[#allocation1 + $0x18] sm:$0x3]   ;;  %166 = vst.msk [vmem:[#allocation0 + $0x12] sm:$0x1] %vm130_vm0, %v163_v16  }
   0xe   :  { %168 = vst.msk [vmem:[#allocation0 + $0x31] sm:$0x2] %vm130_vm0, %v163_v16   ;;  %175 = vst.msk [vmem:[#allocation0 + $0x37] sm:$0x2] %vm130_vm0, %v170_v17   ;;  %v129_v22 = vld [vmem:[#allocation1] sm:$0x3]  }
   0xf   :  { %180 = vst.msk [vmem:[#allocation0 + $0x1a] sm:$0x1] %vm130_vm0, %v177_v18   ;;  %182 = vst.msk [vmem:[#allocation0 + $0x39] sm:$0x2] %vm130_vm0, %v177_v18   ;;  %v135_v23 = vld [vmem:[#allocation1 + $0x8] sm:$0x3]  }
  0x10   :  { %145 = vst.msk [vmem:[#allocation0 + $0x8] sm:$0x1] %vm130_vm0, %v142_v19   ;;  %147 = vst.msk [vmem:[#allocation0 + $0x27] sm:$0x2] %vm130_vm0, %v142_v19  }
  0x11   :  { %152 = vst.msk [vmem:[#allocation0 + $0xa] sm:$0x1] %vm130_vm0, %v149_v20   ;;  %154 = vst.msk [vmem:[#allocation0 + $0x29] sm:$0x2] %vm130_vm0, %v149_v20  }
  0x12   :  { %159 = vst.msk [vmem:[#allocation0 + $0x10] sm:$0x1] %vm130_vm0, %v156_v21   ;;  %161 = vst.msk [vmem:[#allocation0 + $0x2f] sm:$0x2] %vm130_vm0, %v156_v21  }
  0x13   :  { %131 = vst.msk [vmem:[#allocation0] sm:$0x1] %vm130_vm0, %v129_v22   ;;  %133 = vst.msk [vmem:[#allocation0 + $0x1f] sm:$0x2] %vm130_vm0, %v129_v22  }
  0x14   :  { %138 = vst.msk [vmem:[#allocation0 + $0x2] sm:$0x1] %vm130_vm0, %v135_v23   ;;  %140 = vst.msk [vmem:[#allocation0 + $0x21] sm:$0x2] %vm130_vm0, %v135_v23  }
  0x15   :  { %v183_v24 = vld [vmem:[#allocation1] ss:$8 sm:$0xf]   ;;  %v199_v27 = vld [vmem:[#allocation1 + $0x1] ss:$8 sm:$0xf]  }
  0x16   :  { %v184_v25 = vld [vmem:[#allocation1] ss:$8 sm:$0xf0]   ;;  %v201_v28 = vld [vmem:[#allocation1 + $0x1] ss:$8 sm:$0xf0]  }
  0x17   :  { %v186_v26 = vsel %vm185_vm1, %v184_v25, %v183_v24  ;;  %v203_v29 = vsel %vm185_vm1, %v201_v28, %v199_v27 }
  0x18   :  { %v299_v30 = vpack.i.bf16 %v203_v29, %v186_v26 }
  0x1a   :  { %300 = vrot.lane.b32.xlu0 %v299_v30, %s304_s0 }
  0x8c   :  { %v301_v31 = vpop.permute.xlu0 %300 }
  0x8d   :  { %v303_v32 = vunpack.i.h.bf16 %v301_v31  ;;  %v302_v33 = vunpack.i.l.bf16 %v301_v31 }
  0x8f   :  { %208 = vst.msk [vmem:[#allocation0 + $0x21] ss:$2 sm:$0x3] %vm130_vm0, %v303_v32   ;;  %210 = vst.msk [vmem:[#allocation0 + $0x25] ss:$2 sm:$0xc] %vm130_vm0, %v303_v32  }
  0x90   :  { %212 = vst.msk [vmem:[#allocation0 + $0x29] ss:$2 sm:$0x30] %vm130_vm0, %v303_v32   ;;  %214 = vst.msk [vmem:[#allocation0 + $0x2d] ss:$2 sm:$0xc0] %vm130_vm0, %v303_v32  }
  0x91   :  { %191 = vst.msk [vmem:[#allocation0 + $0x1] ss:$2 sm:$0x3] %vm130_vm0, %v302_v33   ;;  %193 = vst.msk [vmem:[#allocation0 + $0x5] ss:$2 sm:$0xc] %vm130_vm0, %v302_v33  }
  0x92   :  { %195 = vst.msk [vmem:[#allocation0 + $0x9] ss:$2 sm:$0x30] %vm130_vm0, %v302_v33   ;;  %197 = vst.msk [vmem:[#allocation0 + $0xd] ss:$2 sm:$0xc0] %vm130_vm0, %v302_v33  }
  0x96   :  { %v244_v34 = vld [vmem:[#allocation0 + $0x20] sm:$0xf]  ;;  %v251_v35 = vld [vmem:[#allocation0 + $0x28] sm:$0xf] }
  0x97   :  { %v258_v36 = vld [vmem:[#allocation0 + $0x30] sm:$0xf]  ;;  %v245_v38 = vpack.c.bf16 %v305_v37, %v244_v34  ;;  %v252_v39 = vpack.c.bf16 %v305_v37, %v251_v35  ;;  %v265_v48 = vld [vmem:[#allocation0 + $0x38] sm:$0xf] }
  0x98   :  { %v259_v40 = vpack.c.bf16 %v305_v37, %v258_v36  ;;  %v219_v41 = vld [vmem:[#allocation0] sm:$0xf]  ;;  %v224_v42 = vld [vmem:[#allocation0 + $0x8] sm:$0xf]  ;;  %v266_v50 = vpack.c.bf16 %v305_v37, %v265_v48 }
  0x99   :  { %v230_v43 = vld [vmem:[#allocation0 + $0x10] sm:$0xf]  ;;  %v220_v44 = vpack.c.bf16 %v305_v37, %v219_v41  ;;  %v225_v45 = vpack.c.bf16 %v305_v37, %v224_v42  ;;  %v237_v47 = vld [vmem:[#allocation0 + $0x18] sm:$0xf]  ;;  %293 = vst [vmem:[%s391_s1 + $0x8] sm:$0x3] %v245_v38 }
  0x9a   :  { %v231_v46 = vpack.c.bf16 %v305_v37, %v230_v43  ;;  %294 = vst [vmem:[%s391_s1 + $0xa] sm:$0x3] %v252_v39  ;;  %295 = vst [vmem:[%s391_s1 + $0xc] sm:$0x3] %v259_v40  ;;  %v238_v49 = vpack.c.bf16 %v305_v37, %v237_v47 }
  0x9b   :  { %222 = vst [vmem:[%s391_s1] sm:$0x3] %v220_v44  ;;  %290 = vst [vmem:[%s391_s1 + $0x2] sm:$0x3] %v225_v45 }
  0x9c   :  { %291 = vst [vmem:[%s391_s1 + $0x4] sm:$0x3] %v231_v46  ;;  %292 = vst [vmem:[%s391_s1 + $0x6] sm:$0x3] %v238_v49 }
  0x9d   :  { %296 = vst [vmem:[%s391_s1 + $0xe] sm:$0x3] %v266_v50 }

// kernel: generator_forward.10
= control target key start
LH: loop header
LB: loop body
LE: loop exit
PB: predicated region body
PF: predicated region fallthrough
CT: control target
= control target key end

     0   :  { %s614_s12 = smov 0   ;;  %s616_s13 = smov 0   ;;  %s659_s0 = inlined_call_operand.vmem [shape: bf16[1,2,1024], index: 0, kind: input, shape index: {}]   ;;  %s660_s1 = inlined_call_operand.vmem [shape: f32[1,1024], index: 1, kind: input, shape index: {}]   ;;  %s661_s2 = inlined_call_operand.vmem [shape: f32[1,1024], index: 2, kind: input, shape index: {}]   ;;  %s662_s3 = inlined_call_operand.vmem [shape: bf16[1,2,1024], index: 3, kind: output, shape index: {}]  }
   0x1   :  { %s618_s14 = smov 0  }
   0x2 LB: > { %s25_s15 = sadd.s32 1, %s586_s13  ;;  %p532_p0 = scmp.ge.s32.totalorder %s590_s14, 1  ;;  %s590_s14 = sphi %s618_s14, %s13_s14   ;;  %s586_s13 = sphi %s616_s13, %s664_s13   ;;  %s582_s12 = sphi %s614_s12, %s663_s12  }
   0x3   : > { %p26_p1 = scmp.ge.s32.totalorder %s25_s15, 2  ;;  %p192_p2 = scmp.lt.s32.totalorder %s590_s14, 3 }
   0x5   : > { %s666_s15 = smov (%p26_p1, %s25_s15), 0  ;;  %p193_p3 = pnand %p532_p0, %p192_p2 }
   0x6   : > { %s533_s16 = sshll.u32 (!%p193_p3), %s582_s12, 2  ;;  %v278_v0 = vlaneseq (!%p193_p3)  ;;  %v592_v1 = vmov (!%p193_p3), 1983009808   ;;  %v593_v33 = vmov (!%p193_p3), 1966171168  }
   0x7   : > { %196 = sbr.rel (%p193_p3) target bundleno = 44 (0x2c), region = 32  ;;  %p243_p4 = scmp.lt.s32.totalorder (!%p193_p3), %s533_s16, 7  ;;  %v297_v2 = vunpack.c.l.s4 (!%p193_p3), %v592_v1  ;;  %v384_v34 = vunpack.c.l.s4 (!%p193_p3), %v593_v33 }
   0x8   : > { %v279_v3 = vshrl.u32 (!%p193_p3), %v278_v0, 7 }
   0x9   : > { %v298_v4 = vunpack.c.0.s8 (!%p193_p3), %v297_v2  ;;  %v385_v37 = vunpack.c.0.s8 (!%p193_p3), %v384_v34 }
   0xa   : > { %v280_v5 = vsub.s32 (!%p193_p3), 0, %v279_v3  ;;  %v284_v6 = vsub.s32 (!%p193_p3), 1, %v279_v3  ;;  %v288_v7 = vsub.s32 (!%p193_p3), 2, %v279_v3  ;;  %v292_v8 = vsub.s32 (!%p193_p3), 3, %v279_v3 }
   0xb   : > { %v301_v13 = vsub.s32 (!%p193_p3), %v298_v4, %v279_v3  ;;  %v388_v42 = vsub.s32 (!%p193_p3), %v385_v37, %v279_v3 }
   0xe   : > { %s668_s16 = smov (!%p243_p4, %s533_s16), 7 }
   0xf   : > { %s254_s19 = scalar_lea.vmem %s660_s1, %s668_s16  ;;  %s249_s22 = scalar_lea.vmem %s659_s0, %s668_s16 }
  0x10   : > { %s259_s25 = scalar_lea.vmem %s661_s2, %s668_s16  ;;  %v276_v9 = vld [vmem:[%s254_s19] sm:$0xf]  ;;  %s272_s28 = scalar_lea.vmem %s662_s3, %s668_s16 }
  0x11   : > { %v281_v10 = vrot.slane %v276_v9, %v280_v5  ;;  %v285_v11 = vrot.slane %v276_v9, %v284_v6  ;;  %v289_v12 = vrot.slane %v276_v9, %v288_v7  ;;  %v313_v14 = vld [vmem:[%s259_s25] sm:$0xf]  ;;  %v293_v15 = vrot.slane %v276_v9, %v292_v8 }
  0x12   : > { %v318_v16 = vrot.slane %v313_v14, %v280_v5  ;;  %v322_v17 = vrot.slane %v313_v14, %v284_v6  ;;  %v326_v18 = vrot.slane %v313_v14, %v288_v7  ;;  %v274_v19 = vld [vmem:[%s249_s22] sm:$0xf]  ;;  %v330_v21 = vrot.slane %v313_v14, %v292_v8 }
  0x13   : > { %v294_v20 = vcombine.low %v281_v10, %v285_v11  ;;  %v295_v22 = vcombine.low %v289_v12, %v293_v15  ;;  %v275_v26 = vunpack.c.l.bf16 %v274_v19 }
  0x14   : > { %v331_v23 = vcombine.low %v318_v16, %v322_v17  ;;  %v332_v25 = vcombine.low %v326_v18, %v330_v21 }
  0x15   : > { %v302_v24 = vrot.slane %v294_v20, %v301_v13  ;;  %v309_v27 = vrot.slane %v295_v22, %v301_v13 }
  0x16   : > { %v339_v28 = vrot.slane %v331_v23, %v301_v13  ;;  %v346_v29 = vrot.slane %v332_v25, %v301_v13 }
  0x17   : > { %v310_v30 = vcombine.low %v302_v24, %v309_v27 }
  0x18   : > { %v347_v31 = vcombine.low %v339_v28, %v346_v29 }
  0x19   : > { %v312_v32 = vmul.f32 %v310_v30, %v275_v26 }
  0x1b   : > { %v349_v35 = vadd.f32 %v347_v31, %v312_v32 }
  0x1d   : > { %v350_v36 = vmax.f32 %v349_v35, 0.0 }
  0x1f   : > { %v352_v38 = vcombine.high %v350_v36, %v350_v36  ;;  %v359_v39 = vrot.slane %v350_v36, %v301_v13 }
  0x21   : > { %v366_v40 = vrot.slane %v352_v38, %v301_v13  ;;  %v367_v41 = vcombine.high %v359_v39, %v359_v39 }
  0x23   : > { %v368_v43 = vcombine.high %v366_v40, %v366_v40  ;;  %v537_v44 = vpack.c.bf16 %v367_v41, %v359_v39 }
  0x25   : > { %v538_v45 = vpack.c.bf16 %v368_v43, %v366_v40  ;;  %v389_v46 = vrot.slane %v537_v44, %v388_v42 }
  0x27   : > { %v396_v47 = vrot.slane %v538_v45, %v388_v42 }
  0x29   : > { %v397_v48 = vcombine.low %v389_v46, %v396_v47 }
  0x2b   : > { %539 = vst.sshfl [vmem:[%s272_s28] sm:$0x55 pattern:$0x73625140] %v397_v48 }
  0x2c PF: > { %s13_s14 = sadd.s32 1, %s590_s14   ;;  %s663_s12 = smov %s586_s13 }
  0x2d   : > { %p10_p5 = scmp.ge.s32.totalorder %s13_s14, 4   ;;  %s664_s13 = smov %s666_s15 }
  0x2f   :  { %12 = sbr.rel (!%p10_p5) target bundleno = 2 (0x2), region = 68 }

// kernel: generator_forward.9
= control target key start
LH: loop header
LB: loop body
LE: loop exit
PB: predicated region body
PF: predicated region fallthrough
CT: control target
= control target key end

     0   :  { %9 = vsyncpa [#allocation3], 0  ;;  %s1109_s0 = inlined_call_operand.vmem [shape: bf16[1,2,32], index: 0, kind: input, shape index: {}]   ;;  %s1110_s1 = inlined_call_operand.hbm [shape: bf16[1,32,1024], index: 1, kind: input, shape index: {}]   ;;  %s1111_s2 = inlined_call_operand.vmem [shape: bf16[1,2,1024], index: 2, kind: output, shape index: {0}]   ;;  %s1112_s3 = inlined_call_operand.vmem [shape: f32[1,1,2,1024], index: 3, kind: output, shape index: {1}]  }
   0x1   :  { %11 = vsyncpa [#allocation3 + $0x1], 0  ;;  %s952_s12 = smov 0   ;;  %s954_s13 = smov 0  }
   0x2   :  { %s956_s14 = smov 0   ;;  %s958_s15 = smov 0  }
   0x3   :  { %s960_s16 = smov 0   ;;  %s962_s17 = smov 0  }
   0x4 LB: > { %s741_s18 = sadd.s32 4294967295, %s923_s17   ;;  %s29_s19 = sadd.s32 1, %s919_s16  ;;  %s923_s17 = sphi %s962_s17, %s17_s17   ;;  %s919_s16 = sphi %s960_s16, %s1122_s16   ;;  %s915_s15 = sphi %s958_s15, %s1121_s15   ;;  %s911_s14 = sphi %s956_s14, %s1120_s14   ;;  %s907_s13 = sphi %s954_s13, %s1119_s13   ;;  %s903_s12 = sphi %s952_s12, %s1118_s12  }
   0x5   : > { %p30_p0 = scmp.ge.s32.totalorder %s29_s19, 2  ;;  %s73_s20 = sadd.s32 1, %s911_s14 }
   0x6   : > { %p80_p1 = scmp.ne.s32.totalorder %s911_s14, %s907_s13  ;;  %p81_p2 = scmp.eq.s32.totalorder %s923_s17, 0 }
   0x7   : > { %s1124_s19 = smov (%p30_p0, %s29_s19), 0  ;;  %p86_p4 = scmp.ne.s32.totalorder %s907_s13, %s903_s12 }
   0x8   : > { %p988_p3 = por %p81_p2, %p80_p1  ;;  %s69_s22 = ssub.s32 %s919_s16, %s1124_s19 }
   0x9   : > { %p87_p5 = scmp.eq.s32.totalorder %s741_s18, 0  ;;  %p71_p6 = scmp.eq.s32.totalorder %s69_s22, 0 }
   0xa   : > { %p776_p8 = scmp.lt.s32.totalorder %s923_s17, 2  ;;  %s179_s25 = sand.u32 1, %s911_s14  }
   0xb   : > { %p995_p7 = por %p87_p5, %p86_p4  ;;  %s769_s26 = sshll.u32 %s919_s16, 8 }
   0xc   : > { %s1001_s24 = scalar_select %p71_p6, %s911_s14, %s73_s20  }
   0xd   : > { %s746_s27 = sshll.u32 %s179_s25, 6  ;;  %s1008_s30 = scalar_lea.hbm %s1110_s1, %s769_s26 }
   0xe   : > { %s183_s4 = scalar_lea.vmem [#allocation2], %s746_s27  ;;  %p1012_p9 = pnand %p776_p8, %p988_p3 }
   0xf   : > { %s192_s5 = sshll.u32 %s183_s4, 4  ;;  %s1019_s7 = scalar_lea.sflag [#allocation3], %s179_s25  ;;  %s1016_s5 = int_to_ptr.vmem [resolvable:$true] %s192_s5 }
  0x10   : > { %s843_s8 = scalar_lea.hbm %s1008_s30, 1024  ;;  %p845_p12 = pneg %p1012_p9 }
  0x11   : > { %p844_p11 = scmp.ne.s32.totalorder %s1008_s30, %s843_s8  ;;  %s848_s11 = scalar_lea.hbm %s1110_s1, 2048 }
  0x12   : > { %p849_p1 = scmp.lt.u32.totalorder %s1008_s30, %s1110_s1  ;;  %p850_p2 = scmp.lt.u32.totalorder %s848_s11, %s843_s8 }
  0x13   : > { %p846_p13 = pnand %p845_p12, %p844_p11  ;;  %p852_p4 = scmp.lt.u32.totalorder %s843_s8, %s1008_s30 }
  0x14   : > { %p851_p3 = por %p850_p2, %p849_p1 }
  0x15   : > { %p847_p0 = pneg %p846_p13 }
  0x16   : > { %p853_p5 = por %p852_p4, %p851_p3 }
  0x18   : > { %p854_p6 = pnand %p853_p5, %p847_p0 }
  0x1a   : > { %857 = shalt.err (!%p854_p6)
}
  0x1b   : > { %s858_s20 = scalar_lea.vmem %s1016_s5, 1024  ;;  %s925_s21 = smov [#allocation2]  }
  0x1c   : > { %p859_p8 = scmp.ne.s32.totalorder %s1016_s5, %s858_s20  ;;  %s863_s22 = sshll.u32 %s925_s21, 4  ;;  %s864_s22 = int_to_ptr.vmem [resolvable:$false] %s863_s22 }
  0x1d   : > { %s865_s25 = scalar_lea.vmem %s864_s22, 2048  ;;  %p866_p10 = scmp.lt.s32.totalorder %s1016_s5, %s864_s22 }
  0x1e   : > { %p861_p11 = pnand %p859_p8, %p845_p12  ;;  %p867_p1 = scmp.lt.s32.totalorder %s865_s25, %s858_s20 }
  0x20   : > { %p862_p13 = pneg %p861_p11  ;;  %p868_p2 = por %p867_p1, %p866_p10 }
  0x22   : > { %p869_p3 = pnand %p868_p2, %p862_p13 }
  0x24   : > { %872 = shalt.err (!%p869_p3)
}
  0x25   : > { %s926_s26 = smov 512   ;;  %s927_s27 = smov 256  }
  0x26   : > { %s928_s28 = smov 16   ;;  %p200_p12 = scmp.lt.s32.totalorder %s923_s17, 3 }
  0x27   : > { %775 = dma.hbm_to_vmem [thread:$0]  (!%p1012_p9), %s1008_s30, 1024, %s1016_s5, %s1019_s7, %s926_s26, %s927_s27, %s928_s28  }
  0x28   : > { %p1116_p0 = scmp.ge.s32.totalorder %s923_s17, 1 }
  0x2a   : > { %p201_p4 = pnand %p1116_p0, %p200_p12 }
  0x2b   : > { %s206_s29 = sand.u32 (!%p201_p4), 1, %s907_s13  }
  0x2c   : > { %204 = sbr.rel (%p201_p4) target bundleno = 305 (0x131), region = 28  ;;  %s750_s4 = sshll.u32 (!%p201_p4), %s206_s29, 6 }
  0x2d   : > { %s207_s8 = scalar_lea.sflag (!%p201_p4), [#allocation3], %s206_s29  ;;  %s210_s9 = scalar_lea.vmem (!%p201_p4), [#allocation2], %s750_s4 }
  0x33   : > { %898 = dma.done.wait (%p995_p7), %s207_s8, 1024  }
  0x34   : > { %900 = vsyncadd (%p995_p7), %s207_s8, 4294966272  ;;  %v929_v0 = vmov 0   ;;  %v831_v1 = vld [vmem:[%s210_s9 + $0x4] ss:$16 sps:$4 sm:$0xff]   ;;  %v833_v2 = vld [vmem:[%s210_s9 + $0xc] ss:$16 sps:$4 sm:$0xff]   ;;  %v442_v12 = vlaneseq }
  0x35   : > { %379 = vmatprep.mubr.bf16.mxu0 %v929_v0  ;;  %420 = vmatprep.mubr.bf16.mxu1 %v929_v0  ;;  %v835_v3 = vld [vmem:[%s210_s9] ss:$16 sps:$4 sm:$0xff]   ;;  %v836_v4 = vld [vmem:[%s210_s9 + $0x8] ss:$16 sps:$4 sm:$0xff]   ;;  %v837_v5 = vld [vmem:[%s210_s9 + $0x24] ss:$16 sps:$4 sm:$0xff]  }
  0x36   : > { %347 = vmatprep.subr.bf16.mxu0 %v831_v1  ;;  %388 = vmatprep.subr.bf16.mxu1 %v833_v2  ;;  %v839_v6 = vld [vmem:[%s210_s9 + $0x2c] ss:$16 sps:$4 sm:$0xff]   ;;  %v841_v7 = vld [vmem:[%s210_s9 + $0x20] ss:$16 sps:$4 sm:$0xff]   ;;  %v842_v8 = vld [vmem:[%s210_s9 + $0x28] ss:$16 sps:$4 sm:$0xff]  }
  0x37   : > { %348 = vmatpush1.bf16.msra.mxu0 %v835_v3  ;;  %389 = vmatpush1.bf16.msra.mxu1 %v836_v4  ;;  %v294_v9 = vld [vmem:[%s1109_s0] sm:$0x1]  ;;  %vm343_vm0 = vcmask 261120   ;;  %v930_v10 = vmov 1966171168   ;;  %v1058_v14 = vshrl.u32 %v442_v12, 7 }
  0x38   : > { %349 = vmatprep.subr.bf16.mxu0 %v837_v5  ;;  %390 = vmatprep.subr.bf16.mxu1 %v839_v6  ;;  %v440_v11 = vunpack.c.l.s4 %v930_v10  ;;  %s751_s5 = sshll.u32 %s915_s15, 2  ;;  %vm463_vm1 = vcmask 1041408   ;;  %vm524_vm2 = vcmask 1040384  }
  0x39   : > { %p1062_p7 = scmp.lt.s32.totalorder %s751_s5, 7 }
  0x3a   : > { %v441_v13 = vunpack.c.0.s8 %v440_v11  ;;  %v931_v11 = vmov 1983009808  }
  0x3b   : > { %350 = vmatpush1.bf16.msra.mxu0 %v841_v7  ;;  %391 = vmatpush1.bf16.msra.mxu1 %v842_v8  ;;  %s1126_s5 = smov (!%p1062_p7, %s751_s5), 7  ;;  %v536_v12 = vunpack.c.l.s4 %v931_v11 }
  0x3c   : > { %v444_v17 = vsub.s32 %v441_v13, %v1058_v14  ;;  %s277_s10 = scalar_lea.vmem %s1111_s2, %s1126_s5  ;;  %s753_s11 = sshll.u32 %s1126_s5, 1 }
  0x3d   : > { %s291_s20 = scalar_lea.vmem %s1112_s3, %s753_s11 }
  0x3e   : > { %762 = vmatmul.mubr.msk.bf16.vlgmr.msra.gmra.mrb[0].mxu0 %vm343_vm0, %v294_v9  ;;  %763 = vmatmul.mubr.msk.bf16.vlgmr.msra.gmra.mrb[0].mxu1 %vm343_vm0, %v294_v9 }
 0x111   : > { %v381_v15 = vpop.f32.mrb[0].mxu0  ;;  %v422_v16 = vpop.f32.mrb[0].mxu1 }
 0x112   : > { %v464_v18 = vsel %vm463_vm1, %v381_v15, 0.0  ;;  %v492_v19 = vmul.f32 %v381_v15, %v381_v15  ;;  %v478_v20 = vsel %vm463_vm1, %v422_v16, 0.0  ;;  %v494_v21 = vmul.f32 %v422_v16, %v422_v16  ;;  %v383_v22 = vpop.f32.mrb[1].mxu0  ;;  %v424_v23 = vpop.f32.mrb[1].mxu1 }
 0x113   : > { %v465_v24 = vrot.slane %v464_v18, 4  ;;  %v479_v25 = vrot.slane %v478_v20, 4  ;;  %v764_v26 = vpack.c.bf16 %v383_v22, %v381_v15  ;;  %v471_v27 = vsel %vm463_vm1, %v383_v22, 0.0  ;;  %v385_v28 = vpop.f32.mrb[2].mxu0  ;;  %v426_v29 = vpop.f32.mrb[2].mxu1 }
 0x114   : > { %v496_v30 = vsel %vm463_vm1, %v492_v19, 0.0  ;;  %v510_v31 = vsel %vm463_vm1, %v494_v21, 0.0  ;;  %v472_v32 = vrot.slane %v471_v27, 4  ;;  %v493_v33 = vmul.f32 %v383_v22, %v383_v22  ;;  %v386_v34 = vpop.f32.mrb[3].mxu0  ;;  %v427_v35 = vpop.f32.mrb[3].mxu1 }
 0x115   : > { %v466_v36 = vadd.f32 %v465_v24, %v464_v18  ;;  %v497_v37 = vrot.slane %v496_v30, 4  ;;  %v511_v38 = vrot.slane %v510_v31, 4  ;;  %v445_v39 = vrot.slane %v764_v26, %v444_v17 }
 0x116   : > { %v473_v40 = vadd.f32 %v472_v32, %v471_v27  ;;  %v503_v41 = vsel %vm463_vm1, %v493_v33, 0.0  ;;  %v765_v42 = vpack.c.bf16 %v424_v23, %v422_v16  ;;  %v480_v45 = vadd.f32 %v479_v25, %v478_v20 }
 0x117   : > { %v467_v43 = vrot.slane %v466_v36, 2  ;;  %v498_v44 = vadd.f32 %v497_v37, %v496_v30  ;;  %v512_v46 = vadd.f32 %v511_v38, %v510_v31  ;;  %v504_v48 = vrot.slane %v503_v41, 4 }
 0x118   : > { %v474_v47 = vrot.slane %v473_v40, 2  ;;  %v452_v49 = vrot.slane %v765_v42, %v444_v17  ;;  %v485_v50 = vsel %vm463_vm1, %v424_v23, 0.0  ;;  %v481_v59 = vrot.slane %v480_v45, 2 }
 0x119   : > { %v468_v51 = vadd.f32 %v467_v43, %v466_v36  ;;  %v499_v52 = vrot.slane %v498_v44, 2  ;;  %v513_v53 = vrot.slane %v512_v46, 2  ;;  %v505_v55 = vadd.f32 %v504_v48, %v503_v41 }
 0x11a   : > { %v475_v54 = vadd.f32 %v474_v47, %v473_v40  ;;  %v453_v56 = vcombine.low %v445_v39, %v452_v49  ;;  %v486_v57 = vrot.slane %v485_v50, 4  ;;  %v495_v63 = vmul.f32 %v424_v23, %v424_v23 }
 0x11b   : > { %v500_v58 = vadd.f32 %v499_v52, %v498_v44  ;;  %v469_v60 = vrot.slane %v468_v51, 1  ;;  %v506_v61 = vrot.slane %v505_v55, 2  ;;  %v514_v1 = vadd.f32 %v513_v53, %v512_v46 }
 0x11c   : > { %766 = vst.sshfl [vmem:[%s277_s10] sm:$0x55 pattern:$0x73625140] %v453_v56  ;;  %v487_v62 = vadd.f32 %v486_v57, %v485_v50  ;;  %v476_v2 = vrot.slane %v475_v54, 1  ;;  %v517_v5 = vsel %vm463_vm1, %v495_v63, 0.0  ;;  %v482_v7 = vadd.f32 %v481_v59, %v480_v45 }
 0x11d   : > { %v501_v0 = vrot.slane %v500_v58, 1  ;;  %v507_v3 = vadd.f32 %v506_v61, %v505_v55  ;;  %v518_v8 = vrot.slane %v517_v5, 4  ;;  %v470_v9 = vadd.f32 %v469_v60, %v468_v51 }
 0x11e   : > { %v488_v4 = vrot.slane %v487_v62, 2  ;;  %v515_v13 = vrot.slane %v514_v1, 1  ;;  %v477_v18 = vadd.f32 %v476_v2, %v475_v54  ;;  %v483_v20 = vrot.slane %v482_v7, 1 }
 0x11f   : > { %v502_v6 = vadd.f32 %v501_v0, %v500_v58  ;;  %v508_v10 = vrot.slane %v507_v3, 1  ;;  %v519_v16 = vadd.f32 %v518_v8, %v517_v5  ;;  %v537_v23 = vunpack.c.0.s8 %v536_v12 }
 0x120   : > { %v489_v15 = vadd.f32 %v488_v4, %v487_v62  ;;  %v516_v24 = vadd.f32 %v515_v13, %v514_v1  ;;  %v484_v28 = vadd.f32 %v483_v20, %v482_v7 }
 0x121   : > { %v525_v17 = vsel %vm524_vm2, %v470_v9, %v502_v6  ;;  %v509_v19 = vadd.f32 %v508_v10, %v507_v3  ;;  %v520_v21 = vrot.slane %v519_v16, 2  ;;  %v540_v30 = vsub.s32 %v537_v23, %v1058_v14 }
 0x122   : > { %v490_v26 = vrot.slane %v489_v15, 1  ;;  %v527_v31 = vsel %vm524_vm2, %v484_v28, %v516_v24 }
 0x123   : > { %v526_v22 = vsel %vm524_vm2, %v477_v18, %v509_v19  ;;  %v521_v27 = vadd.f32 %v520_v21, %v519_v16 }
 0x124   : > { %v533_v25 = vcombine.low %v525_v17, %v526_v22  ;;  %v491_v32 = vadd.f32 %v490_v26, %v489_v15 }
 0x125   : > { %v522_v29 = vrot.slane %v521_v27, 1 }
 0x126   : > { %v541_v35 = vrot.slane %v533_v25, %v540_v30 }
 0x127   : > { %v523_v33 = vadd.f32 %v522_v29, %v521_v27 }
 0x129   : > { %v528_v34 = vsel %vm524_vm2, %v491_v32, %v523_v33 }
 0x12a   : > { %v534_v36 = vcombine.low %v527_v31, %v528_v34 }
 0x12c   : > { %v548_v37 = vrot.slane %v534_v36, %v540_v30 }
 0x12e   : > { %v549_v38 = vcombine.low %v541_v35, %v548_v37 }
 0x130   : > { %551 = vst [vmem:[%s291_s20] sm:$0xff] %v549_v38 }
 0x131 PF: > { %s17_s17 = sadd.s32 1, %s923_s17   ;;  %s1118_s12 = smov %s907_s13 }
 0x132   : > { %p14_p9 = scmp.ge.s32.totalorder %s17_s17, 4   ;;  %s1119_s13 = smov %s911_s14 }
 0x133   : > { %s1120_s14 = smov %s1001_s24  ;;  %s1121_s15 = smov %s919_s16 }
 0x134   : > { %s1122_s16 = smov %s1124_s19  ;;  %16 = sbr.rel (!%p14_p9) target bundleno = 4 (0x4), region = 83 }
 0x13b   :  { %621 = vsyncpa [#allocation3], 1 }
 0x13c   :  { %623 = vsyncpa [#allocation3 + $0x1], 1 }

// kernel: generator_forward.11
= control target key start
LH: loop header
LB: loop body
LE: loop exit
PB: predicated region body
PF: predicated region fallthrough
CT: control target
= control target key end

     0   :  { %9 = vsyncpa [#allocation3], 0  ;;  %s1163_s0 = inlined_call_operand.vmem [shape: bf16[4,32,256], index: 0, kind: input, shape index: {}]   ;;  %s1164_s1 = inlined_call_operand.hbm [shape: bf16[4,256,128], index: 1, kind: input, shape index: {}]   ;;  %s1165_s2 = inlined_call_operand.vmem [shape: bf16[4,32,128], index: 2, kind: output, shape index: {0}]   ;;  %s1166_s3 = inlined_call_operand.vmem [shape: f32[4,1,2,128], index: 3, kind: output, shape index: {1}]  }
   0x1   :  { %11 = vsyncpa [#allocation3 + $0x1], 0  ;;  %s1010_s12 = smov 0   ;;  %s1012_s13 = smov 0  }
   0x2   :  { %s1014_s14 = smov 0   ;;  %s1016_s15 = smov 0  }
   0x3   :  { %s1018_s16 = smov 0   ;;  %s1020_s17 = smov 0  }
   0x4 LB: > { %s724_s18 = sadd.s32 4294967295, %s985_s17   ;;  %s36_s19 = sadd.s32 1, %s981_s16  ;;  %s985_s17 = sphi %s1020_s17, %s17_s17   ;;  %s981_s16 = sphi %s1018_s16, %s1174_s16   ;;  %s977_s15 = sphi %s1016_s15, %s1173_s15   ;;  %s973_s14 = sphi %s1014_s14, %s1172_s14   ;;  %s969_s13 = sphi %s1012_s13, %s1171_s13   ;;  %s965_s12 = sphi %s1010_s12, %s1170_s12  }
   0x5   : > { %p38_p0 = scmp.ge.s32.totalorder %s36_s19, 4  ;;  %s73_s20 = sadd.s32 1, %s973_s14 }
   0x6   : > { %p80_p1 = scmp.ne.s32.totalorder %s973_s14, %s969_s13  ;;  %p81_p2 = scmp.eq.s32.totalorder %s985_s17, 0 }
   0x7   : > { %s1176_s19 = smov (%p38_p0, %s36_s19), 0  ;;  %p86_p4 = scmp.ne.s32.totalorder %s969_s13, %s965_s12 }
   0x8   : > { %p1046_p3 = por %p81_p2, %p80_p1  ;;  %s68_s22 = ssub.s32 %s981_s16, %s1176_s19 }
   0x9   : > { %p87_p5 = scmp.eq.s32.totalorder %s724_s18, 0  ;;  %p71_p6 = scmp.eq.s32.totalorder %s68_s22, 0 }
   0xa   : > { %p832_p8 = scmp.lt.s32.totalorder %s985_s17, 4  ;;  %s184_s25 = sand.u32 1, %s973_s14  }
   0xb   : > { %p1053_p7 = por %p87_p5, %p86_p4  ;;  %s764_s26 = sshll.u32 %s981_s16, 11 }
   0xc   : > { %s1059_s24 = scalar_select %p71_p6, %s973_s14, %s73_s20  }
   0xd   : > { %s728_s27 = sshll.u32 %s184_s25, 7  ;;  %s1066_s30 = scalar_lea.hbm %s1164_s1, %s764_s26 }
   0xe   : > { %s188_s4 = scalar_lea.vmem [#allocation2], %s728_s27  ;;  %p1070_p9 = pnand %p832_p8, %p1046_p3 }
   0xf   : > { %s196_s5 = sshll.u32 %s188_s4, 4  ;;  %s1076_s7 = scalar_lea.sflag [#allocation3], %s184_s25  ;;  %s1074_s5 = int_to_ptr.vmem [resolvable:$true] %s196_s5 }
  0x10   : > { %s905_s8 = scalar_lea.hbm %s1066_s30, 2048  ;;  %p907_p11 = pneg %p1070_p9 }
  0x11   : > { %p906_p10 = scmp.ne.s32.totalorder %s1066_s30, %s905_s8  ;;  %s910_s11 = scalar_lea.hbm %s1164_s1, 8192 }
  0x12   : > { %p911_p0 = scmp.lt.u32.totalorder %s1066_s30, %s1164_s1  ;;  %p912_p1 = scmp.lt.u32.totalorder %s910_s11, %s905_s8 }
  0x13   : > { %p908_p12 = pnand %p907_p11, %p906_p10  ;;  %p914_p3 = scmp.lt.u32.totalorder %s905_s8, %s1066_s30 }
  0x14   : > { %p913_p2 = por %p912_p1, %p911_p0 }
  0x15   : > { %p909_p13 = pneg %p908_p12 }
  0x16   : > { %p915_p4 = por %p914_p3, %p913_p2 }
  0x18   : > { %p916_p5 = pnand %p915_p4, %p909_p13 }
  0x1a   : > { %919 = shalt.err (!%p916_p5)
}
  0x1b   : > { %s920_s20 = scalar_lea.vmem %s1074_s5, 2048  ;;  %s987_s21 = smov [#allocation2]  }
  0x1c   : > { %p921_p6 = scmp.ne.s32.totalorder %s1074_s5, %s920_s20  ;;  %s925_s22 = sshll.u32 %s987_s21, 4  ;;  %s926_s22 = int_to_ptr.vmem [resolvable:$false] %s925_s22 }
  0x1d   : > { %s927_s25 = scalar_lea.vmem %s926_s22, 4096  ;;  %p928_p12 = scmp.lt.s32.totalorder %s1074_s5, %s926_s22 }
  0x1e   : > { %p923_p8 = pnand %p921_p6, %p907_p11  ;;  %p929_p0 = scmp.lt.s32.totalorder %s927_s25, %s920_s20 }
  0x20   : > { %p924_p10 = pneg %p923_p8  ;;  %p930_p1 = por %p929_p0, %p928_p12 }
  0x22   : > { %p931_p2 = pnand %p930_p1, %p924_p10 }
  0x24   : > { %934 = shalt.err (!%p931_p2)
}
  0x25   : > { %s988_s26 = smov 64   ;;  %s989_s27 = smov 4  }
  0x26   : > { %831 = dma.hbm_to_vmem [thread:$0]  (!%p1070_p9), %s1066_s30, 2048, %s1074_s5, %s1076_s7, %s988_s26, %s988_s26, %s989_s27  }
  0x27   : > { %p731_p11 = scmp.ge.s32.totalorder %s985_s17, 1  ;;  %p204_p13 = scmp.lt.s32.totalorder %s985_s17, 5 }
  0x29   : > { %p205_p3 = pnand %p731_p11, %p204_p13 }
  0x2a   : > { %s210_s28 = sand.u32 (!%p205_p3), 1, %s969_s13  }
  0x2b   : > { %208 = sbr.rel (%p205_p3) target bundleno = 323 (0x143), region = 28  ;;  %s732_s29 = sshll.u32 (!%p205_p3), %s210_s28, 7 }
  0x2c   : > { %s211_s4 = scalar_lea.sflag (!%p205_p3), [#allocation3], %s210_s28  ;;  %s1107_s8 = scalar_lea.vmem (!%p205_p3), [#allocation2], %s732_s29 }
  0x32   : > { %960 = dma.done.wait (%p1053_p7), %s211_s4, 2048  }
  0x33   : > { %962 = vsyncadd (%p1053_p7), %s211_s4, 4294965248  ;;  %v883_v0 = vld [vmem:[%s1107_s8 + $0x40] sm:$0xff]   ;;  %v885_v2 = vld [vmem:[%s1107_s8 + $0x48] sm:$0xff]   ;;  %p265_p9 = scmp.lt.s32.totalorder %s977_s15, 3  ;;  %vm542_vm0 = vcmask 1040384  }
  0x34   : > { %v884_v1 = vld [vmem:[%s1107_s8] sm:$0xff]   ;;  %782 = vmatprep.subr.bf16.mxu0 %v883_v0  ;;  %810 = vmatprep.subr.bf16.mxu1 %v883_v0  ;;  %v886_v3 = vld [vmem:[%s1107_s8 + $0x8] sm:$0xff]   ;;  %v887_v4 = vld [vmem:[%s1107_s8 + $0x50] sm:$0xff]  }
  0x35   : > { %783 = vmatpush3.bf16.msra.mxu0 %v884_v1  ;;  %818 = vmatpush3.bf16.msra.mxu1 %v884_v1  ;;  %v888_v5 = vld [vmem:[%s1107_s8 + $0x10] sm:$0xff]   ;;  %s1178_s15 = smov (!%p265_p9, %s977_s15), 3  ;;  %v889_v6 = vld [vmem:[%s1107_s8 + $0x58] sm:$0xff]   ;;  %v891_v8 = vld [vmem:[%s1107_s8 + $0x60] sm:$0xff]  }
  0x36   : > { %784 = vmatprep.subr.bf16.mxu0 %v885_v2  ;;  %811 = vmatprep.subr.bf16.mxu1 %v885_v2  ;;  %v890_v7 = vld [vmem:[%s1107_s8 + $0x18] sm:$0xff]   ;;  %s765_s23 = sshll.u32 %s1178_s15, 5  ;;  %v892_v9 = vld [vmem:[%s1107_s8 + $0x20] sm:$0xff]   ;;  %v893_v10 = vld [vmem:[%s1107_s8 + $0x68] sm:$0xff]   ;;  %s766_s7 = sshll.u32 %s1178_s15, 4 }
  0x37   : > { %s273_s6 = scalar_lea.vmem %s1163_s0, %s765_s23  ;;  %v894_v13 = vld [vmem:[%s1107_s8 + $0x28] sm:$0xff]   ;;  %v895_v14 = vld [vmem:[%s1107_s8 + $0x70] sm:$0xff]   ;;  %v897_v16 = vld [vmem:[%s1107_s8 + $0x78] sm:$0xff]   ;;  %s286_s11 = scalar_lea.vmem %s1165_s2, %s766_s7 }
  0x38   : > { %v901_v11 = vld [vmem:[%s273_s6 + $0x4] ss:$8 sps:$4 sm:$0xff]   ;;  %v904_v12 = vld [vmem:[%s273_s6 + $0x14] ss:$8 sps:$4 sm:$0xff]   ;;  %v899_v18 = vld [vmem:[%s273_s6] ss:$8 sps:$4 sm:$0xff]  }
  0x39   : > { %785 = vmatpush3.bf16.msra.mxu0 %v886_v3  ;;  %819 = vmatpush3.bf16.msra.mxu1 %v886_v3  ;;  %v896_v15 = vld [vmem:[%s1107_s8 + $0x30] sm:$0xff]   ;;  %v898_v17 = vld [vmem:[%s1107_s8 + $0x38] sm:$0xff]   ;;  %s737_s12 = sshll.u32 %s1178_s15, 1 }
  0x3a   : > { %786 = vmatprep.subr.bf16.mxu0 %v887_v4  ;;  %812 = vmatprep.subr.bf16.mxu1 %v887_v4  ;;  %v902_v19 = vld [vmem:[%s273_s6 + $0x10] ss:$8 sps:$4 sm:$0xff]   ;;  %s297_s21 = scalar_lea.vmem %s1166_s3, %s737_s12 }
  0x3b   : > { %483 = vmatprep.mubr.bf16.mxu0 %v901_v11  ;;  %491 = vmatprep.mubr.bf16.mxu1 %v904_v12 }
  0x3d   : > { %787 = vmatpush3.bf16.msra.mxu0 %v888_v5  ;;  %820 = vmatpush3.bf16.msra.mxu1 %v888_v5 }
  0x3e   : > { %788 = vmatprep.subr.bf16.mxu0 %v889_v6  ;;  %813 = vmatprep.subr.bf16.mxu1 %v889_v6 }
  0x41   : > { %789 = vmatpush3.bf16.msra.mxu0 %v890_v7  ;;  %821 = vmatpush3.bf16.msra.mxu1 %v890_v7 }
  0x42   : > { %790 = vmatprep.subr.bf16.mxu0 %v891_v8  ;;  %814 = vmatprep.subr.bf16.mxu1 %v891_v8 }
  0x45   : > { %791 = vmatpush3.bf16.msra.mxu0 %v892_v9  ;;  %822 = vmatpush3.bf16.msra.mxu1 %v892_v9 }
  0x46   : > { %792 = vmatprep.subr.bf16.mxu0 %v893_v10  ;;  %815 = vmatprep.subr.bf16.mxu1 %v893_v10 }
  0x49   : > { %793 = vmatpush3.bf16.msra.mxu0 %v894_v13  ;;  %823 = vmatpush3.bf16.msra.mxu1 %v894_v13 }
  0x4a   : > { %794 = vmatprep.subr.bf16.mxu0 %v895_v14  ;;  %816 = vmatprep.subr.bf16.mxu1 %v895_v14 }
  0x4d   : > { %795 = vmatpush3.bf16.msra.mxu0 %v896_v15  ;;  %824 = vmatpush3.bf16.msra.mxu1 %v896_v15 }
  0x4e   : > { %796 = vmatprep.subr.bf16.mxu0 %v897_v16  ;;  %817 = vmatprep.subr.bf16.mxu1 %v897_v16 }
  0x51   : > { %797 = vmatpush3.bf16.msra.mxu0 %v898_v17  ;;  %825 = vmatpush3.bf16.msra.mxu1 %v898_v17 }
  0x54   : > { %484 = vmatmul.mubr.bf16.vlgmr.msra.gmra.mrb[0].mxu0 %v899_v18  ;;  %492 = vmatmul.mubr.bf16.vlgmr.msra.gmra.mrb[0].mxu1 %v902_v19 }
 0x127   : > { %v798_v20 = vpop.f32.mrb[0].mxu0  ;;  %v804_v21 = vpop.f32.mrb[0].mxu1 }
 0x128   : > { %v799_v22 = vpop.f32.mrb[1].mxu0  ;;  %v805_v23 = vpop.f32.mrb[1].mxu1 }
 0x129   : > { %v800_v24 = vadd.f32 %v799_v22, %v798_v20  ;;  %v801_v25 = vpop.f32.mrb[2].mxu0  ;;  %v806_v26 = vadd.f32 %v805_v23, %v804_v21  ;;  %v807_v27 = vpop.f32.mrb[2].mxu1 }
 0x12a   : > { %v802_v28 = vpop.f32.mrb[3].mxu0  ;;  %v808_v29 = vpop.f32.mrb[3].mxu1 }
 0x12b   : > { %v803_v30 = vadd.f32 %v802_v28, %v801_v25  ;;  %v809_v31 = vadd.f32 %v808_v29, %v807_v27  ;;  %v529_v32 = vmul.f32 %v800_v24, %v800_v24  ;;  %v531_v33 = vmul.f32 %v806_v26, %v806_v26 }
 0x12d   : > { %v774_v34 = vpack.c.bf16 %v803_v30, %v800_v24  ;;  %v520_v35 = vadd.f32 %v803_v30, %v800_v24  ;;  %v530_v36 = vmul.f32 %v803_v30, %v803_v30  ;;  %v779_v37 = vpack.c.bf16 %v809_v31, %v806_v26 }
 0x12e   : > { %v532_v41 = vmul.f32 %v809_v31, %v809_v31 }
 0x12f   : > { %775 = vst [vmem:[%s286_s11] sm:$0xff] %v774_v34   ;;  %v533_v38 = vadd.f32 %v530_v36, %v529_v32  ;;  %781 = vst [vmem:[%s286_s11 + $0x8] sm:$0xff] %v779_v37   ;;  %v521_v39 = vadd.f32 %v806_v26, %v520_v35 }
 0x131   : > { %v522_v40 = vadd.f32 %v809_v31, %v521_v39  ;;  %v534_v42 = vadd.f32 %v533_v38, %v531_v33 }
 0x133   : > { %v523_v43 = vrot.slane %v522_v40, 4  ;;  %v535_v44 = vadd.f32 %v534_v42, %v532_v41 }
 0x135   : > { %v524_v45 = vadd.f32 %v523_v43, %v522_v40  ;;  %v536_v46 = vrot.slane %v535_v44, 4 }
 0x137   : > { %v525_v47 = vrot.slane %v524_v45, 2  ;;  %v537_v48 = vadd.f32 %v536_v46, %v535_v44 }
 0x139   : > { %v526_v49 = vadd.f32 %v525_v47, %v524_v45  ;;  %v538_v50 = vrot.slane %v537_v48, 2 }
 0x13b   : > { %v527_v51 = vrot.slane %v526_v49, 1  ;;  %v539_v52 = vadd.f32 %v538_v50, %v537_v48 }
 0x13d   : > { %v540_v53 = vrot.slane %v539_v52, 1  ;;  %v528_v54 = vadd.f32 %v527_v51, %v526_v49 }
 0x13f   : > { %v541_v55 = vadd.f32 %v540_v53, %v539_v52 }
 0x141   : > { %v543_v56 = vsel %vm542_vm0, %v528_v54, %v541_v55 }
 0x142   : > { %544 = vst [vmem:[%s297_s21] sm:$0x3] %v543_v56 }
 0x143 PF: > { %s17_s17 = sadd.s32 1, %s985_s17   ;;  %s1170_s12 = smov %s969_s13 }
 0x144   : > { %p14_p7 = scmp.ge.s32.totalorder %s17_s17, 6   ;;  %s1171_s13 = smov %s973_s14 }
 0x145   : > { %s1172_s14 = smov %s1059_s24  ;;  %s1173_s15 = smov %s981_s16 }
 0x146   : > { %s1174_s16 = smov %s1176_s19  ;;  %16 = sbr.rel (!%p14_p7) target bundleno = 4 (0x4), region = 83 }
 0x14d   :  { %607 = vsyncpa [#allocation3], 1 }
 0x14e   :  { %609 = vsyncpa [#allocation3 + $0x1], 1 }

// kernel: generator_forward.12
= control target key start
LH: loop header
LB: loop body
LE: loop exit
PB: predicated region body
PF: predicated region fallthrough
CT: control target
= control target key end

     0   :  { %s558_s12 = smov 0   ;;  %s560_s13 = smov 0   ;;  %s597_s0 = inlined_call_operand.vmem [shape: bf16[4,32,128], index: 0, kind: input, shape index: {}]   ;;  %s598_s1 = inlined_call_operand.vmem [shape: f32[1,128], index: 1, kind: input, shape index: {}]   ;;  %s599_s2 = inlined_call_operand.vmem [shape: f32[1,128], index: 2, kind: input, shape index: {}]   ;;  %s600_s3 = inlined_call_operand.vmem [shape: bf16[4,32,128], index: 3, kind: output, shape index: {}]  }
   0x1   :  { %s562_s14 = smov 0  }
   0x2 LB: > { %s32_s15 = sadd.s32 1, %s532_s13  ;;  %p451_p0 = scmp.ge.s32.totalorder %s536_s14, 1  ;;  %s536_s14 = sphi %s562_s14, %s13_s14   ;;  %s532_s13 = sphi %s560_s13, %s602_s13   ;;  %s528_s12 = sphi %s558_s12, %s601_s12  }
   0x3   : > { %p34_p1 = scmp.ge.s32.totalorder %s32_s15, 4  ;;  %p188_p2 = scmp.lt.s32.totalorder %s536_s14, 5 }
   0x5   : > { %s604_s15 = smov (%p34_p1, %s32_s15), 0  ;;  %p189_p3 = pnand %p451_p0, %p188_p2 }
   0x6   : > { %p233_p4 = scmp.lt.s32.totalorder (!%p189_p3), %s528_s12, 3  ;;  %v456_v2 = vld [vmem:[%s598_s1] ss:$0 sm:$0xff] (!%p189_p3) }
   0x7   : > { %192 = sbr.rel (%p189_p3) target bundleno = 29 (0x1d), region = 32  ;;  %v457_v7 = vld [vmem:[%s599_s2] ss:$0 sm:$0xff] (!%p189_p3) }
   0xe   : > { %s606_s12 = smov (!%p233_p4, %s528_s12), 3 }
   0xf   : > { %s464_s16 = sshll.u32 %s606_s12, 4 }
  0x10   : > { %s243_s19 = scalar_lea.vmem %s597_s0, %s464_s16  ;;  %s262_s26 = scalar_lea.vmem %s600_s3, %s464_s16 }
  0x11   : > { %v471_v0 = vld [vmem:[%s243_s19] sm:$0xff]   ;;  %v488_v1 = vld [vmem:[%s243_s19 + $0x8] sm:$0xff]  }
  0x12   : > { %v472_v3 = vunpack.c.l.bf16 %v471_v0  ;;  %v473_v4 = vunpack.c.h.bf16 %v471_v0  ;;  %v476_v5 = vunpack.c.l.bf16 %v488_v1  ;;  %v477_v6 = vunpack.c.h.bf16 %v488_v1 }
  0x14   : > { %v279_v8 = vmul.f32 %v472_v3, %v456_v2  ;;  %v280_v9 = vmul.f32 %v473_v4, %v456_v2  ;;  %v281_v10 = vmul.f32 %v476_v5, %v456_v2  ;;  %v282_v11 = vmul.f32 %v477_v6, %v456_v2 }
  0x16   : > { %v290_v12 = vadd.f32 %v457_v7, %v279_v8  ;;  %v291_v13 = vadd.f32 %v457_v7, %v280_v9  ;;  %v292_v14 = vadd.f32 %v457_v7, %v281_v10  ;;  %v293_v15 = vadd.f32 %v457_v7, %v282_v11 }
  0x18   : > { %v294_v16 = vmax.f32 %v290_v12, 0.0  ;;  %v295_v17 = vmax.f32 %v291_v13, 0.0  ;;  %v296_v18 = vmax.f32 %v292_v14, 0.0  ;;  %v297_v19 = vmax.f32 %v293_v15, 0.0 }
  0x1a   : > { %v481_v20 = vpack.c.bf16 %v295_v17, %v294_v16  ;;  %v486_v21 = vpack.c.bf16 %v297_v19, %v296_v18 }
  0x1c   : > { %482 = vst [vmem:[%s262_s26] sm:$0xff] %v481_v20   ;;  %489 = vst [vmem:[%s262_s26 + $0x8] sm:$0xff] %v486_v21  }
  0x1d PF: > { %s13_s14 = sadd.s32 1, %s536_s14   ;;  %s601_s12 = smov %s532_s13 }
  0x1e   : > { %p10_p5 = scmp.ge.s32.totalorder %s13_s14, 6   ;;  %s602_s13 = smov %s604_s15 }
  0x20   :  { %12 = sbr.rel (!%p10_p5) target bundleno = 2 (0x2), region = 68 }

// kernel: generator_forward.13
= control target key start
LH: loop header
LB: loop body
LE: loop exit
PB: predicated region body
PF: predicated region fallthrough
CT: control target
= control target key end

     0   :  { %9 = vsyncpa [#allocation3], 0  ;;  %s1362_s0 = inlined_call_operand.vmem [shape: bf16[4,128,128], index: 0, kind: input, shape index: {}]   ;;  %s1363_s1 = inlined_call_operand.hbm [shape: bf16[4,128,128], index: 1, kind: input, shape index: {}]   ;;  %s1364_s2 = inlined_call_operand.vmem [shape: bf16[4,128,128], index: 2, kind: output, shape index: {0}]   ;;  %s1365_s3 = inlined_call_operand.vmem [shape: f32[4,1,2,128], index: 3, kind: output, shape index: {1}]  }
   0x1   :  { %11 = vsyncpa [#allocation3 + $0x1], 0  ;;  %s1194_s12 = smov 0   ;;  %s1196_s13 = smov 0  }
   0x2   :  { %s1198_s14 = smov 0   ;;  %s1200_s15 = smov 0  }
   0x3   :  { %s1202_s16 = smov 0   ;;  %s1204_s17 = smov 0  }
   0x4 LB: > { %s838_s18 = sadd.s32 4294967295, %s1169_s17   ;;  %s36_s19 = sadd.s32 1, %s1165_s16  ;;  %s1169_s17 = sphi %s1204_s17, %s17_s17   ;;  %s1165_s16 = sphi %s1202_s16, %s1373_s16   ;;  %s1161_s15 = sphi %s1200_s15, %s1372_s15   ;;  %s1157_s14 = sphi %s1198_s14, %s1371_s14   ;;  %s1153_s13 = sphi %s1196_s13, %s1370_s13   ;;  %s1149_s12 = sphi %s1194_s12, %s1369_s12  }
   0x5   : > { %p38_p0 = scmp.ge.s32.totalorder %s36_s19, 4  ;;  %s73_s20 = sadd.s32 1, %s1157_s14 }
   0x6   : > { %p80_p1 = scmp.ne.s32.totalorder %s1157_s14, %s1153_s13  ;;  %p81_p2 = scmp.eq.s32.totalorder %s1169_s17, 0 }
   0x7   : > { %s1375_s19 = smov (%p38_p0, %s36_s19), 0  ;;  %p86_p4 = scmp.ne.s32.totalorder %s1153_s13, %s1149_s12 }
   0x8   : > { %p1230_p3 = por %p81_p2, %p80_p1  ;;  %s68_s22 = ssub.s32 %s1165_s16, %s1375_s19 }
   0x9   : > { %p87_p5 = scmp.eq.s32.totalorder %s838_s18, 0  ;;  %p71_p6 = scmp.eq.s32.totalorder %s68_s22, 0 }
   0xa   : > { %p1022_p8 = scmp.lt.s32.totalorder %s1169_s17, 4  ;;  %s183_s25 = sand.u32 1, %s1157_s14  }
   0xb   : > { %p1237_p7 = por %p87_p5, %p86_p4  ;;  %s886_s26 = sshll.u32 %s1165_s16, 10 }
   0xc   : > { %s1243_s24 = scalar_select %p71_p6, %s1157_s14, %s73_s20  }
   0xd   : > { %s842_s27 = sshll.u32 %s183_s25, 6  ;;  %s1250_s30 = scalar_lea.hbm %s1363_s1, %s886_s26 }
   0xe   : > { %s187_s4 = scalar_lea.vmem [#allocation2], %s842_s27  ;;  %p1254_p9 = pnand %p1022_p8, %p1230_p3 }
   0xf   : > { %s195_s5 = sshll.u32 %s187_s4, 4  ;;  %s1260_s7 = scalar_lea.sflag [#allocation3], %s183_s25  ;;  %s1258_s5 = int_to_ptr.vmem [resolvable:$true] %s195_s5 }
  0x10   : > { %s1089_s8 = scalar_lea.hbm %s1250_s30, 1024  ;;  %p1091_p11 = pneg %p1254_p9 }
  0x11   : > { %p1090_p10 = scmp.ne.s32.totalorder %s1250_s30, %s1089_s8  ;;  %s1094_s11 = scalar_lea.hbm %s1363_s1, 4096 }
  0x12   : > { %p1095_p0 = scmp.lt.u32.totalorder %s1250_s30, %s1363_s1  ;;  %p1096_p1 = scmp.lt.u32.totalorder %s1094_s11, %s1089_s8 }
  0x13   : > { %p1092_p12 = pnand %p1091_p11, %p1090_p10  ;;  %p1098_p3 = scmp.lt.u32.totalorder %s1089_s8, %s1250_s30 }
  0x14   : > { %p1097_p2 = por %p1096_p1, %p1095_p0 }
  0x15   : > { %p1093_p13 = pneg %p1092_p12 }
  0x16   : > { %p1099_p4 = por %p1098_p3, %p1097_p2 }
  0x18   : > { %p1100_p5 = pnand %p1099_p4, %p1093_p13 }
  0x1a   : > { %1103 = shalt.err (!%p1100_p5)
}
  0x1b   : > { %s1104_s20 = scalar_lea.vmem %s1258_s5, 1024  ;;  %s1171_s21 = smov [#allocation2]  }
  0x1c   : > { %p1105_p6 = scmp.ne.s32.totalorder %s1258_s5, %s1104_s20  ;;  %s1109_s22 = sshll.u32 %s1171_s21, 4  ;;  %s1110_s22 = int_to_ptr.vmem [resolvable:$false] %s1109_s22 }
  0x1d   : > { %s1111_s25 = scalar_lea.vmem %s1110_s22, 2048  ;;  %p1112_p12 = scmp.lt.s32.totalorder %s1258_s5, %s1110_s22 }
  0x1e   : > { %p1107_p8 = pnand %p1105_p6, %p1091_p11  ;;  %p1113_p0 = scmp.lt.s32.totalorder %s1111_s25, %s1104_s20 }
  0x20   : > { %p1108_p10 = pneg %p1107_p8  ;;  %p1114_p1 = por %p1113_p0, %p1112_p12 }
  0x22   : > { %p1115_p2 = pnand %p1114_p1, %p1108_p10 }
  0x24   : > { %1118 = shalt.err (!%p1115_p2)
}
  0x25   : > { %s1172_s26 = smov 64   ;;  %s1173_s27 = smov 4  }
  0x26   : > { %1021 = dma.hbm_to_vmem [thread:$0]  (!%p1254_p9), %s1250_s30, 1024, %s1258_s5, %s1260_s7, %s1172_s26, %s1172_s26, %s1173_s27  }
  0x27   : > { %p845_p11 = scmp.ge.s32.totalorder %s1169_s17, 1  ;;  %p203_p13 = scmp.lt.s32.totalorder %s1169_s17, 5 }
  0x29   : > { %p204_p3 = pnand %p845_p11, %p203_p13 }
  0x2a   : > { %s209_s28 = sand.u32 (!%p204_p3), 1, %s1153_s13  }
  0x2b   : > { %207 = sbr.rel (%p204_p3) target bundleno = 345 (0x159), region = 28  ;;  %s846_s29 = sshll.u32 (!%p204_p3), %s209_s28, 6 }
  0x2c   : > { %s210_s4 = scalar_lea.sflag (!%p204_p3), [#allocation3], %s209_s28  ;;  %s1291_s8 = scalar_lea.vmem (!%p204_p3), [#allocation2], %s846_s29 }
  0x32   : > { %1144 = dma.done.wait (%p1237_p7), %s210_s4, 1024  }
  0x33   : > { %1146 = vsyncadd (%p1237_p7), %s210_s4, 4294966272  ;;  %p263_p9 = scmp.lt.s32.totalorder %s1161_s15, 3  ;;  %v1073_v0 = vld [vmem:[%s1291_s8] sm:$0xff]   ;;  %v1074_v1 = vld [vmem:[%s1291_s8 + $0x8] sm:$0xff]   ;;  %vm659_vm0 = vcmask 1040384  }
  0x34   : > { %968 = vmatprep.subr.bf16.mxu0 %v1073_v0  ;;  %1000 = vmatprep.subr.bf16.mxu1 %v1073_v0  ;;  %v1075_v2 = vld [vmem:[%s1291_s8 + $0x10] sm:$0xff]   ;;  %v1076_v3 = vld [vmem:[%s1291_s8 + $0x18] sm:$0xff]   ;;  %v1077_v5 = vld [vmem:[%s1291_s8 + $0x20] sm:$0xff]  }
  0x35   : > { %s1377_s15 = smov (!%p263_p9, %s1161_s15), 3  ;;  %969 = vmatpush3.bf16.msra.mxu0 %v1073_v0  ;;  %1008 = vmatpush3.bf16.msra.mxu1 %v1073_v0  ;;  %v1078_v7 = vld [vmem:[%s1291_s8 + $0x28] sm:$0xff]   ;;  %v1079_v8 = vld [vmem:[%s1291_s8 + $0x30] sm:$0xff]   ;;  %v1080_v9 = vld [vmem:[%s1291_s8 + $0x38] sm:$0xff]  }
  0x36   : > { %s887_s30 = sshll.u32 %s1377_s15, 6  ;;  %970 = vmatprep.subr.bf16.mxu0 %v1074_v1  ;;  %1001 = vmatprep.subr.bf16.mxu1 %v1074_v1  ;;  %s851_s11 = sshll.u32 %s1377_s15, 1 }
  0x37   : > { %s1310_s6 = scalar_lea.vmem %s1362_s0, %s887_s30  ;;  %s1330_s10 = scalar_lea.vmem %s1364_s2, %s887_s30 }
  0x38   : > { %v1081_v4 = vld [vmem:[%s1310_s6] sm:$0xff]   ;;  %v1082_v10 = vld [vmem:[%s1310_s6 + $0x8] sm:$0xff]   ;;  %v1083_v12 = vld [vmem:[%s1310_s6 + $0x10] sm:$0xff]   ;;  %s294_s20 = scalar_lea.vmem %s1365_s3, %s851_s11 }
  0x39   : > { %971 = vmatpush3.bf16.msra.mxu0 %v1074_v1  ;;  %1009 = vmatpush3.bf16.msra.mxu1 %v1074_v1  ;;  %v1085_v6 = vld [vmem:[%s1310_s6 + $0x20] sm:$0xff]   ;;  %v1086_v11 = vld [vmem:[%s1310_s6 + $0x28] sm:$0xff]   ;;  %v1087_v13 = vld [vmem:[%s1310_s6 + $0x30] sm:$0xff]  }
  0x3a   : > { %972 = vmatprep.subr.bf16.mxu0 %v1075_v2  ;;  %1002 = vmatprep.subr.bf16.mxu1 %v1075_v2  ;;  %v1084_v14 = vld [vmem:[%s1310_s6 + $0x18] sm:$0xff]  }
  0x3b   : > { %984 = vmatprep.mubr.bf16.mxu0 %v1081_v4  ;;  %992 = vmatprep.mubr.bf16.mxu1 %v1085_v6  ;;  %v1088_v15 = vld [vmem:[%s1310_s6 + $0x38] sm:$0xff]  }
  0x3d   : > { %973 = vmatpush3.bf16.msra.mxu0 %v1075_v2  ;;  %1010 = vmatpush3.bf16.msra.mxu1 %v1075_v2 }
  0x3e   : > { %974 = vmatprep.subr.bf16.mxu0 %v1076_v3  ;;  %1003 = vmatprep.subr.bf16.mxu1 %v1076_v3 }
  0x41   : > { %975 = vmatpush3.bf16.msra.mxu0 %v1076_v3  ;;  %1011 = vmatpush3.bf16.msra.mxu1 %v1076_v3 }
  0x42   : > { %976 = vmatprep.subr.bf16.mxu0 %v1077_v5  ;;  %1004 = vmatprep.subr.bf16.mxu1 %v1077_v5 }
  0x45   : > { %977 = vmatpush3.bf16.msra.mxu0 %v1077_v5  ;;  %1012 = vmatpush3.bf16.msra.mxu1 %v1077_v5 }
  0x46   : > { %978 = vmatprep.subr.bf16.mxu0 %v1078_v7  ;;  %1005 = vmatprep.subr.bf16.mxu1 %v1078_v7 }
  0x49   : > { %979 = vmatpush3.bf16.msra.mxu0 %v1078_v7  ;;  %1013 = vmatpush3.bf16.msra.mxu1 %v1078_v7 }
  0x4a   : > { %980 = vmatprep.subr.bf16.mxu0 %v1079_v8  ;;  %1006 = vmatprep.subr.bf16.mxu1 %v1079_v8 }
  0x4d   : > { %981 = vmatpush3.bf16.msra.mxu0 %v1079_v8  ;;  %1014 = vmatpush3.bf16.msra.mxu1 %v1079_v8 }
  0x4e   : > { %982 = vmatprep.subr.bf16.mxu0 %v1080_v9  ;;  %1007 = vmatprep.subr.bf16.mxu1 %v1080_v9 }
  0x51   : > { %983 = vmatpush3.bf16.msra.mxu0 %v1080_v9  ;;  %1015 = vmatpush3.bf16.msra.mxu1 %v1080_v9 }
  0x54   : > { %985 = vmatmul.mubr.bf16.vlgmr.msra.gmra.mrb[0].mxu0 %v1082_v10  ;;  %993 = vmatmul.mubr.bf16.vlgmr.msra.gmra.mrb[0].mxu1 %v1086_v11 }
  0x55   : > { %988 = vmatprep.mubr.bf16.mxu0 %v1083_v12  ;;  %996 = vmatprep.mubr.bf16.mxu1 %v1087_v13 }
  0x5c   : > { %989 = vmatmul.mubr.bf16.gmra.mrb[4].mxu0 %v1084_v14  ;;  %997 = vmatmul.mubr.bf16.gmra.mrb[4].mxu1 %v1088_v15 }
 0x127   : > { %v986_v16 = vpop.f32.mrb[0].mxu0  ;;  %v994_v17 = vpop.f32.mrb[0].mxu1 }
 0x128   : > { %v458_v18 = vpop.f32.mrb[1].mxu0  ;;  %v490_v19 = vpop.f32.mrb[1].mxu1  ;;  %v624_v31 = vmul.f32 %v986_v16, %v986_v16  ;;  %v632_v3 = vmul.f32 %v994_v17, %v994_v17 }
 0x129   : > { %v987_v20 = vpop.f32.mrb[2].mxu0  ;;  %v995_v21 = vpop.f32.mrb[2].mxu1  ;;  %v622_v22 = vmul.f32 %v458_v18, %v458_v18  ;;  %v630_v61 = vmul.f32 %v490_v19, %v490_v19 }
 0x12a   : > { %v913_v23 = vpack.c.bf16 %v987_v20, %v986_v16  ;;  %v461_v24 = vpop.f32.mrb[3].mxu0  ;;  %v933_v25 = vpack.c.bf16 %v995_v21, %v994_v17  ;;  %v493_v26 = vpop.f32.mrb[3].mxu1  ;;  %v625_v34 = vmul.f32 %v987_v20, %v987_v20  ;;  %v633_v6 = vmul.f32 %v995_v21, %v995_v21 }
 0x12b   : > { %v908_v27 = vpack.c.bf16 %v461_v24, %v458_v18  ;;  %v601_v28 = vadd.f32 %v461_v24, %v458_v18  ;;  %v623_v29 = vmul.f32 %v461_v24, %v461_v24  ;;  %v928_v30 = vpack.c.bf16 %v493_v26, %v490_v19 }
 0x12c   : > { %945 = vst [vmem:[%s1330_s10 + $0x8] sm:$0xff] %v913_v23   ;;  %949 = vst [vmem:[%s1330_s10 + $0x28] sm:$0xff] %v933_v25   ;;  %v631_v2 = vmul.f32 %v493_v26, %v493_v26 }
 0x12d   : > { %909 = vst [vmem:[%s1330_s10] sm:$0xff] %v908_v27   ;;  %v602_v32 = vadd.f32 %v986_v16, %v601_v28  ;;  %v638_v33 = vadd.f32 %v623_v29, %v622_v22  ;;  %948 = vst [vmem:[%s1330_s10 + $0x20] sm:$0xff] %v928_v30  }
 0x12f   : > { %v639_v35 = vadd.f32 %v638_v33, %v624_v31  ;;  %v990_v36 = vpop.f32.mrb[4].mxu0  ;;  %v603_v37 = vadd.f32 %v987_v20, %v602_v32  ;;  %v998_v38 = vpop.f32.mrb[4].mxu1 }
 0x130   : > { %v474_v39 = vpop.f32.mrb[5].mxu0  ;;  %v506_v40 = vpop.f32.mrb[5].mxu1  ;;  %v628_v55 = vmul.f32 %v990_v36, %v990_v36  ;;  %v636_v15 = vmul.f32 %v998_v38, %v998_v38 }
 0x131   : > { %v604_v41 = vadd.f32 %v603_v37, %v474_v39  ;;  %v626_v42 = vmul.f32 %v474_v39, %v474_v39  ;;  %v640_v43 = vadd.f32 %v639_v35, %v625_v34  ;;  %v991_v44 = vpop.f32.mrb[6].mxu0  ;;  %v999_v45 = vpop.f32.mrb[6].mxu1  ;;  %v634_v9 = vmul.f32 %v506_v40, %v506_v40 }
 0x132   : > { %v923_v46 = vpack.c.bf16 %v991_v44, %v990_v36  ;;  %v477_v47 = vpop.f32.mrb[7].mxu0  ;;  %v943_v48 = vpack.c.bf16 %v999_v45, %v998_v38  ;;  %v509_v49 = vpop.f32.mrb[7].mxu1  ;;  %v629_v58 = vmul.f32 %v991_v44, %v991_v44 }
 0x133   : > { %v641_v50 = vadd.f32 %v640_v43, %v626_v42  ;;  %v918_v51 = vpack.c.bf16 %v477_v47, %v474_v39  ;;  %v605_v52 = vadd.f32 %v604_v41, %v477_v47  ;;  %v627_v53 = vmul.f32 %v477_v47, %v477_v47 }
 0x134   : > { %947 = vst [vmem:[%s1330_s10 + $0x18] sm:$0xff] %v923_v46   ;;  %951 = vst [vmem:[%s1330_s10 + $0x38] sm:$0xff] %v943_v48   ;;  %v938_v54 = vpack.c.bf16 %v509_v49, %v506_v40  ;;  %v635_v14 = vmul.f32 %v509_v49, %v509_v49 }
 0x135   : > { %946 = vst [vmem:[%s1330_s10 + $0x10] sm:$0xff] %v918_v51   ;;  %v606_v56 = vadd.f32 %v990_v36, %v605_v52  ;;  %v642_v57 = vadd.f32 %v641_v50, %v627_v53 }
 0x136   : > { %950 = vst [vmem:[%s1330_s10 + $0x30] sm:$0xff] %v938_v54  }
 0x137   : > { %v643_v59 = vadd.f32 %v642_v57, %v628_v55  ;;  %v607_v60 = vadd.f32 %v991_v44, %v606_v56 }
 0x139   : > { %v608_v62 = vadd.f32 %v607_v60, %v490_v19  ;;  %v644_v63 = vadd.f32 %v643_v59, %v629_v58  ;;  %v637_v19 = vmul.f32 %v999_v45, %v999_v45 }
 0x13b   : > { %v645_v0 = vadd.f32 %v644_v63, %v630_v61  ;;  %v609_v1 = vadd.f32 %v608_v62, %v493_v26 }
 0x13d   : > { %v610_v4 = vadd.f32 %v994_v17, %v609_v1  ;;  %v646_v5 = vadd.f32 %v645_v0, %v631_v2 }
 0x13f   : > { %v647_v7 = vadd.f32 %v646_v5, %v632_v3  ;;  %v611_v8 = vadd.f32 %v995_v21, %v610_v4 }
 0x141   : > { %v612_v10 = vadd.f32 %v611_v8, %v506_v40  ;;  %v648_v11 = vadd.f32 %v647_v7, %v633_v6 }
 0x143   : > { %v649_v12 = vadd.f32 %v648_v11, %v634_v9  ;;  %v613_v13 = vadd.f32 %v612_v10, %v509_v49 }
 0x145   : > { %v614_v16 = vadd.f32 %v998_v38, %v613_v13  ;;  %v650_v18 = vadd.f32 %v649_v12, %v635_v14 }
 0x147   : > { %v615_v20 = vadd.f32 %v999_v45, %v614_v16  ;;  %v651_v22 = vadd.f32 %v650_v18, %v636_v15 }
 0x149   : > { %v616_v23 = vrot.slane %v615_v20, 4  ;;  %v652_v24 = vadd.f32 %v651_v22, %v637_v19 }
 0x14b   : > { %v617_v17 = vadd.f32 %v616_v23, %v615_v20  ;;  %v653_v25 = vrot.slane %v652_v24, 4 }
 0x14d   : > { %v618_v26 = vrot.slane %v617_v17, 2  ;;  %v654_v27 = vadd.f32 %v653_v25, %v652_v24 }
 0x14f   : > { %v619_v21 = vadd.f32 %v618_v26, %v617_v17  ;;  %v655_v28 = vrot.slane %v654_v27, 2 }
 0x151   : > { %v620_v29 = vrot.slane %v619_v21, 1  ;;  %v656_v30 = vadd.f32 %v655_v28, %v654_v27 }
 0x153   : > { %v657_v31 = vrot.slane %v656_v30, 1  ;;  %v621_v32 = vadd.f32 %v620_v29, %v619_v21 }
 0x155   : > { %v658_v33 = vadd.f32 %v657_v31, %v656_v30 }
 0x157   : > { %v660_v34 = vsel %vm659_vm0, %v621_v32, %v658_v33 }
 0x158   : > { %661 = vst [vmem:[%s294_s20] sm:$0x3] %v660_v34 }
 0x159 PF: > { %s17_s17 = sadd.s32 1, %s1169_s17   ;;  %s1369_s12 = smov %s1153_s13 }
 0x15a   : > { %p14_p7 = scmp.ge.s32.totalorder %s17_s17, 6   ;;  %s1370_s13 = smov %s1157_s14 }
 0x15b   : > { %s1371_s14 = smov %s1243_s24  ;;  %s1372_s15 = smov %s1165_s16 }
 0x15c   : > { %s1373_s16 = smov %s1375_s19  ;;  %16 = sbr.rel (!%p14_p7) target bundleno = 4 (0x4), region = 83 }
 0x163   :  { %724 = vsyncpa [#allocation3], 1 }
 0x164   :  { %726 = vsyncpa [#allocation3 + $0x1], 1 }

// kernel: generator_forward.14
= control target key start
LH: loop header
LB: loop body
LE: loop exit
PB: predicated region body
PF: predicated region fallthrough
CT: control target
= control target key end

     0   :  { %s768_s12 = smov 0   ;;  %s770_s13 = smov 0   ;;  %s870_s0 = inlined_call_operand.vmem [shape: bf16[4,128,128], index: 0, kind: input, shape index: {}]   ;;  %s871_s1 = inlined_call_operand.vmem [shape: f32[1,128], index: 1, kind: input, shape index: {}]   ;;  %s872_s2 = inlined_call_operand.vmem [shape: f32[1,128], index: 2, kind: input, shape index: {}]   ;;  %s873_s3 = inlined_call_operand.vmem [shape: bf16[4,128,128], index: 3, kind: output, shape index: {}]  }
   0x1   :  { %s772_s14 = smov 0  }
   0x2 LB: > { %s32_s15 = sadd.s32 1, %s742_s13  ;;  %p571_p0 = scmp.ge.s32.totalorder %s746_s14, 1  ;;  %s746_s14 = sphi %s772_s14, %s13_s14   ;;  %s742_s13 = sphi %s770_s13, %s875_s13   ;;  %s738_s12 = sphi %s768_s12, %s874_s12  }
   0x3   : > { %p34_p1 = scmp.ge.s32.totalorder %s32_s15, 4  ;;  %p188_p2 = scmp.lt.s32.totalorder %s746_s14, 5 }
   0x5   : > { %s877_s15 = smov (%p34_p1, %s32_s15), 0  ;;  %p189_p3 = pnand %p571_p0, %p188_p2 }
   0x6   : > { %p233_p4 = scmp.lt.s32.totalorder (!%p189_p3), %s738_s12, 3  ;;  %v799_v0 = vld [vmem:[%s871_s1] ss:$0 sm:$0xff] (!%p189_p3) }
   0x7   : > { %192 = sbr.rel (%p189_p3) target bundleno = 40 (0x28), region = 32  ;;  %v808_v9 = vld [vmem:[%s872_s2] ss:$0 sm:$0xff] (!%p189_p3) }
   0xe   : > { %s879_s12 = smov (!%p233_p4, %s738_s12), 3 }
   0xf   : > { %s596_s16 = sshll.u32 %s879_s12, 6 }
  0x10   : > { %s794_s19 = scalar_lea.vmem %s870_s0, %s596_s16  ;;  %s833_s26 = scalar_lea.vmem %s873_s3, %s596_s16 }
  0x11   : > { %v615_v1 = vld [vmem:[%s794_s19] sm:$0xff]   ;;  %v686_v2 = vld [vmem:[%s794_s19 + $0x8] sm:$0xff]   ;;  %v687_v3 = vld [vmem:[%s794_s19 + $0x10] sm:$0xff]  }
  0x12   : > { %v616_v4 = vunpack.c.l.bf16 %v615_v1  ;;  %v617_v5 = vunpack.c.h.bf16 %v615_v1  ;;  %v620_v6 = vunpack.c.l.bf16 %v686_v2  ;;  %v621_v7 = vunpack.c.h.bf16 %v686_v2  ;;  %v688_v8 = vld [vmem:[%s794_s19 + $0x18] sm:$0xff]   ;;  %v689_v30 = vld [vmem:[%s794_s19 + $0x20] sm:$0xff]   ;;  %v690_v35 = vld [vmem:[%s794_s19 + $0x28] sm:$0xff]  }
  0x13   : > { %v624_v10 = vunpack.c.l.bf16 %v687_v3  ;;  %v625_v11 = vunpack.c.h.bf16 %v687_v3  ;;  %v628_v12 = vunpack.c.l.bf16 %v688_v8  ;;  %v629_v13 = vunpack.c.h.bf16 %v688_v8  ;;  %v691_v40 = vld [vmem:[%s794_s19 + $0x30] sm:$0xff]   ;;  %v692_v45 = vld [vmem:[%s794_s19 + $0x38] sm:$0xff]  }
  0x14   : > { %v303_v14 = vmul.f32 %v616_v4, %v799_v0  ;;  %v304_v15 = vmul.f32 %v617_v5, %v799_v0  ;;  %v305_v16 = vmul.f32 %v620_v6, %v799_v0  ;;  %v306_v17 = vmul.f32 %v621_v7, %v799_v0 }
  0x15   : > { %v307_v18 = vmul.f32 %v624_v10, %v799_v0  ;;  %v308_v19 = vmul.f32 %v625_v11, %v799_v0  ;;  %v309_v20 = vmul.f32 %v628_v12, %v799_v0  ;;  %v310_v21 = vmul.f32 %v629_v13, %v799_v0 }
  0x16   : > { %v326_v22 = vadd.f32 %v808_v9, %v303_v14  ;;  %v327_v23 = vadd.f32 %v808_v9, %v304_v15  ;;  %v328_v24 = vadd.f32 %v808_v9, %v305_v16  ;;  %v329_v25 = vadd.f32 %v808_v9, %v306_v17 }
  0x17   : > { %v330_v26 = vadd.f32 %v808_v9, %v307_v18  ;;  %v331_v27 = vadd.f32 %v808_v9, %v308_v19  ;;  %v332_v28 = vadd.f32 %v808_v9, %v309_v20  ;;  %v333_v29 = vadd.f32 %v808_v9, %v310_v21 }
  0x18   : > { %v342_v31 = vmax.f32 %v326_v22, 0.0  ;;  %v343_v32 = vmax.f32 %v327_v23, 0.0  ;;  %v344_v33 = vmax.f32 %v328_v24, 0.0  ;;  %v345_v34 = vmax.f32 %v329_v25, 0.0 }
  0x19   : > { %v346_v36 = vmax.f32 %v330_v26, 0.0  ;;  %v347_v37 = vmax.f32 %v331_v27, 0.0  ;;  %v348_v38 = vmax.f32 %v332_v28, 0.0  ;;  %v349_v39 = vmax.f32 %v333_v29, 0.0 }
  0x1a   : > { %v649_v41 = vpack.c.bf16 %v343_v32, %v342_v31  ;;  %v654_v42 = vpack.c.bf16 %v345_v34, %v344_v33  ;;  %v632_v43 = vunpack.c.l.bf16 %v689_v30  ;;  %v633_v44 = vunpack.c.h.bf16 %v689_v30 }
  0x1b   : > { %v659_v46 = vpack.c.bf16 %v347_v37, %v346_v36  ;;  %v664_v47 = vpack.c.bf16 %v349_v39, %v348_v38  ;;  %v636_v48 = vunpack.c.l.bf16 %v690_v35  ;;  %v637_v49 = vunpack.c.h.bf16 %v690_v35 }
  0x1c   : > { %650 = vst [vmem:[%s833_s26] sm:$0xff] %v649_v41   ;;  %693 = vst [vmem:[%s833_s26 + $0x8] sm:$0xff] %v654_v42   ;;  %v311_v50 = vmul.f32 %v632_v43, %v799_v0  ;;  %v312_v51 = vmul.f32 %v633_v44, %v799_v0  ;;  %v640_v52 = vunpack.c.l.bf16 %v691_v40  ;;  %v641_v53 = vunpack.c.h.bf16 %v691_v40 }
  0x1d   : > { %694 = vst [vmem:[%s833_s26 + $0x10] sm:$0xff] %v659_v46   ;;  %695 = vst [vmem:[%s833_s26 + $0x18] sm:$0xff] %v664_v47   ;;  %v313_v54 = vmul.f32 %v636_v48, %v799_v0  ;;  %v314_v55 = vmul.f32 %v637_v49, %v799_v0  ;;  %v644_v56 = vunpack.c.l.bf16 %v692_v45  ;;  %v645_v57 = vunpack.c.h.bf16 %v692_v45 }
  0x1e   : > { %v334_v58 = vadd.f32 %v808_v9, %v311_v50  ;;  %v335_v59 = vadd.f32 %v808_v9, %v312_v51  ;;  %v315_v60 = vmul.f32 %v640_v52, %v799_v0  ;;  %v316_v61 = vmul.f32 %v641_v53, %v799_v0 }
  0x1f   : > { %v336_v62 = vadd.f32 %v808_v9, %v313_v54  ;;  %v337_v63 = vadd.f32 %v808_v9, %v314_v55  ;;  %v317_v1 = vmul.f32 %v644_v56, %v799_v0  ;;  %v318_v2 = vmul.f32 %v645_v57, %v799_v0 }
  0x20   : > { %v350_v3 = vmax.f32 %v334_v58, 0.0  ;;  %v351_v4 = vmax.f32 %v335_v59, 0.0  ;;  %v338_v5 = vadd.f32 %v808_v9, %v315_v60  ;;  %v339_v6 = vadd.f32 %v808_v9, %v316_v61 }
  0x21   : > { %v352_v7 = vmax.f32 %v336_v62, 0.0  ;;  %v353_v8 = vmax.f32 %v337_v63, 0.0  ;;  %v340_v10 = vadd.f32 %v808_v9, %v317_v1  ;;  %v341_v11 = vadd.f32 %v808_v9, %v318_v2 }
  0x22   : > { %v669_v12 = vpack.c.bf16 %v351_v4, %v350_v3  ;;  %v354_v13 = vmax.f32 %v338_v5, 0.0  ;;  %v355_v14 = vmax.f32 %v339_v6, 0.0 }
  0x23   : > { %v674_v15 = vpack.c.bf16 %v353_v8, %v352_v7  ;;  %v356_v0 = vmax.f32 %v340_v10, 0.0  ;;  %v357_v16 = vmax.f32 %v341_v11, 0.0 }
  0x24   : > { %696 = vst [vmem:[%s833_s26 + $0x20] sm:$0xff] %v669_v12   ;;  %v679_v17 = vpack.c.bf16 %v355_v14, %v354_v13 }
  0x25   : > { %697 = vst [vmem:[%s833_s26 + $0x28] sm:$0xff] %v674_v15   ;;  %v684_v18 = vpack.c.bf16 %v357_v16, %v356_v0 }
  0x26   : > { %698 = vst [vmem:[%s833_s26 + $0x30] sm:$0xff] %v679_v17  }
  0x27   : > { %699 = vst [vmem:[%s833_s26 + $0x38] sm:$0xff] %v684_v18  }
  0x28 PF: > { %s13_s14 = sadd.s32 1, %s746_s14   ;;  %s874_s12 = smov %s742_s13 }
  0x29   : > { %p10_p5 = scmp.ge.s32.totalorder %s13_s14, 6   ;;  %s875_s13 = smov %s877_s15 }
  0x2b   :  { %12 = sbr.rel (!%p10_p5) target bundleno = 2 (0x2), region = 68 }

// kernel: generator_forward.15
= control target key start
LH: loop header
LB: loop body
LE: loop exit
PB: predicated region body
PF: predicated region fallthrough
CT: control target
= control target key end

     0   :  { %s2244_s12 = smov 0   ;;  %s2246_s13 = smov 0   ;;  %s2584_s0 = inlined_call_operand.vmem [shape: bf16[4,512,64], index: 0, kind: input, shape index: {}]   ;;  %s2585_s1 = inlined_call_operand.vmem [shape: bf16[4,64,128], index: 1, kind: input, shape index: {}]   ;;  %s2586_s2 = inlined_call_operand.vmem [shape: bf16[4,512,128], index: 2, kind: output, shape index: {0}]   ;;  %s2587_s3 = inlined_call_operand.vmem [shape: f32[4,1,2,128], index: 3, kind: output, shape index: {1}]  }
   0x1   :  { %s2248_s14 = smov 0  }
   0x2 LB: > { %s33_s15 = sadd.s32 1, %s2218_s13  ;;  %p1624_p0 = scmp.ge.s32.totalorder %s2222_s14, 1  ;;  %s2222_s14 = sphi %s2248_s14, %s14_s14   ;;  %s2218_s13 = sphi %s2246_s13, %s2589_s13   ;;  %s2214_s12 = sphi %s2244_s12, %s2588_s12  }
   0x3   : > { %p35_p1 = scmp.ge.s32.totalorder %s33_s15, 4  ;;  %p189_p2 = scmp.lt.s32.totalorder %s2222_s14, 5 }
   0x5   : > { %s2591_s15 = smov (%p35_p1, %s33_s15), 0  ;;  %p190_p3 = pnand %p1624_p0, %p189_p2 }
   0x6   : > { %p243_p4 = scmp.lt.s32.totalorder (!%p190_p3), %s2214_s12, 3  ;;  %vm540_vm0 = vcmask (!%p190_p3), 523264   ;;  %vm1448_vm1 = vcmask (!%p190_p3), 1040384  }
   0x7   : > { %193 = sbr.rel (%p190_p3) target bundleno = 391 (0x187), region = 28 }
   0xe   : > { %s2593_s12 = smov (!%p243_p4, %s2214_s12), 3 }
   0xf   : > { %s1766_s16 = sshll.u32 %s2593_s12, 8  ;;  %s1767_s17 = sshll.u32 %s2593_s12, 5 }
  0x10   : > { %s259_s20 = scalar_lea.vmem %s2585_s1, %s1767_s17  ;;  %s2274_s23 = scalar_lea.vmem %s2584_s0, %s1766_s16 }
  0x11   : > { %v2164_v0 = vld [vmem:[%s259_s20] sm:$0xff]   ;;  %v2165_v1 = vld [vmem:[%s259_s20 + $0x8] sm:$0xff]   ;;  %v2166_v2 = vld [vmem:[%s259_s20 + $0x10] sm:$0xff]   ;;  %s2345_s26 = scalar_lea.vmem %s2586_s2, %s1766_s16  ;;  %s1631_s27 = sshll.u32 %s2593_s12, 1 }
  0x12   : > { %2060 = vmatprep.subr.bf16.mxu0 %v2164_v0  ;;  %2132 = vmatprep.subr.bf16.mxu1 %v2164_v0  ;;  %v2168_v3 = vld [vmem:[%s2274_s23] sm:$0xff]   ;;  %v2167_v4 = vld [vmem:[%s259_s20 + $0x18] sm:$0xff]   ;;  %v2169_v5 = vld [vmem:[%s2274_s23 + $0x8] sm:$0xff]   ;;  %s282_s30 = scalar_lea.vmem %s2587_s3, %s1631_s27 }
  0x13   : > { %2061 = vmatpush3.bf16.msra.mxu0 %v2164_v0  ;;  %2136 = vmatpush3.bf16.msra.mxu1 %v2164_v0  ;;  %v2170_v6 = vld [vmem:[%s2274_s23 + $0x10] sm:$0xff]   ;;  %v2171_v7 = vld [vmem:[%s2274_s23 + $0x18] sm:$0xff]   ;;  %v2184_v8 = vld [vmem:[%s2274_s23 + $0x80] sm:$0xff]  }
  0x14   : > { %2062 = vmatprep.subr.bf16.mxu0 %v2165_v1  ;;  %2133 = vmatprep.subr.bf16.mxu1 %v2165_v1  ;;  %v2185_v9 = vld [vmem:[%s2274_s23 + $0x88] sm:$0xff]   ;;  %v2186_v10 = vld [vmem:[%s2274_s23 + $0x90] sm:$0xff]   ;;  %v2172_v11 = vld [vmem:[%s2274_s23 + $0x20] sm:$0xff]  }
  0x15   : > { %2068 = vmatprep.mubr.msk.bf16.mxu0 %vm540_vm0, %v2168_v3  ;;  %2100 = vmatprep.mubr.msk.bf16.mxu1 %vm540_vm0, %v2184_v8  ;;  %v2187_v12 = vld [vmem:[%s2274_s23 + $0x98] sm:$0xff]   ;;  %v2188_v13 = vld [vmem:[%s2274_s23 + $0xa0] sm:$0xff]   ;;  %v2173_v14 = vld [vmem:[%s2274_s23 + $0x28] sm:$0xff]  }
  0x16   : > { %v2174_v15 = vld [vmem:[%s2274_s23 + $0x30] sm:$0xff]   ;;  %v2189_v16 = vld [vmem:[%s2274_s23 + $0xa8] sm:$0xff]   ;;  %v2175_v18 = vld [vmem:[%s2274_s23 + $0x38] sm:$0xff]  }
  0x17   : > { %2063 = vmatpush3.bf16.msra.mxu0 %v2165_v1  ;;  %2137 = vmatpush3.bf16.msra.mxu1 %v2165_v1  ;;  %v2190_v17 = vld [vmem:[%s2274_s23 + $0xb0] sm:$0xff]   ;;  %v2176_v19 = vld [vmem:[%s2274_s23 + $0x40] sm:$0xff]   ;;  %v2191_v20 = vld [vmem:[%s2274_s23 + $0xb8] sm:$0xff]  }
  0x18   : > { %2064 = vmatprep.subr.bf16.mxu0 %v2166_v2  ;;  %2134 = vmatprep.subr.bf16.mxu1 %v2166_v2  ;;  %v2192_v21 = vld [vmem:[%s2274_s23 + $0xc0] sm:$0xff]   ;;  %v2177_v22 = vld [vmem:[%s2274_s23 + $0x48] sm:$0xff]   ;;  %v2178_v23 = vld [vmem:[%s2274_s23 + $0x50] sm:$0xff]  }
  0x19   : > { %v2193_v24 = vld [vmem:[%s2274_s23 + $0xc8] sm:$0xff]   ;;  %v2194_v25 = vld [vmem:[%s2274_s23 + $0xd0] sm:$0xff]   ;;  %v2179_v26 = vld [vmem:[%s2274_s23 + $0x58] sm:$0xff]  }
  0x1a   : > { %v2180_v27 = vld [vmem:[%s2274_s23 + $0x60] sm:$0xff]   ;;  %v2195_v28 = vld [vmem:[%s2274_s23 + $0xd8] sm:$0xff]   ;;  %v2181_v30 = vld [vmem:[%s2274_s23 + $0x68] sm:$0xff]  }
  0x1b   : > { %2065 = vmatpush3.bf16.msra.mxu0 %v2166_v2  ;;  %2138 = vmatpush3.bf16.msra.mxu1 %v2166_v2  ;;  %v2196_v29 = vld [vmem:[%s2274_s23 + $0xe0] sm:$0xff]   ;;  %v2182_v31 = vld [vmem:[%s2274_s23 + $0x70] sm:$0xff]   ;;  %v2197_v32 = vld [vmem:[%s2274_s23 + $0xe8] sm:$0xff]  }
  0x1c   : > { %2066 = vmatprep.subr.bf16.mxu0 %v2167_v4  ;;  %2135 = vmatprep.subr.bf16.mxu1 %v2167_v4  ;;  %v2198_v33 = vld [vmem:[%s2274_s23 + $0xf0] sm:$0xff]   ;;  %v2183_v34 = vld [vmem:[%s2274_s23 + $0x78] sm:$0xff]  }
  0x1d   : > { %v2199_v35 = vld [vmem:[%s2274_s23 + $0xf8] sm:$0xff]  }
  0x1f   : > { %2067 = vmatpush3.bf16.msra.mxu0 %v2167_v4  ;;  %2139 = vmatpush3.bf16.msra.mxu1 %v2167_v4 }
  0x22   : > { %2069 = vmatmul.mubr.msk.bf16.vlgmr.msra.gmra.mrb[0].mxu0 %vm540_vm0, %v2169_v5  ;;  %2101 = vmatmul.mubr.msk.bf16.vlgmr.msra.gmra.mrb[0].mxu1 %vm540_vm0, %v2185_v9 }
  0x23   : > { %2072 = vmatprep.mubr.msk.bf16.mxu0 %vm540_vm0, %v2170_v6  ;;  %2104 = vmatprep.mubr.msk.bf16.mxu1 %vm540_vm0, %v2186_v10 }
  0x2a   : > { %2073 = vmatmul.mubr.msk.bf16.gmra.mrb[4].mxu0 %vm540_vm0, %v2171_v7  ;;  %2105 = vmatmul.mubr.msk.bf16.gmra.mrb[4].mxu1 %vm540_vm0, %v2187_v12 }
  0x2b   : > { %2076 = vmatprep.mubr.msk.bf16.mxu0 %vm540_vm0, %v2172_v11  ;;  %2108 = vmatprep.mubr.msk.bf16.mxu1 %vm540_vm0, %v2188_v13 }
  0x32   : > { %2077 = vmatmul.mubr.msk.bf16.gmra.mrb[8].mxu0 %vm540_vm0, %v2173_v14  ;;  %2109 = vmatmul.mubr.msk.bf16.gmra.mrb[8].mxu1 %vm540_vm0, %v2189_v16 }
  0x33   : > { %2080 = vmatprep.mubr.msk.bf16.mxu0 %vm540_vm0, %v2174_v15  ;;  %2112 = vmatprep.mubr.msk.bf16.mxu1 %vm540_vm0, %v2190_v17 }
  0x3a   : > { %2081 = vmatmul.mubr.msk.bf16.gmra.mrb[12].mxu0 %vm540_vm0, %v2175_v18  ;;  %2113 = vmatmul.mubr.msk.bf16.gmra.mrb[12].mxu1 %vm540_vm0, %v2191_v20 }
  0x3b   : > { %2084 = vmatprep.mubr.msk.bf16.mxu0 %vm540_vm0, %v2176_v19  ;;  %2116 = vmatprep.mubr.msk.bf16.mxu1 %vm540_vm0, %v2192_v21 }
  0x42   : > { %2085 = vmatmul.mubr.msk.bf16.gmra.mrb[16].mxu0 %vm540_vm0, %v2177_v22  ;;  %2117 = vmatmul.mubr.msk.bf16.gmra.mrb[16].mxu1 %vm540_vm0, %v2193_v24 }
  0x43   : > { %2088 = vmatprep.mubr.msk.bf16.mxu0 %vm540_vm0, %v2178_v23  ;;  %2120 = vmatprep.mubr.msk.bf16.mxu1 %vm540_vm0, %v2194_v25 }
  0x4a   : > { %2089 = vmatmul.mubr.msk.bf16.gmra.mrb[20].mxu0 %vm540_vm0, %v2179_v26  ;;  %2121 = vmatmul.mubr.msk.bf16.gmra.mrb[20].mxu1 %vm540_vm0, %v2195_v28 }
  0x4b   : > { %2092 = vmatprep.mubr.msk.bf16.mxu0 %vm540_vm0, %v2180_v27  ;;  %2124 = vmatprep.mubr.msk.bf16.mxu1 %vm540_vm0, %v2196_v29 }
  0x52   : > { %2093 = vmatmul.mubr.msk.bf16.gmra.mrb[24].mxu0 %vm540_vm0, %v2181_v30  ;;  %2125 = vmatmul.mubr.msk.bf16.gmra.mrb[24].mxu1 %vm540_vm0, %v2197_v32 }
  0x53   : > { %2096 = vmatprep.mubr.msk.bf16.mxu0 %vm540_vm0, %v2182_v31  ;;  %2128 = vmatprep.mubr.msk.bf16.mxu1 %vm540_vm0, %v2198_v33 }
  0x5a   : > { %2097 = vmatmul.mubr.msk.bf16.gmra.mrb[28].mxu0 %vm540_vm0, %v2183_v34  ;;  %2129 = vmatmul.mubr.msk.bf16.gmra.mrb[28].mxu1 %vm540_vm0, %v2199_v35 }
  0xf5   : > { %v2070_v36 = vpop.f32.mrb[0].mxu0  ;;  %v2348_v45 = vpop.f32.mrb[0].mxu1 }
  0xf6   : > { %v671_v37 = vpop.f32.mrb[1].mxu0  ;;  %v1317_v46 = vmul.f32 %v2070_v36, %v2070_v36  ;;  %v2351_v49 = vpop.f32.mrb[1].mxu1 }
  0xf7   : > { %v2071_v38 = vpop.f32.mrb[2].mxu0  ;;  %v1315_v41 = vmul.f32 %v671_v37, %v671_v37  ;;  %v2353_v50 = vpop.f32.mrb[2].mxu1 }
  0xf8   : > { %v1841_v39 = vpack.c.bf16 %v2071_v38, %v2070_v36  ;;  %v674_v40 = vpop.f32.mrb[3].mxu0  ;;  %v1318_v51 = vmul.f32 %v2071_v38, %v2071_v38  ;;  %v1921_v55 = vpack.c.bf16 %v2353_v50, %v2348_v45  ;;  %v2357_v56 = vpop.f32.mrb[3].mxu1 }
  0xf9   : > { %v1836_v42 = vpack.c.bf16 %v674_v40, %v671_v37  ;;  %v1246_v43 = vadd.f32 %v674_v40, %v671_v37  ;;  %v1316_v44 = vmul.f32 %v674_v40, %v674_v40  ;;  %v1916_v58 = vpack.c.bf16 %v2357_v56, %v2351_v49 }
  0xfa   : > { %1993 = vst [vmem:[%s2345_s26 + $0x8] sm:$0xff] %v1841_v39   ;;  %2009 = vst [vmem:[%s2345_s26 + $0x88] sm:$0xff] %v1921_v55  }
  0xfb   : > { %1837 = vst [vmem:[%s2345_s26] sm:$0xff] %v1836_v42   ;;  %v1247_v47 = vadd.f32 %v2070_v36, %v1246_v43  ;;  %v1379_v48 = vadd.f32 %v1316_v44, %v1315_v41  ;;  %2008 = vst [vmem:[%s2345_s26 + $0x80] sm:$0xff] %v1916_v58  }
  0xfd   : > { %v1380_v52 = vadd.f32 %v1379_v48, %v1317_v46  ;;  %v2074_v53 = vpop.f32.mrb[4].mxu0  ;;  %v1248_v54 = vadd.f32 %v2071_v38, %v1247_v47  ;;  %v2364_v5 = vpop.f32.mrb[4].mxu1 }
  0xfe   : > { %v687_v57 = vpop.f32.mrb[5].mxu0  ;;  %v1321_v6 = vmul.f32 %v2074_v53, %v2074_v53  ;;  %v2367_v9 = vpop.f32.mrb[5].mxu1 }
  0xff   : > { %v1249_v59 = vadd.f32 %v1248_v54, %v687_v57  ;;  %v1319_v60 = vmul.f32 %v687_v57, %v687_v57  ;;  %v1381_v61 = vadd.f32 %v1380_v52, %v1318_v51  ;;  %v2075_v62 = vpop.f32.mrb[6].mxu0  ;;  %v2369_v10 = vpop.f32.mrb[6].mxu1 }
 0x100   : > { %v1851_v63 = vpack.c.bf16 %v2075_v62, %v2074_v53  ;;  %v690_v0 = vpop.f32.mrb[7].mxu0  ;;  %v1322_v11 = vmul.f32 %v2075_v62, %v2075_v62  ;;  %v1931_v15 = vpack.c.bf16 %v2369_v10, %v2364_v5  ;;  %v2373_v16 = vpop.f32.mrb[7].mxu1 }
 0x101   : > { %v1382_v1 = vadd.f32 %v1381_v61, %v1319_v60  ;;  %v1846_v2 = vpack.c.bf16 %v690_v0, %v687_v57  ;;  %v1250_v3 = vadd.f32 %v1249_v59, %v690_v0  ;;  %v1320_v4 = vmul.f32 %v690_v0, %v690_v0 }
 0x102   : > { %1995 = vst [vmem:[%s2345_s26 + $0x18] sm:$0xff] %v1851_v63   ;;  %v1926_v18 = vpack.c.bf16 %v2373_v16, %v2367_v9  ;;  %2011 = vst [vmem:[%s2345_s26 + $0x98] sm:$0xff] %v1931_v15  }
 0x103   : > { %1994 = vst [vmem:[%s2345_s26 + $0x10] sm:$0xff] %v1846_v2   ;;  %v1251_v7 = vadd.f32 %v2074_v53, %v1250_v3  ;;  %v1383_v8 = vadd.f32 %v1382_v1, %v1320_v4 }
 0x104   : > { %2010 = vst [vmem:[%s2345_s26 + $0x90] sm:$0xff] %v1926_v18  }
 0x105   : > { %v1384_v12 = vadd.f32 %v1383_v8, %v1321_v6  ;;  %v2078_v13 = vpop.f32.mrb[8].mxu0  ;;  %v1252_v14 = vadd.f32 %v2075_v62, %v1251_v7  ;;  %v2380_v29 = vpop.f32.mrb[8].mxu1 }
 0x106   : > { %v703_v17 = vpop.f32.mrb[9].mxu0  ;;  %v1325_v30 = vmul.f32 %v2078_v13, %v2078_v13  ;;  %v2383_v33 = vpop.f32.mrb[9].mxu1 }
 0x107   : > { %v1253_v19 = vadd.f32 %v1252_v14, %v703_v17  ;;  %v1323_v20 = vmul.f32 %v703_v17, %v703_v17  ;;  %v1385_v21 = vadd.f32 %v1384_v12, %v1322_v11  ;;  %v2079_v22 = vpop.f32.mrb[10].mxu0  ;;  %v2385_v34 = vpop.f32.mrb[10].mxu1 }
 0x108   : > { %v1861_v23 = vpack.c.bf16 %v2079_v22, %v2078_v13  ;;  %v706_v24 = vpop.f32.mrb[11].mxu0  ;;  %v1326_v35 = vmul.f32 %v2079_v22, %v2079_v22  ;;  %v1941_v39 = vpack.c.bf16 %v2385_v34, %v2380_v29  ;;  %v2389_v40 = vpop.f32.mrb[11].mxu1 }
 0x109   : > { %v1386_v25 = vadd.f32 %v1385_v21, %v1323_v20  ;;  %v1856_v26 = vpack.c.bf16 %v706_v24, %v703_v17  ;;  %v1254_v27 = vadd.f32 %v1253_v19, %v706_v24  ;;  %v1324_v28 = vmul.f32 %v706_v24, %v706_v24 }
 0x10a   : > { %1997 = vst [vmem:[%s2345_s26 + $0x28] sm:$0xff] %v1861_v23   ;;  %v1936_v42 = vpack.c.bf16 %v2389_v40, %v2383_v33  ;;  %2013 = vst [vmem:[%s2345_s26 + $0xa8] sm:$0xff] %v1941_v39  }
 0x10b   : > { %1996 = vst [vmem:[%s2345_s26 + $0x20] sm:$0xff] %v1856_v26   ;;  %v1255_v31 = vadd.f32 %v2078_v13, %v1254_v27  ;;  %v1387_v32 = vadd.f32 %v1386_v25, %v1324_v28 }
 0x10c   : > { %2012 = vst [vmem:[%s2345_s26 + $0xa0] sm:$0xff] %v1936_v42  }
 0x10d   : > { %v1388_v36 = vadd.f32 %v1387_v32, %v1325_v30  ;;  %v2082_v37 = vpop.f32.mrb[12].mxu0  ;;  %v1256_v38 = vadd.f32 %v2079_v22, %v1255_v31  ;;  %v2396_v57 = vpop.f32.mrb[12].mxu1 }
 0x10e   : > { %v719_v41 = vpop.f32.mrb[13].mxu0  ;;  %v1329_v58 = vmul.f32 %v2082_v37, %v2082_v37  ;;  %v2399_v61 = vpop.f32.mrb[13].mxu1 }
 0x10f   : > { %v1257_v43 = vadd.f32 %v1256_v38, %v719_v41  ;;  %v1327_v44 = vmul.f32 %v719_v41, %v719_v41  ;;  %v1389_v46 = vadd.f32 %v1388_v36, %v1326_v35  ;;  %v2083_v47 = vpop.f32.mrb[14].mxu0  ;;  %v2401_v62 = vpop.f32.mrb[14].mxu1 }
 0x110   : > { %v1871_v48 = vpack.c.bf16 %v2083_v47, %v2082_v37  ;;  %v722_v51 = vpop.f32.mrb[15].mxu0  ;;  %v1330_v63 = vmul.f32 %v2083_v47, %v2083_v47  ;;  %v1951_v3 = vpack.c.bf16 %v2401_v62, %v2396_v57  ;;  %v2405_v4 = vpop.f32.mrb[15].mxu1 }
 0x111   : > { %v1390_v52 = vadd.f32 %v1389_v46, %v1327_v44  ;;  %v1866_v53 = vpack.c.bf16 %v722_v51, %v719_v41  ;;  %v1258_v54 = vadd.f32 %v1257_v43, %v722_v51  ;;  %v1328_v55 = vmul.f32 %v722_v51, %v722_v51 }
 0x112   : > { %1999 = vst [vmem:[%s2345_s26 + $0x38] sm:$0xff] %v1871_v48   ;;  %v1946_v7 = vpack.c.bf16 %v2405_v4, %v2399_v61  ;;  %2015 = vst [vmem:[%s2345_s26 + $0xb8] sm:$0xff] %v1951_v3  }
 0x113   : > { %1998 = vst [vmem:[%s2345_s26 + $0x30] sm:$0xff] %v1866_v53   ;;  %v1259_v59 = vadd.f32 %v2082_v37, %v1258_v54  ;;  %v1391_v60 = vadd.f32 %v1390_v52, %v1328_v55 }
 0x114   : > { %2014 = vst [vmem:[%s2345_s26 + $0xb0] sm:$0xff] %v1946_v7  }
 0x115   : > { %v1392_v0 = vadd.f32 %v1391_v60, %v1329_v58  ;;  %v2086_v1 = vpop.f32.mrb[16].mxu0  ;;  %v1260_v2 = vadd.f32 %v2083_v47, %v1259_v59  ;;  %v2412_v21 = vpop.f32.mrb[16].mxu1 }
 0x116   : > { %v735_v6 = vpop.f32.mrb[17].mxu0  ;;  %v1333_v22 = vmul.f32 %v2086_v1, %v2086_v1  ;;  %v2415_v25 = vpop.f32.mrb[17].mxu1 }
 0x117   : > { %v1261_v8 = vadd.f32 %v1260_v2, %v735_v6  ;;  %v1331_v11 = vmul.f32 %v735_v6, %v735_v6  ;;  %v1393_v12 = vadd.f32 %v1392_v0, %v1330_v63  ;;  %v2087_v13 = vpop.f32.mrb[18].mxu0  ;;  %v2417_v26 = vpop.f32.mrb[18].mxu1 }
 0x118   : > { %v1881_v14 = vpack.c.bf16 %v2087_v13, %v2086_v1  ;;  %v738_v15 = vpop.f32.mrb[19].mxu0  ;;  %v1334_v27 = vmul.f32 %v2087_v13, %v2087_v13  ;;  %v1961_v32 = vpack.c.bf16 %v2417_v26, %v2412_v21  ;;  %v2421_v35 = vpop.f32.mrb[19].mxu1 }
 0x119   : > { %v1394_v17 = vadd.f32 %v1393_v12, %v1331_v11  ;;  %v1876_v18 = vpack.c.bf16 %v738_v15, %v735_v6  ;;  %v1262_v19 = vadd.f32 %v1261_v8, %v738_v15  ;;  %v1332_v20 = vmul.f32 %v738_v15, %v738_v15 }
 0x11a   : > { %2001 = vst [vmem:[%s2345_s26 + $0x48] sm:$0xff] %v1881_v14   ;;  %v1956_v37 = vpack.c.bf16 %v2421_v35, %v2415_v25  ;;  %2017 = vst [vmem:[%s2345_s26 + $0xc8] sm:$0xff] %v1961_v32  }
 0x11b   : > { %2000 = vst [vmem:[%s2345_s26 + $0x40] sm:$0xff] %v1876_v18   ;;  %v1263_v23 = vadd.f32 %v2086_v1, %v1262_v19  ;;  %v1395_v24 = vadd.f32 %v1394_v17, %v1332_v20 }
 0x11c   : > { %2016 = vst [vmem:[%s2345_s26 + $0xc0] sm:$0xff] %v1956_v37  }
 0x11d   : > { %v1396_v28 = vadd.f32 %v1395_v24, %v1333_v22  ;;  %v2090_v30 = vpop.f32.mrb[20].mxu0  ;;  %v1264_v31 = vadd.f32 %v2087_v13, %v1263_v23  ;;  %v2428_v52 = vpop.f32.mrb[20].mxu1 }
 0x11e   : > { %v751_v36 = vpop.f32.mrb[21].mxu0  ;;  %v1337_v53 = vmul.f32 %v2090_v30, %v2090_v30  ;;  %v2431_v58 = vpop.f32.mrb[21].mxu1 }
 0x11f   : > { %v1265_v38 = vadd.f32 %v1264_v31, %v751_v36  ;;  %v1335_v39 = vmul.f32 %v751_v36, %v751_v36  ;;  %v1397_v41 = vadd.f32 %v1396_v28, %v1334_v27  ;;  %v2091_v42 = vpop.f32.mrb[22].mxu0  ;;  %v2433_v59 = vpop.f32.mrb[22].mxu1 }
 0x120   : > { %v1891_v43 = vpack.c.bf16 %v2091_v42, %v2090_v30  ;;  %v754_v44 = vpop.f32.mrb[23].mxu0  ;;  %v1338_v60 = vmul.f32 %v2091_v42, %v2091_v42  ;;  %v1971_v2 = vpack.c.bf16 %v2433_v59, %v2428_v52  ;;  %v2437_v3 = vpop.f32.mrb[23].mxu1 }
 0x121   : > { %v1398_v46 = vadd.f32 %v1397_v41, %v1335_v39  ;;  %v1886_v47 = vpack.c.bf16 %v754_v44, %v751_v36  ;;  %v1266_v48 = vadd.f32 %v1265_v38, %v754_v44  ;;  %v1336_v51 = vmul.f32 %v754_v44, %v754_v44 }
 0x122   : > { %2003 = vst [vmem:[%s2345_s26 + $0x58] sm:$0xff] %v1891_v43   ;;  %v1966_v7 = vpack.c.bf16 %v2437_v3, %v2431_v58  ;;  %2019 = vst [vmem:[%s2345_s26 + $0xd8] sm:$0xff] %v1971_v2  }
 0x123   : > { %2002 = vst [vmem:[%s2345_s26 + $0x50] sm:$0xff] %v1886_v47   ;;  %v1267_v54 = vadd.f32 %v2090_v30, %v1266_v48  ;;  %v1399_v55 = vadd.f32 %v1398_v46, %v1336_v51 }
 0x124   : > { %2018 = vst [vmem:[%s2345_s26 + $0xd0] sm:$0xff] %v1966_v7   ;;  %v1347_v7 = vmul.f32 %v2351_v49, %v2351_v49 }
 0x125   : > { %v1400_v63 = vadd.f32 %v1399_v55, %v1337_v53  ;;  %v2094_v0 = vpop.f32.mrb[24].mxu0  ;;  %v1268_v1 = vadd.f32 %v2091_v42, %v1267_v54  ;;  %v2444_v22 = vpop.f32.mrb[24].mxu1 }
 0x126   : > { %v767_v6 = vpop.f32.mrb[25].mxu0  ;;  %v1341_v23 = vmul.f32 %v2094_v0, %v2094_v0  ;;  %v2447_v28 = vpop.f32.mrb[25].mxu1 }
 0x127   : > { %v1269_v8 = vadd.f32 %v1268_v1, %v767_v6  ;;  %v1339_v11 = vmul.f32 %v767_v6, %v767_v6  ;;  %v1401_v12 = vadd.f32 %v1400_v63, %v1338_v60  ;;  %v2095_v13 = vpop.f32.mrb[26].mxu0  ;;  %v2449_v30 = vpop.f32.mrb[26].mxu1 }
 0x128   : > { %v1901_v14 = vpack.c.bf16 %v2095_v13, %v2094_v0  ;;  %v770_v15 = vpop.f32.mrb[27].mxu0  ;;  %v1342_v31 = vmul.f32 %v2095_v13, %v2095_v13  ;;  %v1981_v38 = vpack.c.bf16 %v2449_v30, %v2444_v22  ;;  %v2453_v39 = vpop.f32.mrb[27].mxu1 }
 0x129   : > { %v1402_v17 = vadd.f32 %v1401_v12, %v1339_v11  ;;  %v1896_v18 = vpack.c.bf16 %v770_v15, %v767_v6  ;;  %v1270_v19 = vadd.f32 %v1269_v8, %v770_v15  ;;  %v1340_v20 = vmul.f32 %v770_v15, %v770_v15 }
 0x12a   : > { %2005 = vst [vmem:[%s2345_s26 + $0x68] sm:$0xff] %v1901_v14   ;;  %v1976_v42 = vpack.c.bf16 %v2453_v39, %v2447_v28  ;;  %2021 = vst [vmem:[%s2345_s26 + $0xe8] sm:$0xff] %v1981_v38   ;;  %v1351_v38 = vmul.f32 %v2367_v9, %v2367_v9 }
 0x12b   : > { %2004 = vst [vmem:[%s2345_s26 + $0x60] sm:$0xff] %v1896_v18   ;;  %v1271_v24 = vadd.f32 %v2094_v0, %v1270_v19  ;;  %v1403_v27 = vadd.f32 %v1402_v17, %v1340_v20 }
 0x12c   : > { %2020 = vst [vmem:[%s2345_s26 + $0xe0] sm:$0xff] %v1976_v42  }
 0x12d   : > { %v1404_v32 = vadd.f32 %v1403_v27, %v1341_v23  ;;  %v2098_v36 = vpop.f32.mrb[28].mxu0  ;;  %v1272_v37 = vadd.f32 %v2095_v13, %v1271_v24  ;;  %v2460_v63 = vpop.f32.mrb[28].mxu1  ;;  %v1348_v24 = vmul.f32 %v2357_v56, %v2357_v56  ;;  %v1349_v27 = vmul.f32 %v2348_v45, %v2348_v45 }
 0x12e   : > { %v783_v41 = vpop.f32.mrb[29].mxu0  ;;  %v1345_v0 = vmul.f32 %v2098_v36, %v2098_v36  ;;  %v2463_v6 = vpop.f32.mrb[29].mxu1 }
 0x12f   : > { %v1273_v43 = vadd.f32 %v1272_v37, %v783_v41  ;;  %v1343_v44 = vmul.f32 %v783_v41, %v783_v41  ;;  %v1405_v46 = vadd.f32 %v1404_v32, %v1342_v31  ;;  %v2099_v47 = vpop.f32.mrb[30].mxu0  ;;  %v2467_v8 = vpop.f32.mrb[30].mxu1 }
 0x130   : > { %v1911_v48 = vpack.c.bf16 %v2099_v47, %v2098_v36  ;;  %v786_v51 = vpop.f32.mrb[31].mxu0  ;;  %v1346_v11 = vmul.f32 %v2099_v47, %v2099_v47  ;;  %v1991_v14 = vpack.c.bf16 %v2467_v8, %v2460_v63  ;;  %v2471_v15 = vpop.f32.mrb[31].mxu1 }
 0x131   : > { %v1406_v53 = vadd.f32 %v1405_v46, %v1343_v44  ;;  %v1906_v54 = vpack.c.bf16 %v786_v51, %v783_v41  ;;  %v1274_v55 = vadd.f32 %v1273_v43, %v786_v51  ;;  %v1344_v60 = vmul.f32 %v786_v51, %v786_v51 }
 0x132   : > { %2007 = vst [vmem:[%s2345_s26 + $0x78] sm:$0xff] %v1911_v48   ;;  %v1986_v17 = vpack.c.bf16 %v2471_v15, %v2463_v6  ;;  %2023 = vst [vmem:[%s2345_s26 + $0xf8] sm:$0xff] %v1991_v14   ;;  %v1352_v44 = vmul.f32 %v2373_v16, %v2373_v16  ;;  %v1360_v14 = vmul.f32 %v2405_v4, %v2405_v4 }
 0x133   : > { %2006 = vst [vmem:[%s2345_s26 + $0x70] sm:$0xff] %v1906_v54   ;;  %v1275_v1 = vadd.f32 %v2098_v36, %v1274_v55  ;;  %v1407_v2 = vadd.f32 %v1406_v53, %v1344_v60  ;;  %v1350_v36 = vmul.f32 %v2353_v50, %v2353_v50  ;;  %v1356_v60 = vmul.f32 %v2389_v40, %v2389_v40 }
 0x134   : > { %2022 = vst [vmem:[%s2345_s26 + $0xf0] sm:$0xff] %v1986_v17  }
 0x135   : > { %v1408_v12 = vadd.f32 %v1407_v2, %v1345_v0  ;;  %v1276_v13 = vadd.f32 %v2099_v47, %v1275_v1 }
 0x137   : > { %v1277_v18 = vadd.f32 %v1276_v13, %v2351_v49  ;;  %v1409_v19 = vadd.f32 %v1408_v12, %v1346_v11 }
 0x139   : > { %v1410_v20 = vadd.f32 %v1409_v19, %v1347_v7  ;;  %v1278_v23 = vadd.f32 %v1277_v18, %v2357_v56 }
 0x13b   : > { %v1279_v31 = vadd.f32 %v2348_v45, %v1278_v23  ;;  %v1411_v32 = vadd.f32 %v1410_v20, %v1348_v24  ;;  %v1353_v45 = vmul.f32 %v2364_v5, %v2364_v5 }
 0x13d   : > { %v1412_v37 = vadd.f32 %v1411_v32, %v1349_v27  ;;  %v1280_v49 = vadd.f32 %v2353_v50, %v1279_v31  ;;  %v1354_v50 = vmul.f32 %v2369_v10, %v2369_v10  ;;  %v1364_v31 = vmul.f32 %v2421_v35, %v2421_v35 }
 0x13f   : > { %v1281_v41 = vadd.f32 %v1280_v49, %v2367_v9  ;;  %v1413_v42 = vadd.f32 %v1412_v37, %v1350_v36  ;;  %v1355_v9 = vmul.f32 %v2383_v33, %v2383_v33 }
 0x141   : > { %v1414_v43 = vadd.f32 %v1413_v42, %v1351_v38  ;;  %v1282_v56 = vadd.f32 %v1281_v41, %v2373_v16 }
 0x143   : > { %v1283_v46 = vadd.f32 %v2364_v5, %v1282_v56  ;;  %v1415_v47 = vadd.f32 %v1414_v43, %v1352_v44  ;;  %v1357_v5 = vmul.f32 %v2380_v29, %v2380_v29  ;;  %v1368_v43 = vmul.f32 %v2437_v3, %v2437_v3 }
 0x145   : > { %v1416_v48 = vadd.f32 %v1415_v47, %v1353_v45  ;;  %v1284_v51 = vadd.f32 %v2369_v10, %v1283_v46  ;;  %v1358_v10 = vmul.f32 %v2385_v34, %v2385_v34 }
 0x147   : > { %v1285_v53 = vadd.f32 %v1284_v51, %v2383_v33  ;;  %v1417_v54 = vadd.f32 %v1416_v48, %v1354_v50  ;;  %v1359_v33 = vmul.f32 %v2399_v61, %v2399_v61  ;;  %v1372_v51 = vmul.f32 %v2453_v39, %v2453_v39 }
 0x149   : > { %v1418_v55 = vadd.f32 %v1417_v54, %v1355_v9  ;;  %v1286_v16 = vadd.f32 %v1285_v53, %v2389_v40 }
 0x14b   : > { %v1287_v0 = vadd.f32 %v2380_v29, %v1286_v16  ;;  %v1419_v1 = vadd.f32 %v1418_v55, %v1356_v60  ;;  %v1361_v29 = vmul.f32 %v2396_v57, %v2396_v57 }
 0x14d   : > { %v1420_v2 = vadd.f32 %v1419_v1, %v1357_v5  ;;  %v1288_v7 = vadd.f32 %v2385_v34, %v1287_v0  ;;  %v1362_v34 = vmul.f32 %v2401_v62, %v2401_v62  ;;  %v1376_v0 = vmul.f32 %v2471_v15, %v2471_v15 }
 0x14f   : > { %v1289_v11 = vadd.f32 %v1288_v7, %v2399_v61  ;;  %v1421_v12 = vadd.f32 %v1420_v2, %v1358_v10  ;;  %v1363_v61 = vmul.f32 %v2415_v25, %v2415_v25 }
 0x151   : > { %v1422_v13 = vadd.f32 %v1421_v12, %v1359_v33  ;;  %v1290_v40 = vadd.f32 %v1289_v11, %v2405_v4 }
 0x153   : > { %v1291_v17 = vadd.f32 %v2396_v57, %v1290_v40  ;;  %v1423_v18 = vadd.f32 %v1422_v13, %v1360_v14  ;;  %v1365_v57 = vmul.f32 %v2412_v21, %v2412_v21 }
 0x155   : > { %v1424_v19 = vadd.f32 %v1423_v18, %v1361_v29  ;;  %v1292_v20 = vadd.f32 %v2401_v62, %v1291_v17  ;;  %v1366_v62 = vmul.f32 %v2417_v26, %v2417_v26 }
 0x157   : > { %v1293_v23 = vadd.f32 %v1292_v20, %v2415_v25  ;;  %v1425_v24 = vadd.f32 %v1424_v19, %v1362_v34  ;;  %v1367_v25 = vmul.f32 %v2431_v58, %v2431_v58 }
 0x159   : > { %v1426_v27 = vadd.f32 %v1425_v24, %v1363_v61  ;;  %v1294_v4 = vadd.f32 %v1293_v23, %v2421_v35 }
 0x15b   : > { %v1295_v32 = vadd.f32 %v2412_v21, %v1294_v4  ;;  %v1427_v36 = vadd.f32 %v1426_v27, %v1364_v31  ;;  %v1369_v21 = vmul.f32 %v2428_v52, %v2428_v52 }
 0x15d   : > { %v1428_v37 = vadd.f32 %v1427_v36, %v1365_v57  ;;  %v1296_v49 = vadd.f32 %v2417_v26, %v1295_v32  ;;  %v1370_v26 = vmul.f32 %v2433_v59, %v2433_v59 }
 0x15f   : > { %v1297_v38 = vadd.f32 %v1296_v49, %v2431_v58  ;;  %v1429_v41 = vadd.f32 %v1428_v37, %v1366_v62  ;;  %v1371_v58 = vmul.f32 %v2447_v28, %v2447_v28 }
 0x161   : > { %v1430_v42 = vadd.f32 %v1429_v41, %v1367_v25  ;;  %v1298_v35 = vadd.f32 %v1297_v38, %v2437_v3 }
 0x163   : > { %v1299_v56 = vadd.f32 %v2428_v52, %v1298_v35  ;;  %v1431_v44 = vadd.f32 %v1430_v42, %v1368_v43  ;;  %v1373_v52 = vmul.f32 %v2444_v22, %v2444_v22 }
 0x165   : > { %v1432_v45 = vadd.f32 %v1431_v44, %v1369_v21  ;;  %v1300_v46 = vadd.f32 %v2433_v59, %v1299_v56  ;;  %v1374_v59 = vmul.f32 %v2449_v30, %v2449_v30 }
 0x167   : > { %v1301_v47 = vadd.f32 %v1300_v46, %v2447_v28  ;;  %v1433_v50 = vadd.f32 %v1432_v45, %v1370_v26  ;;  %v1375_v28 = vmul.f32 %v2463_v6, %v2463_v6 }
 0x169   : > { %v1434_v48 = vadd.f32 %v1433_v50, %v1371_v58  ;;  %v1302_v3 = vadd.f32 %v1301_v47, %v2453_v39 }
 0x16b   : > { %v1303_v9 = vadd.f32 %v2444_v22, %v1302_v3  ;;  %v1435_v53 = vadd.f32 %v1434_v48, %v1372_v51  ;;  %v1377_v22 = vmul.f32 %v2460_v63, %v2460_v63 }
 0x16d   : > { %v1436_v54 = vadd.f32 %v1435_v53, %v1373_v52  ;;  %v1304_v55 = vadd.f32 %v2449_v30, %v1303_v9  ;;  %v1378_v30 = vmul.f32 %v2467_v8, %v2467_v8 }
 0x16f   : > { %v1305_v16 = vadd.f32 %v1304_v55, %v2463_v6  ;;  %v1437_v60 = vadd.f32 %v1436_v54, %v1374_v59 }
 0x171   : > { %v1438_v5 = vadd.f32 %v1437_v60, %v1375_v28  ;;  %v1306_v39 = vadd.f32 %v1305_v16, %v2471_v15 }
 0x173   : > { %v1307_v1 = vadd.f32 %v2460_v63, %v1306_v39  ;;  %v1439_v10 = vadd.f32 %v1438_v5, %v1376_v0 }
 0x175   : > { %v1308_v2 = vadd.f32 %v2467_v8, %v1307_v1  ;;  %v1440_v6 = vadd.f32 %v1439_v10, %v1377_v22 }
 0x177   : > { %v1309_v7 = vrot.slane %v1308_v2, 4  ;;  %v1441_v33 = vadd.f32 %v1440_v6, %v1378_v30 }
 0x179   : > { %v1310_v11 = vadd.f32 %v1309_v7, %v1308_v2  ;;  %v1442_v12 = vrot.slane %v1441_v33, 4 }
 0x17b   : > { %v1311_v13 = vrot.slane %v1310_v11, 2  ;;  %v1443_v40 = vadd.f32 %v1442_v12, %v1441_v33 }
 0x17d   : > { %v1312_v15 = vadd.f32 %v1311_v13, %v1310_v11  ;;  %v1444_v14 = vrot.slane %v1443_v40, 2 }
 0x17f   : > { %v1313_v29 = vrot.slane %v1312_v15, 1  ;;  %v1445_v17 = vadd.f32 %v1444_v14, %v1443_v40 }
 0x181   : > { %v1446_v18 = vrot.slane %v1445_v17, 1  ;;  %v1314_v63 = vadd.f32 %v1313_v29, %v1312_v15 }
 0x183   : > { %v1447_v8 = vadd.f32 %v1446_v18, %v1445_v17 }
 0x185   : > { %v1449_v34 = vsel %vm1448_vm1, %v1314_v63, %v1447_v8 }
 0x186   : > { %1450 = vst [vmem:[%s282_s30] sm:$0x3] %v1449_v34 }
 0x187 PF: > { %s14_s14 = sadd.s32 1, %s2222_s14   ;;  %s2588_s12 = smov %s2218_s13 }
 0x188   : > { %p11_p5 = scmp.ge.s32.totalorder %s14_s14, 6   ;;  %s2589_s13 = smov %s2591_s15 }
 0x18a   :  { %13 = sbr.rel (!%p11_p5) target bundleno = 2 (0x2), region = 73 }

// kernel: generator_forward.16
= control target key start
LH: loop header
LB: loop body
LE: loop exit
PB: predicated region body
PF: predicated region fallthrough
CT: control target
= control target key end

     0   :  { %s1608_s12 = smov 0   ;;  %s1610_s13 = smov 0   ;;  %s1854_s0 = inlined_call_operand.vmem [shape: bf16[4,512,128], index: 0, kind: input, shape index: {}]   ;;  %s1855_s1 = inlined_call_operand.vmem [shape: f32[1,128], index: 1, kind: input, shape index: {}]   ;;  %s1856_s2 = inlined_call_operand.vmem [shape: f32[1,128], index: 2, kind: input, shape index: {}]   ;;  %s1857_s3 = inlined_call_operand.vmem [shape: bf16[4,512,128], index: 3, kind: output, shape index: {}]  }
   0x1   :  { %s1612_s14 = smov 0  }
   0x2 LB: > { %s32_s15 = sadd.s32 1, %s1582_s13  ;;  %p1051_p0 = scmp.ge.s32.totalorder %s1586_s14, 1  ;;  %s1586_s14 = sphi %s1612_s14, %s13_s14   ;;  %s1582_s13 = sphi %s1610_s13, %s1859_s13   ;;  %s1578_s12 = sphi %s1608_s12, %s1858_s12  }
   0x3   : > { %p34_p1 = scmp.ge.s32.totalorder %s32_s15, 4  ;;  %p188_p2 = scmp.lt.s32.totalorder %s1586_s14, 5 }
   0x5   : > { %s1861_s15 = smov (%p34_p1, %s32_s15), 0  ;;  %p189_p3 = pnand %p1051_p0, %p188_p2 }
   0x6   : > { %p233_p4 = scmp.lt.s32.totalorder (!%p189_p3), %s1578_s12, 3  ;;  %v1639_v0 = vld [vmem:[%s1855_s1] ss:$0 sm:$0xff] (!%p189_p3) }
   0x7   : > { %192 = sbr.rel (%p189_p3) target bundleno = 96 (0x60), region = 32  ;;  %v1648_v9 = vld [vmem:[%s1856_s2] ss:$0 sm:$0xff] (!%p189_p3) }
   0xe   : > { %s1863_s12 = smov (!%p233_p4, %s1578_s12), 3 }
   0xf   : > { %s1124_s16 = sshll.u32 %s1863_s12, 8 }
  0x10   : > { %s1634_s19 = scalar_lea.vmem %s1854_s0, %s1124_s16  ;;  %s1673_s26 = scalar_lea.vmem %s1857_s3, %s1124_s16 }
  0x11   : > { %v1191_v1 = vld [vmem:[%s1634_s19] sm:$0xff]   ;;  %v1478_v2 = vld [vmem:[%s1634_s19 + $0x8] sm:$0xff]   ;;  %v1479_v3 = vld [vmem:[%s1634_s19 + $0x10] sm:$0xff]  }
  0x12   : > { %v1192_v4 = vunpack.c.l.bf16 %v1191_v1  ;;  %v1193_v5 = vunpack.c.h.bf16 %v1191_v1  ;;  %v1196_v6 = vunpack.c.l.bf16 %v1478_v2  ;;  %v1197_v7 = vunpack.c.h.bf16 %v1478_v2  ;;  %v1480_v8 = vld [vmem:[%s1634_s19 + $0x18] sm:$0xff]   ;;  %v1481_v30 = vld [vmem:[%s1634_s19 + $0x20] sm:$0xff]   ;;  %v1482_v35 = vld [vmem:[%s1634_s19 + $0x28] sm:$0xff]  }
  0x13   : > { %v1200_v10 = vunpack.c.l.bf16 %v1479_v3  ;;  %v1201_v11 = vunpack.c.h.bf16 %v1479_v3  ;;  %v1204_v12 = vunpack.c.l.bf16 %v1480_v8  ;;  %v1205_v13 = vunpack.c.h.bf16 %v1480_v8  ;;  %v1483_v40 = vld [vmem:[%s1634_s19 + $0x30] sm:$0xff]   ;;  %v1484_v45 = vld [vmem:[%s1634_s19 + $0x38] sm:$0xff]   ;;  %v1485_v3 = vld [vmem:[%s1634_s19 + $0x40] sm:$0xff]  }
  0x14   : > { %v399_v14 = vmul.f32 %v1192_v4, %v1639_v0  ;;  %v400_v15 = vmul.f32 %v1193_v5, %v1639_v0  ;;  %v401_v16 = vmul.f32 %v1196_v6, %v1639_v0  ;;  %v402_v17 = vmul.f32 %v1197_v7, %v1639_v0 }
  0x15   : > { %v403_v18 = vmul.f32 %v1200_v10, %v1639_v0  ;;  %v404_v19 = vmul.f32 %v1201_v11, %v1639_v0  ;;  %v405_v20 = vmul.f32 %v1204_v12, %v1639_v0  ;;  %v406_v21 = vmul.f32 %v1205_v13, %v1639_v0  ;;  %v1486_v13 = vld [vmem:[%s1634_s19 + $0x48] sm:$0xff]  }
  0x16   : > { %v470_v22 = vadd.f32 %v1648_v9, %v399_v14  ;;  %v471_v23 = vadd.f32 %v1648_v9, %v400_v15  ;;  %v472_v24 = vadd.f32 %v1648_v9, %v401_v16  ;;  %v473_v25 = vadd.f32 %v1648_v9, %v402_v17 }
  0x17   : > { %v474_v26 = vadd.f32 %v1648_v9, %v403_v18  ;;  %v475_v27 = vadd.f32 %v1648_v9, %v404_v19  ;;  %v476_v28 = vadd.f32 %v1648_v9, %v405_v20  ;;  %v477_v29 = vadd.f32 %v1648_v9, %v406_v21  ;;  %v1487_v18 = vld [vmem:[%s1634_s19 + $0x50] sm:$0xff]  }
  0x18   : > { %v534_v31 = vmax.f32 %v470_v22, 0.0  ;;  %v535_v32 = vmax.f32 %v471_v23, 0.0  ;;  %v536_v33 = vmax.f32 %v472_v24, 0.0  ;;  %v537_v34 = vmax.f32 %v473_v25, 0.0  ;;  %v1488_v23 = vld [vmem:[%s1634_s19 + $0x58] sm:$0xff]  }
  0x19   : > { %v538_v36 = vmax.f32 %v474_v26, 0.0  ;;  %v539_v37 = vmax.f32 %v475_v27, 0.0  ;;  %v540_v38 = vmax.f32 %v476_v28, 0.0  ;;  %v541_v39 = vmax.f32 %v477_v29, 0.0 }
  0x1a   : > { %v1321_v41 = vpack.c.bf16 %v535_v32, %v534_v31  ;;  %v1326_v42 = vpack.c.bf16 %v537_v34, %v536_v33  ;;  %v1208_v43 = vunpack.c.l.bf16 %v1481_v30  ;;  %v1209_v44 = vunpack.c.h.bf16 %v1481_v30 }
  0x1b   : > { %v1331_v46 = vpack.c.bf16 %v539_v37, %v538_v36  ;;  %v1336_v47 = vpack.c.bf16 %v541_v39, %v540_v38  ;;  %v1212_v48 = vunpack.c.l.bf16 %v1482_v35  ;;  %v1213_v49 = vunpack.c.h.bf16 %v1482_v35 }
  0x1c   : > { %1322 = vst [vmem:[%s1673_s26] sm:$0xff] %v1321_v41   ;;  %1509 = vst [vmem:[%s1673_s26 + $0x8] sm:$0xff] %v1326_v42   ;;  %v407_v50 = vmul.f32 %v1208_v43, %v1639_v0  ;;  %v408_v51 = vmul.f32 %v1209_v44, %v1639_v0  ;;  %v1216_v52 = vunpack.c.l.bf16 %v1483_v40  ;;  %v1217_v53 = vunpack.c.h.bf16 %v1483_v40  ;;  %v1489_v40 = vld [vmem:[%s1634_s19 + $0x60] sm:$0xff]  }
  0x1d   : > { %1510 = vst [vmem:[%s1673_s26 + $0x10] sm:$0xff] %v1331_v46   ;;  %1511 = vst [vmem:[%s1673_s26 + $0x18] sm:$0xff] %v1336_v47   ;;  %v409_v54 = vmul.f32 %v1212_v48, %v1639_v0  ;;  %v410_v55 = vmul.f32 %v1213_v49, %v1639_v0  ;;  %v1220_v56 = vunpack.c.l.bf16 %v1484_v45  ;;  %v1221_v57 = vunpack.c.h.bf16 %v1484_v45 }
  0x1e   : > { %v478_v58 = vadd.f32 %v1648_v9, %v407_v50  ;;  %v479_v59 = vadd.f32 %v1648_v9, %v408_v51  ;;  %v411_v60 = vmul.f32 %v1216_v52, %v1639_v0  ;;  %v412_v61 = vmul.f32 %v1217_v53, %v1639_v0  ;;  %v1490_v53 = vld [vmem:[%s1634_s19 + $0x68] sm:$0xff]  }
  0x1f   : > { %v480_v62 = vadd.f32 %v1648_v9, %v409_v54  ;;  %v481_v63 = vadd.f32 %v1648_v9, %v410_v55  ;;  %v413_v1 = vmul.f32 %v1220_v56, %v1639_v0  ;;  %v414_v2 = vmul.f32 %v1221_v57, %v1639_v0 }
  0x20   : > { %v542_v4 = vmax.f32 %v478_v58, 0.0  ;;  %v543_v5 = vmax.f32 %v479_v59, 0.0  ;;  %v482_v6 = vadd.f32 %v1648_v9, %v411_v60  ;;  %v483_v7 = vadd.f32 %v1648_v9, %v412_v61  ;;  %v1491_v58 = vld [vmem:[%s1634_s19 + $0x70] sm:$0xff]  }
  0x21   : > { %v544_v8 = vmax.f32 %v480_v62, 0.0  ;;  %v545_v10 = vmax.f32 %v481_v63, 0.0  ;;  %v484_v11 = vadd.f32 %v1648_v9, %v413_v1  ;;  %v485_v12 = vadd.f32 %v1648_v9, %v414_v2  ;;  %v1492_v63 = vld [vmem:[%s1634_s19 + $0x78] sm:$0xff]  }
  0x22   : > { %v1341_v14 = vpack.c.bf16 %v543_v5, %v542_v4  ;;  %v546_v15 = vmax.f32 %v482_v6, 0.0  ;;  %v547_v16 = vmax.f32 %v483_v7, 0.0  ;;  %v1224_v17 = vunpack.c.l.bf16 %v1485_v3 }
  0x23   : > { %v1346_v19 = vpack.c.bf16 %v545_v10, %v544_v8  ;;  %v548_v20 = vmax.f32 %v484_v11, 0.0  ;;  %v549_v21 = vmax.f32 %v485_v12, 0.0  ;;  %v1225_v22 = vunpack.c.h.bf16 %v1485_v3 }
  0x24   : > { %1512 = vst [vmem:[%s1673_s26 + $0x20] sm:$0xff] %v1341_v14   ;;  %v1351_v24 = vpack.c.bf16 %v547_v16, %v546_v15  ;;  %v415_v25 = vmul.f32 %v1224_v17, %v1639_v0  ;;  %v1228_v26 = vunpack.c.l.bf16 %v1486_v13  ;;  %v1229_v27 = vunpack.c.h.bf16 %v1486_v13  ;;  %v1493_v14 = vld [vmem:[%s1634_s19 + $0x80] sm:$0xff]  }
  0x25   : > { %1513 = vst [vmem:[%s1673_s26 + $0x28] sm:$0xff] %v1346_v19   ;;  %v1356_v28 = vpack.c.bf16 %v549_v21, %v548_v20  ;;  %v416_v29 = vmul.f32 %v1225_v22, %v1639_v0  ;;  %v1232_v30 = vunpack.c.l.bf16 %v1487_v18  ;;  %v1233_v31 = vunpack.c.h.bf16 %v1487_v18 }
  0x26   : > { %1514 = vst [vmem:[%s1673_s26 + $0x30] sm:$0xff] %v1351_v24   ;;  %v486_v32 = vadd.f32 %v1648_v9, %v415_v25  ;;  %v417_v33 = vmul.f32 %v1228_v26, %v1639_v0  ;;  %v418_v34 = vmul.f32 %v1229_v27, %v1639_v0  ;;  %v1236_v35 = vunpack.c.l.bf16 %v1488_v23 }
  0x27   : > { %1515 = vst [vmem:[%s1673_s26 + $0x38] sm:$0xff] %v1356_v28   ;;  %v487_v36 = vadd.f32 %v1648_v9, %v416_v29  ;;  %v419_v37 = vmul.f32 %v1232_v30, %v1639_v0  ;;  %v420_v38 = vmul.f32 %v1233_v31, %v1639_v0  ;;  %v1237_v39 = vunpack.c.h.bf16 %v1488_v23  ;;  %v1494_v31 = vld [vmem:[%s1634_s19 + $0x88] sm:$0xff]  }
  0x28   : > { %v550_v41 = vmax.f32 %v486_v32, 0.0  ;;  %v488_v42 = vadd.f32 %v1648_v9, %v417_v33  ;;  %v489_v43 = vadd.f32 %v1648_v9, %v418_v34  ;;  %v421_v44 = vmul.f32 %v1236_v35, %v1639_v0 }
  0x29   : > { %v551_v45 = vmax.f32 %v487_v36, 0.0  ;;  %v490_v46 = vadd.f32 %v1648_v9, %v419_v37  ;;  %v491_v47 = vadd.f32 %v1648_v9, %v420_v38  ;;  %v422_v48 = vmul.f32 %v1237_v39, %v1639_v0  ;;  %v1495_v36 = vld [vmem:[%s1634_s19 + $0x90] sm:$0xff]  }
  0x2a   : > { %v552_v49 = vmax.f32 %v488_v42, 0.0  ;;  %v553_v50 = vmax.f32 %v489_v43, 0.0  ;;  %v492_v51 = vadd.f32 %v1648_v9, %v421_v44  ;;  %v1240_v52 = vunpack.c.l.bf16 %v1489_v40 }
  0x2b   : > { %v1361_v54 = vpack.c.bf16 %v551_v45, %v550_v41  ;;  %v554_v55 = vmax.f32 %v490_v46, 0.0  ;;  %v555_v56 = vmax.f32 %v491_v47, 0.0  ;;  %v493_v57 = vadd.f32 %v1648_v9, %v422_v48  ;;  %v1496_v41 = vld [vmem:[%s1634_s19 + $0x98] sm:$0xff]  }
  0x2c   : > { %v1366_v59 = vpack.c.bf16 %v553_v50, %v552_v49  ;;  %v556_v60 = vmax.f32 %v492_v51, 0.0  ;;  %v1241_v61 = vunpack.c.h.bf16 %v1489_v40  ;;  %v423_v62 = vmul.f32 %v1240_v52, %v1639_v0 }
  0x2d   : > { %1516 = vst [vmem:[%s1673_s26 + $0x40] sm:$0xff] %v1361_v54   ;;  %v1371_v1 = vpack.c.bf16 %v555_v56, %v554_v55  ;;  %v557_v2 = vmax.f32 %v493_v57, 0.0  ;;  %v1244_v3 = vunpack.c.l.bf16 %v1490_v53  ;;  %v1245_v4 = vunpack.c.h.bf16 %v1490_v53  ;;  %v1497_v54 = vld [vmem:[%s1634_s19 + $0xa0] sm:$0xff]  }
  0x2e   : > { %1517 = vst [vmem:[%s1673_s26 + $0x48] sm:$0xff] %v1366_v59   ;;  %v424_v5 = vmul.f32 %v1241_v61, %v1639_v0  ;;  %v494_v6 = vadd.f32 %v1648_v9, %v423_v62  ;;  %v1248_v7 = vunpack.c.l.bf16 %v1491_v58  ;;  %v1249_v8 = vunpack.c.h.bf16 %v1491_v58 }
  0x2f   : > { %1518 = vst [vmem:[%s1673_s26 + $0x50] sm:$0xff] %v1371_v1   ;;  %v1376_v10 = vpack.c.bf16 %v557_v2, %v556_v60  ;;  %v425_v11 = vmul.f32 %v1244_v3, %v1639_v0  ;;  %v426_v12 = vmul.f32 %v1245_v4, %v1639_v0  ;;  %v1252_v13 = vunpack.c.l.bf16 %v1492_v63  ;;  %v1498_v4 = vld [vmem:[%s1634_s19 + $0xa8] sm:$0xff]  }
  0x30   : > { %v495_v15 = vadd.f32 %v1648_v9, %v424_v5  ;;  %v558_v16 = vmax.f32 %v494_v6, 0.0  ;;  %v427_v17 = vmul.f32 %v1248_v7, %v1639_v0  ;;  %v428_v18 = vmul.f32 %v1249_v8, %v1639_v0 }
  0x31   : > { %1519 = vst [vmem:[%s1673_s26 + $0x58] sm:$0xff] %v1376_v10   ;;  %v496_v19 = vadd.f32 %v1648_v9, %v425_v11  ;;  %v497_v20 = vadd.f32 %v1648_v9, %v426_v12  ;;  %v1253_v21 = vunpack.c.h.bf16 %v1492_v63  ;;  %v429_v22 = vmul.f32 %v1252_v13, %v1639_v0 }
  0x32   : > { %v559_v23 = vmax.f32 %v495_v15, 0.0  ;;  %v498_v24 = vadd.f32 %v1648_v9, %v427_v17  ;;  %v499_v25 = vadd.f32 %v1648_v9, %v428_v18  ;;  %v1256_v26 = vunpack.c.l.bf16 %v1493_v14 }
  0x33   : > { %v560_v27 = vmax.f32 %v496_v19, 0.0  ;;  %v561_v28 = vmax.f32 %v497_v20, 0.0  ;;  %v430_v29 = vmul.f32 %v1253_v21, %v1639_v0  ;;  %v500_v30 = vadd.f32 %v1648_v9, %v429_v22  ;;  %v1500_v19 = vld [vmem:[%s1634_s19 + $0xb8] sm:$0xff]  }
  0x34   : > { %v1381_v32 = vpack.c.bf16 %v559_v23, %v558_v16  ;;  %v562_v33 = vmax.f32 %v498_v24, 0.0  ;;  %v563_v34 = vmax.f32 %v499_v25, 0.0  ;;  %v1257_v35 = vunpack.c.h.bf16 %v1493_v14  ;;  %v1499_v14 = vld [vmem:[%s1634_s19 + $0xb0] sm:$0xff]  }
  0x35   : > { %v1386_v37 = vpack.c.bf16 %v561_v28, %v560_v27  ;;  %v501_v38 = vadd.f32 %v1648_v9, %v430_v29  ;;  %v564_v39 = vmax.f32 %v500_v30, 0.0  ;;  %v431_v40 = vmul.f32 %v1256_v26, %v1639_v0 }
  0x36   : > { %1520 = vst [vmem:[%s1673_s26 + $0x60] sm:$0xff] %v1381_v32   ;;  %v1391_v42 = vpack.c.bf16 %v563_v34, %v562_v33  ;;  %v432_v43 = vmul.f32 %v1257_v35, %v1639_v0  ;;  %v1260_v44 = vunpack.c.l.bf16 %v1494_v31  ;;  %v1261_v45 = vunpack.c.h.bf16 %v1494_v31  ;;  %v1501_v32 = vld [vmem:[%s1634_s19 + $0xc0] sm:$0xff]  }
  0x37   : > { %1521 = vst [vmem:[%s1673_s26 + $0x68] sm:$0xff] %v1386_v37   ;;  %v565_v46 = vmax.f32 %v501_v38, 0.0  ;;  %v502_v47 = vadd.f32 %v1648_v9, %v431_v40  ;;  %v1264_v48 = vunpack.c.l.bf16 %v1495_v36  ;;  %v1265_v49 = vunpack.c.h.bf16 %v1495_v36 }
  0x38   : > { %1522 = vst [vmem:[%s1673_s26 + $0x70] sm:$0xff] %v1391_v42   ;;  %v503_v50 = vadd.f32 %v1648_v9, %v432_v43  ;;  %v433_v51 = vmul.f32 %v1260_v44, %v1639_v0  ;;  %v434_v52 = vmul.f32 %v1261_v45, %v1639_v0  ;;  %v1268_v53 = vunpack.c.l.bf16 %v1496_v41  ;;  %v1502_v45 = vld [vmem:[%s1634_s19 + $0xc8] sm:$0xff]  }
  0x39   : > { %v1396_v55 = vpack.c.bf16 %v565_v46, %v564_v39  ;;  %v566_v56 = vmax.f32 %v502_v47, 0.0  ;;  %v435_v57 = vmul.f32 %v1264_v48, %v1639_v0  ;;  %v436_v58 = vmul.f32 %v1265_v49, %v1639_v0 }
  0x3a   : > { %v567_v59 = vmax.f32 %v503_v50, 0.0  ;;  %v504_v60 = vadd.f32 %v1648_v9, %v433_v51  ;;  %v505_v61 = vadd.f32 %v1648_v9, %v434_v52  ;;  %v1269_v62 = vunpack.c.h.bf16 %v1496_v41 }
  0x3b   : > { %1523 = vst [vmem:[%s1673_s26 + $0x78] sm:$0xff] %v1396_v55   ;;  %v506_v63 = vadd.f32 %v1648_v9, %v435_v57  ;;  %v507_v1 = vadd.f32 %v1648_v9, %v436_v58  ;;  %v437_v2 = vmul.f32 %v1268_v53, %v1639_v0  ;;  %v1272_v3 = vunpack.c.l.bf16 %v1497_v54 }
  0x3c   : > { %v1401_v5 = vpack.c.bf16 %v567_v59, %v566_v56  ;;  %v568_v6 = vmax.f32 %v504_v60, 0.0  ;;  %v569_v7 = vmax.f32 %v505_v61, 0.0  ;;  %v438_v8 = vmul.f32 %v1269_v62, %v1639_v0 }
  0x3d   : > { %v570_v10 = vmax.f32 %v506_v63, 0.0  ;;  %v571_v11 = vmax.f32 %v507_v1, 0.0  ;;  %v508_v12 = vadd.f32 %v1648_v9, %v437_v2  ;;  %v1273_v13 = vunpack.c.h.bf16 %v1497_v54  ;;  %v1503_v54 = vld [vmem:[%s1634_s19 + $0xd0] sm:$0xff]   ;;  %v1504_v63 = vld [vmem:[%s1634_s19 + $0xd8] sm:$0xff]  }
  0x3e   : > { %1524 = vst [vmem:[%s1673_s26 + $0x80] sm:$0xff] %v1401_v5   ;;  %v1406_v15 = vpack.c.bf16 %v569_v7, %v568_v6  ;;  %v509_v16 = vadd.f32 %v1648_v9, %v438_v8  ;;  %v439_v17 = vmul.f32 %v1272_v3, %v1639_v0  ;;  %v1276_v18 = vunpack.c.l.bf16 %v1498_v4 }
  0x3f   : > { %v1411_v20 = vpack.c.bf16 %v571_v11, %v570_v10  ;;  %v572_v21 = vmax.f32 %v508_v12, 0.0  ;;  %v440_v22 = vmul.f32 %v1273_v13, %v1639_v0  ;;  %v1277_v23 = vunpack.c.h.bf16 %v1498_v4  ;;  %v1505_v10 = vld [vmem:[%s1634_s19 + $0xe0] sm:$0xff]  }
  0x40   : > { %1525 = vst [vmem:[%s1673_s26 + $0x88] sm:$0xff] %v1406_v15   ;;  %v573_v24 = vmax.f32 %v509_v16, 0.0  ;;  %v510_v25 = vadd.f32 %v1648_v9, %v439_v17  ;;  %v441_v26 = vmul.f32 %v1276_v18, %v1639_v0  ;;  %v1280_v27 = vunpack.c.l.bf16 %v1499_v14 }
  0x41   : > { %1526 = vst [vmem:[%s1673_s26 + $0x90] sm:$0xff] %v1411_v20   ;;  %v511_v28 = vadd.f32 %v1648_v9, %v440_v22  ;;  %v442_v29 = vmul.f32 %v1277_v23, %v1639_v0  ;;  %v1281_v30 = vunpack.c.h.bf16 %v1499_v14  ;;  %v1284_v31 = vunpack.c.l.bf16 %v1500_v19  ;;  %v1506_v23 = vld [vmem:[%s1634_s19 + $0xe8] sm:$0xff]  }
  0x42   : > { %v1416_v33 = vpack.c.bf16 %v573_v24, %v572_v21  ;;  %v574_v34 = vmax.f32 %v510_v25, 0.0  ;;  %v512_v35 = vadd.f32 %v1648_v9, %v441_v26  ;;  %v443_v36 = vmul.f32 %v1280_v27, %v1639_v0 }
  0x43   : > { %v575_v37 = vmax.f32 %v511_v28, 0.0  ;;  %v513_v38 = vadd.f32 %v1648_v9, %v442_v29  ;;  %v444_v39 = vmul.f32 %v1281_v30, %v1639_v0  ;;  %v1285_v40 = vunpack.c.h.bf16 %v1500_v19 }
  0x44   : > { %1527 = vst [vmem:[%s1673_s26 + $0x98] sm:$0xff] %v1416_v33   ;;  %v576_v41 = vmax.f32 %v512_v35, 0.0  ;;  %v514_v42 = vadd.f32 %v1648_v9, %v443_v36  ;;  %v445_v43 = vmul.f32 %v1284_v31, %v1639_v0  ;;  %v1288_v44 = vunpack.c.l.bf16 %v1501_v32 }
  0x45   : > { %v1421_v46 = vpack.c.bf16 %v575_v37, %v574_v34  ;;  %v577_v47 = vmax.f32 %v513_v38, 0.0  ;;  %v515_v48 = vadd.f32 %v1648_v9, %v444_v39  ;;  %v446_v49 = vmul.f32 %v1285_v40, %v1639_v0 }
  0x46   : > { %v578_v50 = vmax.f32 %v514_v42, 0.0  ;;  %v516_v51 = vadd.f32 %v1648_v9, %v445_v43  ;;  %v1289_v52 = vunpack.c.h.bf16 %v1501_v32  ;;  %v447_v53 = vmul.f32 %v1288_v44, %v1639_v0  ;;  %v1507_v32 = vld [vmem:[%s1634_s19 + $0xf0] sm:$0xff]  }
  0x47   : > { %1528 = vst [vmem:[%s1673_s26 + $0xa0] sm:$0xff] %v1421_v46   ;;  %v1426_v55 = vpack.c.bf16 %v577_v47, %v576_v41  ;;  %v579_v56 = vmax.f32 %v515_v48, 0.0  ;;  %v517_v57 = vadd.f32 %v1648_v9, %v446_v49  ;;  %v1292_v58 = vunpack.c.l.bf16 %v1502_v45  ;;  %v1508_v41 = vld [vmem:[%s1634_s19 + $0xf8] sm:$0xff]  }
  0x48   : > { %v580_v59 = vmax.f32 %v516_v51, 0.0  ;;  %v448_v60 = vmul.f32 %v1289_v52, %v1639_v0  ;;  %v518_v61 = vadd.f32 %v1648_v9, %v447_v53  ;;  %v1293_v62 = vunpack.c.h.bf16 %v1502_v45 }
  0x49   : > { %1529 = vst [vmem:[%s1673_s26 + $0xa8] sm:$0xff] %v1426_v55   ;;  %v1431_v1 = vpack.c.bf16 %v579_v56, %v578_v50  ;;  %v581_v2 = vmax.f32 %v517_v57, 0.0  ;;  %v449_v3 = vmul.f32 %v1292_v58, %v1639_v0  ;;  %v1296_v4 = vunpack.c.l.bf16 %v1503_v54 }
  0x4a   : > { %v519_v5 = vadd.f32 %v1648_v9, %v448_v60  ;;  %v582_v6 = vmax.f32 %v518_v61, 0.0  ;;  %v450_v7 = vmul.f32 %v1293_v62, %v1639_v0  ;;  %v1297_v8 = vunpack.c.h.bf16 %v1503_v54 }
  0x4b   : > { %1530 = vst [vmem:[%s1673_s26 + $0xb0] sm:$0xff] %v1431_v1   ;;  %v1436_v11 = vpack.c.bf16 %v581_v2, %v580_v59  ;;  %v520_v12 = vadd.f32 %v1648_v9, %v449_v3  ;;  %v451_v13 = vmul.f32 %v1296_v4, %v1639_v0  ;;  %v1300_v14 = vunpack.c.l.bf16 %v1504_v63 }
  0x4c   : > { %v583_v15 = vmax.f32 %v519_v5, 0.0  ;;  %v521_v16 = vadd.f32 %v1648_v9, %v450_v7  ;;  %v452_v17 = vmul.f32 %v1297_v8, %v1639_v0  ;;  %v1301_v18 = vunpack.c.h.bf16 %v1504_v63 }
  0x4d   : > { %1531 = vst [vmem:[%s1673_s26 + $0xb8] sm:$0xff] %v1436_v11   ;;  %v584_v19 = vmax.f32 %v520_v12, 0.0  ;;  %v522_v20 = vadd.f32 %v1648_v9, %v451_v13  ;;  %v453_v21 = vmul.f32 %v1300_v14, %v1639_v0  ;;  %v1304_v22 = vunpack.c.l.bf16 %v1505_v10 }
  0x4e   : > { %v1441_v24 = vpack.c.bf16 %v583_v15, %v582_v6  ;;  %v585_v25 = vmax.f32 %v521_v16, 0.0  ;;  %v523_v26 = vadd.f32 %v1648_v9, %v452_v17  ;;  %v454_v27 = vmul.f32 %v1301_v18, %v1639_v0 }
  0x4f   : > { %v586_v28 = vmax.f32 %v522_v20, 0.0  ;;  %v524_v29 = vadd.f32 %v1648_v9, %v453_v21  ;;  %v1305_v30 = vunpack.c.h.bf16 %v1505_v10  ;;  %v455_v31 = vmul.f32 %v1304_v22, %v1639_v0 }
  0x50   : > { %1532 = vst [vmem:[%s1673_s26 + $0xc0] sm:$0xff] %v1441_v24   ;;  %v1446_v33 = vpack.c.bf16 %v585_v25, %v584_v19  ;;  %v587_v34 = vmax.f32 %v523_v26, 0.0  ;;  %v525_v35 = vadd.f32 %v1648_v9, %v454_v27  ;;  %v1308_v36 = vunpack.c.l.bf16 %v1506_v23 }
  0x51   : > { %v588_v37 = vmax.f32 %v524_v29, 0.0  ;;  %v456_v38 = vmul.f32 %v1305_v30, %v1639_v0  ;;  %v526_v39 = vadd.f32 %v1648_v9, %v455_v31  ;;  %v1309_v40 = vunpack.c.h.bf16 %v1506_v23 }
  0x52   : > { %1533 = vst [vmem:[%s1673_s26 + $0xc8] sm:$0xff] %v1446_v33   ;;  %v1451_v42 = vpack.c.bf16 %v587_v34, %v586_v28  ;;  %v589_v43 = vmax.f32 %v525_v35, 0.0  ;;  %v457_v44 = vmul.f32 %v1308_v36, %v1639_v0  ;;  %v1312_v45 = vunpack.c.l.bf16 %v1507_v32 }
  0x53   : > { %v527_v46 = vadd.f32 %v1648_v9, %v456_v38  ;;  %v590_v47 = vmax.f32 %v526_v39, 0.0  ;;  %v458_v48 = vmul.f32 %v1309_v40, %v1639_v0  ;;  %v1313_v49 = vunpack.c.h.bf16 %v1507_v32 }
  0x54   : > { %1534 = vst [vmem:[%s1673_s26 + $0xd0] sm:$0xff] %v1451_v42   ;;  %v1456_v50 = vpack.c.bf16 %v589_v43, %v588_v37  ;;  %v528_v51 = vadd.f32 %v1648_v9, %v457_v44  ;;  %v459_v52 = vmul.f32 %v1312_v45, %v1639_v0  ;;  %v1316_v53 = vunpack.c.l.bf16 %v1508_v41 }
  0x55   : > { %v591_v54 = vmax.f32 %v527_v46, 0.0  ;;  %v529_v55 = vadd.f32 %v1648_v9, %v458_v48  ;;  %v460_v56 = vmul.f32 %v1313_v49, %v1639_v0  ;;  %v1317_v57 = vunpack.c.h.bf16 %v1508_v41 }
  0x56   : > { %1535 = vst [vmem:[%s1673_s26 + $0xd8] sm:$0xff] %v1456_v50   ;;  %v592_v58 = vmax.f32 %v528_v51, 0.0  ;;  %v530_v59 = vadd.f32 %v1648_v9, %v459_v52  ;;  %v461_v60 = vmul.f32 %v1316_v53, %v1639_v0 }
  0x57   : > { %v1461_v61 = vpack.c.bf16 %v591_v54, %v590_v47  ;;  %v593_v62 = vmax.f32 %v529_v55, 0.0  ;;  %v531_v63 = vadd.f32 %v1648_v9, %v460_v56  ;;  %v462_v1 = vmul.f32 %v1317_v57, %v1639_v0 }
  0x58   : > { %v594_v2 = vmax.f32 %v530_v59, 0.0  ;;  %v532_v3 = vadd.f32 %v1648_v9, %v461_v60 }
  0x59   : > { %1536 = vst [vmem:[%s1673_s26 + $0xe0] sm:$0xff] %v1461_v61   ;;  %v1466_v4 = vpack.c.bf16 %v593_v62, %v592_v58  ;;  %v595_v5 = vmax.f32 %v531_v63, 0.0  ;;  %v533_v6 = vadd.f32 %v1648_v9, %v462_v1 }
  0x5a   : > { %v596_v7 = vmax.f32 %v532_v3, 0.0 }
  0x5b   : > { %1537 = vst [vmem:[%s1673_s26 + $0xe8] sm:$0xff] %v1466_v4   ;;  %v1471_v8 = vpack.c.bf16 %v595_v5, %v594_v2  ;;  %v597_v10 = vmax.f32 %v533_v6, 0.0 }
  0x5d   : > { %1538 = vst [vmem:[%s1673_s26 + $0xf0] sm:$0xff] %v1471_v8   ;;  %v1476_v11 = vpack.c.bf16 %v597_v10, %v596_v7 }
  0x5f   : > { %1539 = vst [vmem:[%s1673_s26 + $0xf8] sm:$0xff] %v1476_v11  }
  0x60 PF: > { %s13_s14 = sadd.s32 1, %s1586_s14   ;;  %s1858_s12 = smov %s1582_s13 }
  0x61   : > { %p10_p5 = scmp.ge.s32.totalorder %s13_s14, 6   ;;  %s1859_s13 = smov %s1861_s15 }
  0x63   :  { %12 = sbr.rel (!%p10_p5) target bundleno = 2 (0x2), region = 68 }

// kernel: generator_forward.17
= control target key start
LH: loop header
LB: loop body
LE: loop exit
PB: predicated region body
PF: predicated region fallthrough
CT: control target
= control target key end

     0   :  { %s6845_s9 = smov 0   ;;  %s6847_s10 = smov 0   ;;  %s7277_s0 = inlined_call_operand.vmem [shape: bf16[4,2048,32], index: 0, kind: input, shape index: {}]   ;;  %s7278_s1 = inlined_call_operand.vmem [shape: bf16[4,32,128], index: 1, kind: input, shape index: {}]   ;;  %s7279_s2 = inlined_call_operand.vmem [shape: bf16[4,2048,128], index: 2, kind: output, shape index: {}]  }
   0x1   :  { %s6849_s11 = smov 0  }
   0x2 LB: > { %s24_s12 = sadd.s32 1, %s6824_s10  ;;  %p4197_p0 = scmp.ge.s32.totalorder %s6828_s11, 1  ;;  %s6828_s11 = sphi %s6849_s11, %s12_s11   ;;  %s6824_s10 = sphi %s6847_s10, %s7281_s10   ;;  %s6820_s9 = sphi %s6845_s9, %s7280_s9  }
   0x3   : > { %p26_p1 = scmp.ge.s32.totalorder %s24_s12, 4  ;;  %p143_p2 = scmp.lt.s32.totalorder %s6828_s11, 5 }
   0x5   : > { %s7283_s12 = smov (%p26_p1, %s24_s12), 0  ;;  %p144_p3 = pnand %p4197_p0, %p143_p2 }
   0x6   : > { %p179_p4 = scmp.lt.s32.totalorder (!%p144_p3), %s6820_s9, 3  ;;  %vm1116_vm0 = vcmask (!%p144_p3), 261120  }
   0x7   : > { %147 = sbr.rel (%p144_p3) target bundleno = 510 (0x1fe), region = 28 }
   0xe   : > { %s7285_s9 = smov (!%p179_p4, %s6820_s9), 3 }
   0xf   : > { %s4720_s13 = sshll.u32 %s7285_s9, 10  ;;  %s4721_s14 = sshll.u32 %s7285_s9, 4 }
  0x10   : > { %s6872_s17 = scalar_lea.vmem %s7277_s0, %s4720_s13  ;;  %s192_s20 = scalar_lea.vmem %s7278_s1, %s4721_s14 }
  0x11   : > { %v6164_v0 = vld [vmem:[%s192_s20] sm:$0xff]   ;;  %v6165_v1 = vld [vmem:[%s192_s20 + $0x8] sm:$0xff]   ;;  %v6170_v6 = vld [vmem:[%s6872_s17 + $0x10] sm:$0xff]   ;;  %s7118_s23 = scalar_lea.vmem %s7279_s2, %s4720_s13 }
  0x12   : > { %5876 = vmatprep.subr.bf16.mxu0 %v6164_v0  ;;  %6136 = vmatprep.subr.bf16.mxu1 %v6164_v0  ;;  %v6166_v2 = vld [vmem:[%s6872_s17] sm:$0xff]   ;;  %v6168_v4 = vld [vmem:[%s6872_s17 + $0x8] sm:$0xff]   ;;  %v6171_v7 = vld [vmem:[%s6872_s17 + $0x210] sm:$0xff]  }
  0x13   : > { %5877 = vmatpush3.bf16.msra.mxu0 %v6164_v0  ;;  %6138 = vmatpush3.bf16.msra.mxu1 %v6164_v0  ;;  %v6167_v3 = vld [vmem:[%s6872_s17 + $0x200] sm:$0xff]   ;;  %v6169_v5 = vld [vmem:[%s6872_s17 + $0x208] sm:$0xff]   ;;  %v6172_v8 = vld [vmem:[%s6872_s17 + $0x18] sm:$0xff]  }
  0x14   : > { %5878 = vmatprep.subr.bf16.mxu0 %v6165_v1  ;;  %6137 = vmatprep.subr.bf16.mxu1 %v6165_v1  ;;  %v6173_v9 = vld [vmem:[%s6872_s17 + $0x218] sm:$0xff]   ;;  %v6174_v10 = vld [vmem:[%s6872_s17 + $0x20] sm:$0xff]   ;;  %v6176_v12 = vld [vmem:[%s6872_s17 + $0x28] sm:$0xff]  }
  0x15   : > { %5880 = vmatprep.mubr.msk.bf16.mxu0 %vm1116_vm0, %v6166_v2  ;;  %6008 = vmatprep.mubr.msk.bf16.mxu1 %vm1116_vm0, %v6167_v3  ;;  %v6175_v11 = vld [vmem:[%s6872_s17 + $0x220] sm:$0xff]   ;;  %v6177_v13 = vld [vmem:[%s6872_s17 + $0x228] sm:$0xff]   ;;  %v6178_v14 = vld [vmem:[%s6872_s17 + $0x30] sm:$0xff]  }
  0x16   : > { %v6179_v15 = vld [vmem:[%s6872_s17 + $0x230] sm:$0xff]   ;;  %v6180_v16 = vld [vmem:[%s6872_s17 + $0x38] sm:$0xff]   ;;  %v6182_v18 = vld [vmem:[%s6872_s17 + $0x40] sm:$0xff]  }
  0x17   : > { %5879 = vmatpush3.bf16.msra.mxu0 %v6165_v1  ;;  %6139 = vmatpush3.bf16.msra.mxu1 %v6165_v1  ;;  %v6181_v17 = vld [vmem:[%s6872_s17 + $0x238] sm:$0xff]   ;;  %v6183_v19 = vld [vmem:[%s6872_s17 + $0x240] sm:$0xff]   ;;  %v6184_v20 = vld [vmem:[%s6872_s17 + $0x48] sm:$0xff]  }
  0x18   : > { %v6185_v21 = vld [vmem:[%s6872_s17 + $0x248] sm:$0xff]   ;;  %v6186_v22 = vld [vmem:[%s6872_s17 + $0x50] sm:$0xff]   ;;  %v6188_v24 = vld [vmem:[%s6872_s17 + $0x58] sm:$0xff]  }
  0x19   : > { %v6187_v23 = vld [vmem:[%s6872_s17 + $0x250] sm:$0xff]   ;;  %v6189_v25 = vld [vmem:[%s6872_s17 + $0x258] sm:$0xff]   ;;  %v6190_v26 = vld [vmem:[%s6872_s17 + $0x60] sm:$0xff]  }
  0x1a   : > { %5881 = vmatmul.mubr.msk.bf16.vlgmr.msra.gmra.mrb[0].mxu0 %vm1116_vm0, %v6168_v4  ;;  %6009 = vmatmul.mubr.msk.bf16.vlgmr.msra.gmra.mrb[0].mxu1 %vm1116_vm0, %v6169_v5  ;;  %v6191_v27 = vld [vmem:[%s6872_s17 + $0x260] sm:$0xff]   ;;  %v6192_v28 = vld [vmem:[%s6872_s17 + $0x68] sm:$0xff]   ;;  %v6194_v30 = vld [vmem:[%s6872_s17 + $0x70] sm:$0xff]  }
  0x1b   : > { %5884 = vmatprep.mubr.msk.bf16.mxu0 %vm1116_vm0, %v6170_v6  ;;  %6012 = vmatprep.mubr.msk.bf16.mxu1 %vm1116_vm0, %v6171_v7  ;;  %v6193_v29 = vld [vmem:[%s6872_s17 + $0x268] sm:$0xff]   ;;  %v6195_v31 = vld [vmem:[%s6872_s17 + $0x270] sm:$0xff]   ;;  %v6196_v32 = vld [vmem:[%s6872_s17 + $0x78] sm:$0xff]  }
  0x1c   : > { %v6197_v33 = vld [vmem:[%s6872_s17 + $0x278] sm:$0xff]   ;;  %v6198_v34 = vld [vmem:[%s6872_s17 + $0x80] sm:$0xff]   ;;  %v6200_v36 = vld [vmem:[%s6872_s17 + $0x88] sm:$0xff]  }
  0x1d   : > { %v6199_v35 = vld [vmem:[%s6872_s17 + $0x280] sm:$0xff]   ;;  %v6201_v37 = vld [vmem:[%s6872_s17 + $0x288] sm:$0xff]   ;;  %v6202_v38 = vld [vmem:[%s6872_s17 + $0x90] sm:$0xff]  }
  0x1e   : > { %v6203_v39 = vld [vmem:[%s6872_s17 + $0x290] sm:$0xff]   ;;  %v6204_v40 = vld [vmem:[%s6872_s17 + $0x98] sm:$0xff]   ;;  %v6206_v42 = vld [vmem:[%s6872_s17 + $0xa0] sm:$0xff]  }
  0x1f   : > { %v6205_v41 = vld [vmem:[%s6872_s17 + $0x298] sm:$0xff]   ;;  %v6207_v43 = vld [vmem:[%s6872_s17 + $0x2a0] sm:$0xff]   ;;  %v6208_v44 = vld [vmem:[%s6872_s17 + $0xa8] sm:$0xff]  }
  0x20   : > { %v6209_v45 = vld [vmem:[%s6872_s17 + $0x2a8] sm:$0xff]   ;;  %v6210_v46 = vld [vmem:[%s6872_s17 + $0xb0] sm:$0xff]   ;;  %v6212_v48 = vld [vmem:[%s6872_s17 + $0xb8] sm:$0xff]  }
  0x21   : > { %v6211_v47 = vld [vmem:[%s6872_s17 + $0x2b0] sm:$0xff]   ;;  %v6213_v49 = vld [vmem:[%s6872_s17 + $0x2b8] sm:$0xff]   ;;  %v6214_v50 = vld [vmem:[%s6872_s17 + $0xc0] sm:$0xff]  }
  0x22   : > { %5885 = vmatmul.mubr.msk.bf16.gmra.mrb[4].mxu0 %vm1116_vm0, %v6172_v8  ;;  %6013 = vmatmul.mubr.msk.bf16.gmra.mrb[4].mxu1 %vm1116_vm0, %v6173_v9  ;;  %v6215_v51 = vld [vmem:[%s6872_s17 + $0x2c0] sm:$0xff]   ;;  %v6216_v52 = vld [vmem:[%s6872_s17 + $0xc8] sm:$0xff]   ;;  %v6218_v54 = vld [vmem:[%s6872_s17 + $0xd0] sm:$0xff]  }
  0x23   : > { %5888 = vmatprep.mubr.msk.bf16.mxu0 %vm1116_vm0, %v6174_v10  ;;  %6016 = vmatprep.mubr.msk.bf16.mxu1 %vm1116_vm0, %v6175_v11  ;;  %v6217_v53 = vld [vmem:[%s6872_s17 + $0x2c8] sm:$0xff]   ;;  %v6219_v55 = vld [vmem:[%s6872_s17 + $0x2d0] sm:$0xff]   ;;  %v6220_v56 = vld [vmem:[%s6872_s17 + $0xd8] sm:$0xff]  }
  0x24   : > { %v6221_v57 = vld [vmem:[%s6872_s17 + $0x2d8] sm:$0xff]   ;;  %v6222_v58 = vld [vmem:[%s6872_s17 + $0xe0] sm:$0xff]   ;;  %v6224_v60 = vld [vmem:[%s6872_s17 + $0xe8] sm:$0xff]  }
  0x25   : > { %v6223_v59 = vld [vmem:[%s6872_s17 + $0x2e0] sm:$0xff]   ;;  %v6225_v61 = vld [vmem:[%s6872_s17 + $0x2e8] sm:$0xff]   ;;  %v6226_v62 = vld [vmem:[%s6872_s17 + $0xf0] sm:$0xff]  }
  0x26   : > { %v6227_v63 = vld [vmem:[%s6872_s17 + $0x2f0] sm:$0xff]   ;;  %v6228_v0 = vld [vmem:[%s6872_s17 + $0xf8] sm:$0xff]   ;;  %v6230_v2 = vld [vmem:[%s6872_s17 + $0x100] sm:$0xff]  }
  0x27   : > { %v6229_v1 = vld [vmem:[%s6872_s17 + $0x2f8] sm:$0xff]   ;;  %v6231_v3 = vld [vmem:[%s6872_s17 + $0x300] sm:$0xff]   ;;  %v6232_v4 = vld [vmem:[%s6872_s17 + $0x108] sm:$0xff]  }
  0x28   : > { %v6233_v5 = vld [vmem:[%s6872_s17 + $0x308] sm:$0xff]   ;;  %v6234_v6 = vld [vmem:[%s6872_s17 + $0x110] sm:$0xff]   ;;  %v6236_v8 = vld [vmem:[%s6872_s17 + $0x118] sm:$0xff]  }
  0x29   : > { %v6235_v7 = vld [vmem:[%s6872_s17 + $0x310] sm:$0xff]   ;;  %v6237_v9 = vld [vmem:[%s6872_s17 + $0x318] sm:$0xff]   ;;  %v6238_v10 = vld [vmem:[%s6872_s17 + $0x120] sm:$0xff]  }
  0x2a   : > { %5889 = vmatmul.mubr.msk.bf16.gmra.mrb[8].mxu0 %vm1116_vm0, %v6176_v12  ;;  %6017 = vmatmul.mubr.msk.bf16.gmra.mrb[8].mxu1 %vm1116_vm0, %v6177_v13  ;;  %v6239_v11 = vld [vmem:[%s6872_s17 + $0x320] sm:$0xff]   ;;  %v6240_v12 = vld [vmem:[%s6872_s17 + $0x128] sm:$0xff]  }
  0x2b   : > { %5892 = vmatprep.mubr.msk.bf16.mxu0 %vm1116_vm0, %v6178_v14  ;;  %6020 = vmatprep.mubr.msk.bf16.mxu1 %vm1116_vm0, %v6179_v15  ;;  %v6241_v13 = vld [vmem:[%s6872_s17 + $0x328] sm:$0xff]   ;;  %v6242_v14 = vld [vmem:[%s6872_s17 + $0x130] sm:$0xff]  }
  0x2c   : > { %v6243_v15 = vld [vmem:[%s6872_s17 + $0x330] sm:$0xff]  }
  0x32   : > { %5893 = vmatmul.mubr.msk.bf16.gmra.mrb[12].mxu0 %vm1116_vm0, %v6180_v16  ;;  %6021 = vmatmul.mubr.msk.bf16.gmra.mrb[12].mxu1 %vm1116_vm0, %v6181_v17  ;;  %v6244_v16 = vld [vmem:[%s6872_s17 + $0x138] sm:$0xff]  }
  0x33   : > { %5896 = vmatprep.mubr.msk.bf16.mxu0 %vm1116_vm0, %v6182_v18  ;;  %6024 = vmatprep.mubr.msk.bf16.mxu1 %vm1116_vm0, %v6183_v19  ;;  %v6245_v17 = vld [vmem:[%s6872_s17 + $0x338] sm:$0xff]   ;;  %v6246_v18 = vld [vmem:[%s6872_s17 + $0x140] sm:$0xff]  }
  0x34   : > { %v6247_v19 = vld [vmem:[%s6872_s17 + $0x340] sm:$0xff]  }
  0x3a   : > { %5897 = vmatmul.mubr.msk.bf16.gmra.mrb[16].mxu0 %vm1116_vm0, %v6184_v20  ;;  %6025 = vmatmul.mubr.msk.bf16.gmra.mrb[16].mxu1 %vm1116_vm0, %v6185_v21  ;;  %v6248_v20 = vld [vmem:[%s6872_s17 + $0x148] sm:$0xff]  }
  0x3b   : > { %5900 = vmatprep.mubr.msk.bf16.mxu0 %vm1116_vm0, %v6186_v22  ;;  %6028 = vmatprep.mubr.msk.bf16.mxu1 %vm1116_vm0, %v6187_v23  ;;  %v6249_v21 = vld [vmem:[%s6872_s17 + $0x348] sm:$0xff]   ;;  %v6250_v22 = vld [vmem:[%s6872_s17 + $0x150] sm:$0xff]  }
  0x3c   : > { %v6251_v23 = vld [vmem:[%s6872_s17 + $0x350] sm:$0xff]  }
  0x42   : > { %5901 = vmatmul.mubr.msk.bf16.gmra.mrb[20].mxu0 %vm1116_vm0, %v6188_v24  ;;  %6029 = vmatmul.mubr.msk.bf16.gmra.mrb[20].mxu1 %vm1116_vm0, %v6189_v25  ;;  %v6252_v24 = vld [vmem:[%s6872_s17 + $0x158] sm:$0xff]  }
  0x43   : > { %5904 = vmatprep.mubr.msk.bf16.mxu0 %vm1116_vm0, %v6190_v26  ;;  %6032 = vmatprep.mubr.msk.bf16.mxu1 %vm1116_vm0, %v6191_v27  ;;  %v6253_v25 = vld [vmem:[%s6872_s17 + $0x358] sm:$0xff]   ;;  %v6254_v26 = vld [vmem:[%s6872_s17 + $0x160] sm:$0xff]  }
  0x44   : > { %v6255_v27 = vld [vmem:[%s6872_s17 + $0x360] sm:$0xff]  }
  0x4a   : > { %5905 = vmatmul.mubr.msk.bf16.gmra.mrb[24].mxu0 %vm1116_vm0, %v6192_v28  ;;  %6033 = vmatmul.mubr.msk.bf16.gmra.mrb[24].mxu1 %vm1116_vm0, %v6193_v29  ;;  %v6256_v28 = vld [vmem:[%s6872_s17 + $0x168] sm:$0xff]  }
  0x4b   : > { %5908 = vmatprep.mubr.msk.bf16.mxu0 %vm1116_vm0, %v6194_v30  ;;  %6036 = vmatprep.mubr.msk.bf16.mxu1 %vm1116_vm0, %v6195_v31  ;;  %v6257_v29 = vld [vmem:[%s6872_s17 + $0x368] sm:$0xff]   ;;  %v6258_v30 = vld [vmem:[%s6872_s17 + $0x170] sm:$0xff]  }
  0x4c   : > { %v6259_v31 = vld [vmem:[%s6872_s17 + $0x370] sm:$0xff]  }
  0x52   : > { %5909 = vmatmul.mubr.msk.bf16.gmra.mrb[28].mxu0 %vm1116_vm0, %v6196_v32  ;;  %6037 = vmatmul.mubr.msk.bf16.gmra.mrb[28].mxu1 %vm1116_vm0, %v6197_v33  ;;  %v6260_v32 = vld [vmem:[%s6872_s17 + $0x178] sm:$0xff]  }
  0x53   : > { %5912 = vmatprep.mubr.msk.bf16.mxu0 %vm1116_vm0, %v6198_v34  ;;  %6040 = vmatprep.mubr.msk.bf16.mxu1 %vm1116_vm0, %v6199_v35  ;;  %v6261_v33 = vld [vmem:[%s6872_s17 + $0x378] sm:$0xff]   ;;  %v6262_v34 = vld [vmem:[%s6872_s17 + $0x180] sm:$0xff]  }
  0x54   : > { %v6263_v35 = vld [vmem:[%s6872_s17 + $0x380] sm:$0xff]  }
  0x5a   : > { %5913 = vmatmul.mubr.msk.bf16.gmra.mrb[32].mxu0 %vm1116_vm0, %v6200_v36  ;;  %6041 = vmatmul.mubr.msk.bf16.gmra.mrb[32].mxu1 %vm1116_vm0, %v6201_v37  ;;  %v6264_v36 = vld [vmem:[%s6872_s17 + $0x188] sm:$0xff]  }
  0x5b   : > { %5916 = vmatprep.mubr.msk.bf16.mxu0 %vm1116_vm0, %v6202_v38  ;;  %6044 = vmatprep.mubr.msk.bf16.mxu1 %vm1116_vm0, %v6203_v39  ;;  %v6265_v37 = vld [vmem:[%s6872_s17 + $0x388] sm:$0xff]   ;;  %v6266_v38 = vld [vmem:[%s6872_s17 + $0x190] sm:$0xff]  }
  0x5c   : > { %v6267_v39 = vld [vmem:[%s6872_s17 + $0x390] sm:$0xff]  }
  0x62   : > { %5917 = vmatmul.mubr.msk.bf16.gmra.mrb[36].mxu0 %vm1116_vm0, %v6204_v40  ;;  %6045 = vmatmul.mubr.msk.bf16.gmra.mrb[36].mxu1 %vm1116_vm0, %v6205_v41  ;;  %v6268_v40 = vld [vmem:[%s6872_s17 + $0x198] sm:$0xff]  }
  0x63   : > { %5920 = vmatprep.mubr.msk.bf16.mxu0 %vm1116_vm0, %v6206_v42  ;;  %6048 = vmatprep.mubr.msk.bf16.mxu1 %vm1116_vm0, %v6207_v43  ;;  %v6269_v41 = vld [vmem:[%s6872_s17 + $0x398] sm:$0xff]   ;;  %v6270_v42 = vld [vmem:[%s6872_s17 + $0x1a0] sm:$0xff]  }
  0x64   : > { %v6271_v43 = vld [vmem:[%s6872_s17 + $0x3a0] sm:$0xff]  }
  0x6a   : > { %5921 = vmatmul.mubr.msk.bf16.gmra.mrb[40].mxu0 %vm1116_vm0, %v6208_v44  ;;  %6049 = vmatmul.mubr.msk.bf16.gmra.mrb[40].mxu1 %vm1116_vm0, %v6209_v45  ;;  %v6272_v44 = vld [vmem:[%s6872_s17 + $0x1a8] sm:$0xff]  }
  0x6b   : > { %5924 = vmatprep.mubr.msk.bf16.mxu0 %vm1116_vm0, %v6210_v46  ;;  %6052 = vmatprep.mubr.msk.bf16.mxu1 %vm1116_vm0, %v6211_v47  ;;  %v6273_v45 = vld [vmem:[%s6872_s17 + $0x3a8] sm:$0xff]   ;;  %v6274_v46 = vld [vmem:[%s6872_s17 + $0x1b0] sm:$0xff]  }
  0x6c   : > { %v6275_v47 = vld [vmem:[%s6872_s17 + $0x3b0] sm:$0xff]  }
  0x72   : > { %5925 = vmatmul.mubr.msk.bf16.gmra.mrb[44].mxu0 %vm1116_vm0, %v6212_v48  ;;  %6053 = vmatmul.mubr.msk.bf16.gmra.mrb[44].mxu1 %vm1116_vm0, %v6213_v49 }
  0x73   : > { %5928 = vmatprep.mubr.msk.bf16.mxu0 %vm1116_vm0, %v6214_v50  ;;  %6056 = vmatprep.mubr.msk.bf16.mxu1 %vm1116_vm0, %v6215_v51 }
  0x7a   : > { %5929 = vmatmul.mubr.msk.bf16.gmra.mrb[48].mxu0 %vm1116_vm0, %v6216_v52  ;;  %6057 = vmatmul.mubr.msk.bf16.gmra.mrb[48].mxu1 %vm1116_vm0, %v6217_v53  ;;  %v6276_v52 = vld [vmem:[%s6872_s17 + $0x1b8] sm:$0xff]  }
  0x7b   : > { %5932 = vmatprep.mubr.msk.bf16.mxu0 %vm1116_vm0, %v6218_v54  ;;  %6060 = vmatprep.mubr.msk.bf16.mxu1 %vm1116_vm0, %v6219_v55  ;;  %v6277_v53 = vld [vmem:[%s6872_s17 + $0x3b8] sm:$0xff]  }
  0x82   : > { %5933 = vmatmul.mubr.msk.bf16.gmra.mrb[52].mxu0 %vm1116_vm0, %v6220_v56  ;;  %6061 = vmatmul.mubr.msk.bf16.gmra.mrb[52].mxu1 %vm1116_vm0, %v6221_v57  ;;  %v6278_v56 = vld [vmem:[%s6872_s17 + $0x1c0] sm:$0xff]  }
  0x83   : > { %5936 = vmatprep.mubr.msk.bf16.mxu0 %vm1116_vm0, %v6222_v58  ;;  %6064 = vmatprep.mubr.msk.bf16.mxu1 %vm1116_vm0, %v6223_v59  ;;  %v6279_v57 = vld [vmem:[%s6872_s17 + $0x3c0] sm:$0xff]  }
  0x8a   : > { %5937 = vmatmul.mubr.msk.bf16.gmra.mrb[56].mxu0 %vm1116_vm0, %v6224_v60  ;;  %6065 = vmatmul.mubr.msk.bf16.gmra.mrb[56].mxu1 %vm1116_vm0, %v6225_v61 }
  0x8b   : > { %5940 = vmatprep.mubr.msk.bf16.mxu0 %vm1116_vm0, %v6226_v62  ;;  %6068 = vmatprep.mubr.msk.bf16.mxu1 %vm1116_vm0, %v6227_v63 }
  0x92   : > { %5941 = vmatmul.mubr.msk.bf16.gmra.mrb[60].mxu0 %vm1116_vm0, %v6228_v0  ;;  %6069 = vmatmul.mubr.msk.bf16.gmra.mrb[60].mxu1 %vm1116_vm0, %v6229_v1  ;;  %v6280_v0 = vld [vmem:[%s6872_s17 + $0x1c8] sm:$0xff]  }
  0x93   : > { %5944 = vmatprep.mubr.msk.bf16.mxu0 %vm1116_vm0, %v6230_v2  ;;  %6072 = vmatprep.mubr.msk.bf16.mxu1 %vm1116_vm0, %v6231_v3  ;;  %v6281_v1 = vld [vmem:[%s6872_s17 + $0x3c8] sm:$0xff]  }
  0x9a   : > { %5945 = vmatmul.mubr.msk.bf16.gmra.mrb[64].mxu0 %vm1116_vm0, %v6232_v4  ;;  %6073 = vmatmul.mubr.msk.bf16.gmra.mrb[64].mxu1 %vm1116_vm0, %v6233_v5  ;;  %v6282_v4 = vld [vmem:[%s6872_s17 + $0x1d0] sm:$0xff]  }
  0x9b   : > { %5948 = vmatprep.mubr.msk.bf16.mxu0 %vm1116_vm0, %v6234_v6  ;;  %6076 = vmatprep.mubr.msk.bf16.mxu1 %vm1116_vm0, %v6235_v7  ;;  %v6283_v5 = vld [vmem:[%s6872_s17 + $0x3d0] sm:$0xff]  }
  0xa2   : > { %5949 = vmatmul.mubr.msk.bf16.gmra.mrb[68].mxu0 %vm1116_vm0, %v6236_v8  ;;  %6077 = vmatmul.mubr.msk.bf16.gmra.mrb[68].mxu1 %vm1116_vm0, %v6237_v9 }
  0xa3   : > { %5952 = vmatprep.mubr.msk.bf16.mxu0 %vm1116_vm0, %v6238_v10  ;;  %6080 = vmatprep.mubr.msk.bf16.mxu1 %vm1116_vm0, %v6239_v11 }
  0xaa   : > { %5953 = vmatmul.mubr.msk.bf16.gmra.mrb[72].mxu0 %vm1116_vm0, %v6240_v12  ;;  %6081 = vmatmul.mubr.msk.bf16.gmra.mrb[72].mxu1 %vm1116_vm0, %v6241_v13 }
  0xab   : > { %5956 = vmatprep.mubr.msk.bf16.mxu0 %vm1116_vm0, %v6242_v14  ;;  %6084 = vmatprep.mubr.msk.bf16.mxu1 %vm1116_vm0, %v6243_v15 }
  0xb2   : > { %5957 = vmatmul.mubr.msk.bf16.gmra.mrb[76].mxu0 %vm1116_vm0, %v6244_v16  ;;  %6085 = vmatmul.mubr.msk.bf16.gmra.mrb[76].mxu1 %vm1116_vm0, %v6245_v17 }
  0xb3   : > { %5960 = vmatprep.mubr.msk.bf16.mxu0 %vm1116_vm0, %v6246_v18  ;;  %6088 = vmatprep.mubr.msk.bf16.mxu1 %vm1116_vm0, %v6247_v19 }
  0xba   : > { %5961 = vmatmul.mubr.msk.bf16.gmra.mrb[80].mxu0 %vm1116_vm0, %v6248_v20  ;;  %6089 = vmatmul.mubr.msk.bf16.gmra.mrb[80].mxu1 %vm1116_vm0, %v6249_v21  ;;  %v6284_v21 = vld [vmem:[%s6872_s17 + $0x1d8] sm:$0xff]  }
  0xbb   : > { %5964 = vmatprep.mubr.msk.bf16.mxu0 %vm1116_vm0, %v6250_v22  ;;  %6092 = vmatprep.mubr.msk.bf16.mxu1 %vm1116_vm0, %v6251_v23  ;;  %v6285_v22 = vld [vmem:[%s6872_s17 + $0x3d8] sm:$0xff]  }
  0xc2   : > { %5965 = vmatmul.mubr.msk.bf16.gmra.mrb[84].mxu0 %vm1116_vm0, %v6252_v24  ;;  %6093 = vmatmul.mubr.msk.bf16.gmra.mrb[84].mxu1 %vm1116_vm0, %v6253_v25 }
  0xc3   : > { %5968 = vmatprep.mubr.msk.bf16.mxu0 %vm1116_vm0, %v6254_v26  ;;  %6096 = vmatprep.mubr.msk.bf16.mxu1 %vm1116_vm0, %v6255_v27  ;;  %v6286_v27 = vld [vmem:[%s6872_s17 + $0x1e0] sm:$0xff]  }
  0xca   : > { %5969 = vmatmul.mubr.msk.bf16.gmra.mrb[88].mxu0 %vm1116_vm0, %v6256_v28  ;;  %6097 = vmatmul.mubr.msk.bf16.gmra.mrb[88].mxu1 %vm1116_vm0, %v6257_v29  ;;  %v6287_v28 = vld [vmem:[%s6872_s17 + $0x3e0] sm:$0xff]  }
  0xcb   : > { %5972 = vmatprep.mubr.msk.bf16.mxu0 %vm1116_vm0, %v6258_v30  ;;  %6100 = vmatprep.mubr.msk.bf16.mxu1 %vm1116_vm0, %v6259_v31 }
  0xd2   : > { %5973 = vmatmul.mubr.msk.bf16.gmra.mrb[92].mxu0 %vm1116_vm0, %v6260_v32  ;;  %6101 = vmatmul.mubr.msk.bf16.gmra.mrb[92].mxu1 %vm1116_vm0, %v6261_v33 }
  0xd3   : > { %5976 = vmatprep.mubr.msk.bf16.mxu0 %vm1116_vm0, %v6262_v34  ;;  %6104 = vmatprep.mubr.msk.bf16.mxu1 %vm1116_vm0, %v6263_v35 }
  0xda   : > { %5977 = vmatmul.mubr.msk.bf16.gmra.mrb[96].mxu0 %vm1116_vm0, %v6264_v36  ;;  %6105 = vmatmul.mubr.msk.bf16.gmra.mrb[96].mxu1 %vm1116_vm0, %v6265_v37 }
  0xdb   : > { %5980 = vmatprep.mubr.msk.bf16.mxu0 %vm1116_vm0, %v6266_v38  ;;  %6108 = vmatprep.mubr.msk.bf16.mxu1 %vm1116_vm0, %v6267_v39 }
  0xe2   : > { %5981 = vmatmul.mubr.msk.bf16.gmra.mrb[100].mxu0 %vm1116_vm0, %v6268_v40  ;;  %6109 = vmatmul.mubr.msk.bf16.gmra.mrb[100].mxu1 %vm1116_vm0, %v6269_v41 }
  0xe3   : > { %5984 = vmatprep.mubr.msk.bf16.mxu0 %vm1116_vm0, %v6270_v42  ;;  %6112 = vmatprep.mubr.msk.bf16.mxu1 %vm1116_vm0, %v6271_v43 }
  0xea   : > { %5985 = vmatmul.mubr.msk.bf16.gmra.mrb[104].mxu0 %vm1116_vm0, %v6272_v44  ;;  %6113 = vmatmul.mubr.msk.bf16.gmra.mrb[104].mxu1 %vm1116_vm0, %v6273_v45  ;;  %v6288_v45 = vld [vmem:[%s6872_s17 + $0x1e8] sm:$0xff]  }
  0xeb   : > { %5988 = vmatprep.mubr.msk.bf16.mxu0 %vm1116_vm0, %v6274_v46  ;;  %6116 = vmatprep.mubr.msk.bf16.mxu1 %vm1116_vm0, %v6275_v47  ;;  %v6289_v46 = vld [vmem:[%s6872_s17 + $0x3e8] sm:$0xff]  }
  0xed   : > { %v5882_v48 = vpop.f32.mrb[0].mxu0  ;;  %v6010_v49 = vpop.f32.mrb[0].mxu1 }
  0xee   : > { %6294 = vtanh.f32 %v5882_v48  ;;  %v1535_v50 = vpop.f32.mrb[1].mxu0  ;;  %v2047_v51 = vpop.f32.mrb[1].mxu1 }
  0xef   : > { %6296 = vtanh.f32 %v6010_v49  ;;  %v5883_v54 = vpop.f32.mrb[2].mxu0  ;;  %v6011_v55 = vpop.f32.mrb[2].mxu1 }
  0xf0   : > { %6298 = vtanh.f32 %v1535_v50  ;;  %v1538_v58 = vpop.f32.mrb[3].mxu0  ;;  %v2050_v59 = vpop.f32.mrb[3].mxu1 }
  0xf1   : > { %6300 = vtanh.f32 %v2047_v51  ;;  %v6290_v51 = vld [vmem:[%s6872_s17 + $0x1f0] sm:$0xff]  }
  0xf2   : > { %6302 = vtanh.f32 %v5883_v54  ;;  %5989 = vmatmul.mubr.msk.bf16.gmra.mrb[108].mxu0 %vm1116_vm0, %v6276_v52  ;;  %6117 = vmatmul.mubr.msk.bf16.gmra.mrb[108].mxu1 %vm1116_vm0, %v6277_v53  ;;  %v6291_v52 = vld [vmem:[%s6872_s17 + $0x3f0] sm:$0xff]  }
  0xf3   : > { %6304 = vtanh.f32 %v6011_v55  ;;  %5992 = vmatprep.mubr.msk.bf16.mxu0 %vm1116_vm0, %v6278_v56  ;;  %6120 = vmatprep.mubr.msk.bf16.mxu1 %vm1116_vm0, %v6279_v57 }
  0xf4   : > { %6306 = vtanh.f32 %v1538_v58 }
  0xf5   : > { %6308 = vtanh.f32 %v2050_v59  ;;  %v5886_v60 = vpop.f32.mrb[4].mxu0  ;;  %v6014_v61 = vpop.f32.mrb[4].mxu1 }
  0xf6   : > { %6310 = vtanh.f32 %v5886_v60  ;;  %v1551_v62 = vpop.f32.mrb[5].mxu0  ;;  %v2063_v63 = vpop.f32.mrb[5].mxu1 }
  0xf7   : > { %6312 = vtanh.f32 %v6014_v61  ;;  %v5887_v2 = vpop.f32.mrb[6].mxu0  ;;  %v6015_v3 = vpop.f32.mrb[6].mxu1 }
  0xf8   : > { %v6295_v6 = vpop.eup %6294  ;;  %6314 = vtanh.f32 %v1551_v62  ;;  %v1554_v7 = vpop.f32.mrb[7].mxu0 }
  0xf9   : > { %v2066_v8 = vpop.f32.mrb[7].mxu1  ;;  %v6297_v9 = vpop.eup %6296  ;;  %6316 = vtanh.f32 %v2063_v63 }
  0xfa   : > { %v6299_v10 = vpop.eup %6298  ;;  %6318 = vtanh.f32 %v5887_v2  ;;  %5993 = vmatmul.mubr.msk.bf16.gmra.mrb[112].mxu0 %vm1116_vm0, %v6280_v0  ;;  %6121 = vmatmul.mubr.msk.bf16.gmra.mrb[112].mxu1 %vm1116_vm0, %v6281_v1 }
  0xfb   : > { %v6301_v11 = vpop.eup %6300  ;;  %6320 = vtanh.f32 %v6015_v3  ;;  %5996 = vmatprep.mubr.msk.bf16.mxu0 %vm1116_vm0, %v6282_v4  ;;  %6124 = vmatprep.mubr.msk.bf16.mxu1 %vm1116_vm0, %v6283_v5  ;;  %v6292_v5 = vld [vmem:[%s6872_s17 + $0x1f8] sm:$0xff]  }
  0xfc   : > { %v6303_v12 = vpop.eup %6302  ;;  %6322 = vtanh.f32 %v1554_v7 }
  0xfd   : > { %v6305_v13 = vpop.eup %6304  ;;  %v4987_v14 = vpack.c.bf16 %v6303_v12, %v6295_v6  ;;  %6324 = vtanh.f32 %v2066_v8  ;;  %v5890_v15 = vpop.f32.mrb[8].mxu0  ;;  %v6293_v6 = vld [vmem:[%s6872_s17 + $0x3f8] sm:$0xff]  }
  0xfe   : > { %v6018_v16 = vpop.f32.mrb[8].mxu1  ;;  %v6307_v17 = vpop.eup %6306  ;;  %v5307_v18 = vpack.c.bf16 %v6305_v13, %v6297_v9  ;;  %6326 = vtanh.f32 %v5890_v15 }
  0xff   : > { %v1567_v19 = vpop.f32.mrb[9].mxu0  ;;  %v2079_v20 = vpop.f32.mrb[9].mxu1  ;;  %5619 = vst [vmem:[%s7118_s23 + $0x8] sm:$0xff] %v4987_v14   ;;  %v4982_v24 = vpack.c.bf16 %v6307_v17, %v6299_v10  ;;  %6328 = vtanh.f32 %v6018_v16 }
 0x100   : > { %v6309_v23 = vpop.eup %6308  ;;  %v5891_v25 = vpop.f32.mrb[10].mxu0  ;;  %5683 = vst [vmem:[%s7118_s23 + $0x208] sm:$0xff] %v5307_v18   ;;  %6330 = vtanh.f32 %v1567_v19 }
 0x101   : > { %v6019_v26 = vpop.f32.mrb[10].mxu1  ;;  %v6311_v29 = vpop.eup %6310  ;;  %v5302_v30 = vpack.c.bf16 %v6309_v23, %v6301_v11  ;;  %4983 = vst [vmem:[%s7118_s23] sm:$0xff] %v4982_v24   ;;  %6332 = vtanh.f32 %v2079_v20 }
 0x102   : > { %v1570_v31 = vpop.f32.mrb[11].mxu0  ;;  %v2082_v32 = vpop.f32.mrb[11].mxu1  ;;  %6334 = vtanh.f32 %v5891_v25  ;;  %5997 = vmatmul.mubr.msk.bf16.gmra.mrb[116].mxu0 %vm1116_vm0, %v6284_v21  ;;  %6125 = vmatmul.mubr.msk.bf16.gmra.mrb[116].mxu1 %vm1116_vm0, %v6285_v22 }
 0x103   : > { %v6313_v33 = vpop.eup %6312  ;;  %5682 = vst [vmem:[%s7118_s23 + $0x200] sm:$0xff] %v5302_v30   ;;  %6336 = vtanh.f32 %v6019_v26  ;;  %6000 = vmatprep.mubr.msk.bf16.mxu0 %vm1116_vm0, %v6286_v27  ;;  %6128 = vmatprep.mubr.msk.bf16.mxu1 %vm1116_vm0, %v6287_v28 }
 0x104   : > { %v6315_v34 = vpop.eup %6314  ;;  %6338 = vtanh.f32 %v1570_v31 }
 0x105   : > { %v6317_v35 = vpop.eup %6316  ;;  %6340 = vtanh.f32 %v2082_v32  ;;  %v5894_v39 = vpop.f32.mrb[12].mxu0 }
 0x106   : > { %v6319_v36 = vpop.eup %6318  ;;  %v6022_v40 = vpop.f32.mrb[12].mxu1  ;;  %6342 = vtanh.f32 %v5894_v39 }
 0x107   : > { %v6321_v37 = vpop.eup %6320  ;;  %v4997_v38 = vpack.c.bf16 %v6319_v36, %v6311_v29  ;;  %v1583_v43 = vpop.f32.mrb[13].mxu0  ;;  %6344 = vtanh.f32 %v6022_v40 }
 0x108   : > { %v6323_v41 = vpop.eup %6322  ;;  %v5317_v42 = vpack.c.bf16 %v6321_v37, %v6313_v33  ;;  %v2095_v44 = vpop.f32.mrb[13].mxu1  ;;  %6346 = vtanh.f32 %v1583_v43 }
 0x109   : > { %v6325_v47 = vpop.eup %6324  ;;  %5621 = vst [vmem:[%s7118_s23 + $0x18] sm:$0xff] %v4997_v38   ;;  %v4992_v48 = vpack.c.bf16 %v6323_v41, %v6315_v34  ;;  %v5895_v49 = vpop.f32.mrb[14].mxu0  ;;  %6348 = vtanh.f32 %v2095_v44 }
 0x10a   : > { %v6023_v50 = vpop.f32.mrb[14].mxu1  ;;  %v6327_v53 = vpop.eup %6326  ;;  %5685 = vst [vmem:[%s7118_s23 + $0x218] sm:$0xff] %v5317_v42   ;;  %v5312_v54 = vpack.c.bf16 %v6325_v47, %v6317_v35  ;;  %6350 = vtanh.f32 %v5895_v49  ;;  %6001 = vmatmul.mubr.msk.bf16.gmra.mrb[120].mxu0 %vm1116_vm0, %v6288_v45  ;;  %6129 = vmatmul.mubr.msk.bf16.gmra.mrb[120].mxu1 %vm1116_vm0, %v6289_v46 }
 0x10b   : > { %v1586_v55 = vpop.f32.mrb[15].mxu0  ;;  %v2098_v56 = vpop.f32.mrb[15].mxu1  ;;  %5620 = vst [vmem:[%s7118_s23 + $0x10] sm:$0xff] %v4992_v48   ;;  %6352 = vtanh.f32 %v6023_v50  ;;  %6004 = vmatprep.mubr.msk.bf16.mxu0 %vm1116_vm0, %v6290_v51  ;;  %6132 = vmatprep.mubr.msk.bf16.mxu1 %vm1116_vm0, %v6291_v52 }
 0x10c   : > { %v6329_v57 = vpop.eup %6328  ;;  %5684 = vst [vmem:[%s7118_s23 + $0x210] sm:$0xff] %v5312_v54   ;;  %6354 = vtanh.f32 %v1586_v55 }
 0x10d   : > { %v6331_v58 = vpop.eup %6330  ;;  %6356 = vtanh.f32 %v2098_v56  ;;  %v5898_v63 = vpop.f32.mrb[16].mxu0 }
 0x10e   : > { %v6333_v59 = vpop.eup %6332  ;;  %v6026_v0 = vpop.f32.mrb[16].mxu1  ;;  %6358 = vtanh.f32 %v5898_v63 }
 0x10f   : > { %v6335_v60 = vpop.eup %6334  ;;  %v1599_v3 = vpop.f32.mrb[17].mxu0  ;;  %6360 = vtanh.f32 %v6026_v0 }
 0x110   : > { %v6337_v61 = vpop.eup %6336  ;;  %v5007_v62 = vpack.c.bf16 %v6335_v60, %v6327_v53  ;;  %v2111_v4 = vpop.f32.mrb[17].mxu1  ;;  %6362 = vtanh.f32 %v1599_v3 }
 0x111   : > { %v6339_v1 = vpop.eup %6338  ;;  %v5327_v2 = vpack.c.bf16 %v6337_v61, %v6329_v57  ;;  %v5899_v9 = vpop.f32.mrb[18].mxu0  ;;  %6364 = vtanh.f32 %v2111_v4 }
 0x112   : > { %v6341_v7 = vpop.eup %6340  ;;  %5623 = vst [vmem:[%s7118_s23 + $0x28] sm:$0xff] %v5007_v62   ;;  %v5002_v8 = vpack.c.bf16 %v6339_v1, %v6331_v58  ;;  %v6027_v10 = vpop.f32.mrb[18].mxu1  ;;  %6366 = vtanh.f32 %v5899_v9  ;;  %6005 = vmatmul.mubr.msk.bf16.gmra.mrb[124].mxu0 %vm1116_vm0, %v6292_v5  ;;  %6133 = vmatmul.mubr.msk.bf16.gmra.mrb[124].mxu1 %vm1116_vm0, %v6293_v6 }
 0x113   : > { %v6343_v11 = vpop.eup %6342  ;;  %5687 = vst [vmem:[%s7118_s23 + $0x228] sm:$0xff] %v5327_v2   ;;  %v5322_v12 = vpack.c.bf16 %v6341_v7, %v6333_v59  ;;  %v1602_v13 = vpop.f32.mrb[19].mxu0  ;;  %6368 = vtanh.f32 %v6027_v10 }
 0x114   : > { %v2114_v14 = vpop.f32.mrb[19].mxu1  ;;  %v6345_v15 = vpop.eup %6344  ;;  %5622 = vst [vmem:[%s7118_s23 + $0x20] sm:$0xff] %v5002_v8   ;;  %6370 = vtanh.f32 %v1602_v13 }
 0x115   : > { %v6347_v16 = vpop.eup %6346  ;;  %5686 = vst [vmem:[%s7118_s23 + $0x220] sm:$0xff] %v5322_v12   ;;  %6372 = vtanh.f32 %v2114_v14  ;;  %v5902_v21 = vpop.f32.mrb[20].mxu0 }
 0x116   : > { %v6349_v17 = vpop.eup %6348  ;;  %v6030_v22 = vpop.f32.mrb[20].mxu1  ;;  %6374 = vtanh.f32 %v5902_v21 }
 0x117   : > { %v6351_v18 = vpop.eup %6350  ;;  %v1615_v25 = vpop.f32.mrb[21].mxu0  ;;  %6376 = vtanh.f32 %v6030_v22 }
 0x118   : > { %v6353_v19 = vpop.eup %6352  ;;  %v5017_v20 = vpack.c.bf16 %v6351_v18, %v6343_v11  ;;  %v2127_v26 = vpop.f32.mrb[21].mxu1  ;;  %6378 = vtanh.f32 %v1615_v25 }
 0x119   : > { %v6355_v23 = vpop.eup %6354  ;;  %v5337_v24 = vpack.c.bf16 %v6353_v19, %v6345_v15  ;;  %v5903_v29 = vpop.f32.mrb[22].mxu0  ;;  %6380 = vtanh.f32 %v2127_v26 }
 0x11a   : > { %v6357_v27 = vpop.eup %6356  ;;  %5625 = vst [vmem:[%s7118_s23 + $0x38] sm:$0xff] %v5017_v20   ;;  %v5012_v28 = vpack.c.bf16 %v6355_v23, %v6347_v16  ;;  %v6031_v30 = vpop.f32.mrb[22].mxu1  ;;  %6382 = vtanh.f32 %v5903_v29 }
 0x11b   : > { %v6359_v31 = vpop.eup %6358  ;;  %5689 = vst [vmem:[%s7118_s23 + $0x238] sm:$0xff] %v5337_v24   ;;  %v5332_v32 = vpack.c.bf16 %v6357_v27, %v6349_v17  ;;  %v1618_v33 = vpop.f32.mrb[23].mxu0  ;;  %6384 = vtanh.f32 %v6031_v30 }
 0x11c   : > { %v2130_v34 = vpop.f32.mrb[23].mxu1  ;;  %v6361_v35 = vpop.eup %6360  ;;  %5624 = vst [vmem:[%s7118_s23 + $0x30] sm:$0xff] %v5012_v28   ;;  %6386 = vtanh.f32 %v1618_v33 }
 0x11d   : > { %v6363_v36 = vpop.eup %6362  ;;  %5688 = vst [vmem:[%s7118_s23 + $0x230] sm:$0xff] %v5332_v32   ;;  %6388 = vtanh.f32 %v2130_v34  ;;  %v5906_v41 = vpop.f32.mrb[24].mxu0 }
 0x11e   : > { %v6365_v37 = vpop.eup %6364  ;;  %v6034_v42 = vpop.f32.mrb[24].mxu1  ;;  %6390 = vtanh.f32 %v5906_v41 }
 0x11f   : > { %v6367_v38 = vpop.eup %6366  ;;  %v1631_v45 = vpop.f32.mrb[25].mxu0  ;;  %6392 = vtanh.f32 %v6034_v42 }
 0x120   : > { %v6369_v39 = vpop.eup %6368  ;;  %v5027_v40 = vpack.c.bf16 %v6367_v38, %v6359_v31  ;;  %v2143_v46 = vpop.f32.mrb[25].mxu1  ;;  %6394 = vtanh.f32 %v1631_v45 }
 0x121   : > { %v6371_v43 = vpop.eup %6370  ;;  %v5347_v44 = vpack.c.bf16 %v6369_v39, %v6361_v35  ;;  %v5907_v49 = vpop.f32.mrb[26].mxu0  ;;  %6396 = vtanh.f32 %v2143_v46 }
 0x122   : > { %v6373_v47 = vpop.eup %6372  ;;  %5627 = vst [vmem:[%s7118_s23 + $0x48] sm:$0xff] %v5027_v40   ;;  %v5022_v48 = vpack.c.bf16 %v6371_v43, %v6363_v36  ;;  %v6035_v50 = vpop.f32.mrb[26].mxu1  ;;  %6398 = vtanh.f32 %v5907_v49 }
 0x123   : > { %v6375_v51 = vpop.eup %6374  ;;  %5691 = vst [vmem:[%s7118_s23 + $0x248] sm:$0xff] %v5347_v44   ;;  %v5342_v52 = vpack.c.bf16 %v6373_v47, %v6365_v37  ;;  %v1634_v53 = vpop.f32.mrb[27].mxu0  ;;  %6400 = vtanh.f32 %v6035_v50 }
 0x124   : > { %v2146_v54 = vpop.f32.mrb[27].mxu1  ;;  %v6377_v55 = vpop.eup %6376  ;;  %5626 = vst [vmem:[%s7118_s23 + $0x40] sm:$0xff] %v5022_v48   ;;  %6402 = vtanh.f32 %v1634_v53 }
 0x125   : > { %v6379_v56 = vpop.eup %6378  ;;  %5690 = vst [vmem:[%s7118_s23 + $0x240] sm:$0xff] %v5342_v52   ;;  %6404 = vtanh.f32 %v2146_v54  ;;  %v5910_v61 = vpop.f32.mrb[28].mxu0 }
 0x126   : > { %v6381_v57 = vpop.eup %6380  ;;  %v6038_v62 = vpop.f32.mrb[28].mxu1  ;;  %6406 = vtanh.f32 %v5910_v61 }
 0x127   : > { %v6383_v58 = vpop.eup %6382  ;;  %v1647_v1 = vpop.f32.mrb[29].mxu0  ;;  %6408 = vtanh.f32 %v6038_v62 }
 0x128   : > { %v6385_v59 = vpop.eup %6384  ;;  %v5037_v60 = vpack.c.bf16 %v6383_v58, %v6375_v51  ;;  %v2159_v2 = vpop.f32.mrb[29].mxu1  ;;  %6410 = vtanh.f32 %v1647_v1 }
 0x129   : > { %v6387_v63 = vpop.eup %6386  ;;  %v5357_v0 = vpack.c.bf16 %v6385_v59, %v6377_v55  ;;  %v5911_v5 = vpop.f32.mrb[30].mxu0  ;;  %6412 = vtanh.f32 %v2159_v2 }
 0x12a   : > { %v6389_v3 = vpop.eup %6388  ;;  %5629 = vst [vmem:[%s7118_s23 + $0x58] sm:$0xff] %v5037_v60   ;;  %v5032_v4 = vpack.c.bf16 %v6387_v63, %v6379_v56  ;;  %v6039_v6 = vpop.f32.mrb[30].mxu1  ;;  %6414 = vtanh.f32 %v5911_v5 }
 0x12b   : > { %v6391_v7 = vpop.eup %6390  ;;  %5693 = vst [vmem:[%s7118_s23 + $0x258] sm:$0xff] %v5357_v0   ;;  %v5352_v8 = vpack.c.bf16 %v6389_v3, %v6381_v57  ;;  %v1650_v9 = vpop.f32.mrb[31].mxu0  ;;  %6416 = vtanh.f32 %v6039_v6 }
 0x12c   : > { %v2162_v10 = vpop.f32.mrb[31].mxu1  ;;  %v6393_v11 = vpop.eup %6392  ;;  %5628 = vst [vmem:[%s7118_s23 + $0x50] sm:$0xff] %v5032_v4   ;;  %6418 = vtanh.f32 %v1650_v9 }
 0x12d   : > { %v6395_v12 = vpop.eup %6394  ;;  %5692 = vst [vmem:[%s7118_s23 + $0x250] sm:$0xff] %v5352_v8   ;;  %6420 = vtanh.f32 %v2162_v10  ;;  %v5914_v17 = vpop.f32.mrb[32].mxu0 }
 0x12e   : > { %v6397_v13 = vpop.eup %6396  ;;  %v6042_v18 = vpop.f32.mrb[32].mxu1  ;;  %6422 = vtanh.f32 %v5914_v17 }
 0x12f   : > { %v6399_v14 = vpop.eup %6398  ;;  %v1663_v21 = vpop.f32.mrb[33].mxu0  ;;  %6424 = vtanh.f32 %v6042_v18 }
 0x130   : > { %v6401_v15 = vpop.eup %6400  ;;  %v5047_v16 = vpack.c.bf16 %v6399_v14, %v6391_v7  ;;  %v2175_v22 = vpop.f32.mrb[33].mxu1  ;;  %6426 = vtanh.f32 %v1663_v21 }
 0x131   : > { %v6403_v19 = vpop.eup %6402  ;;  %v5367_v20 = vpack.c.bf16 %v6401_v15, %v6393_v11  ;;  %v5915_v25 = vpop.f32.mrb[34].mxu0  ;;  %6428 = vtanh.f32 %v2175_v22 }
 0x132   : > { %v6405_v23 = vpop.eup %6404  ;;  %5631 = vst [vmem:[%s7118_s23 + $0x68] sm:$0xff] %v5047_v16   ;;  %v5042_v24 = vpack.c.bf16 %v6403_v19, %v6395_v12  ;;  %v6043_v26 = vpop.f32.mrb[34].mxu1  ;;  %6430 = vtanh.f32 %v5915_v25 }
 0x133   : > { %v6407_v27 = vpop.eup %6406  ;;  %5695 = vst [vmem:[%s7118_s23 + $0x268] sm:$0xff] %v5367_v20   ;;  %v5362_v28 = vpack.c.bf16 %v6405_v23, %v6397_v13  ;;  %v1666_v29 = vpop.f32.mrb[35].mxu0  ;;  %6432 = vtanh.f32 %v6043_v26 }
 0x134   : > { %v2178_v30 = vpop.f32.mrb[35].mxu1  ;;  %v6409_v31 = vpop.eup %6408  ;;  %5630 = vst [vmem:[%s7118_s23 + $0x60] sm:$0xff] %v5042_v24   ;;  %6434 = vtanh.f32 %v1666_v29 }
 0x135   : > { %v6411_v32 = vpop.eup %6410  ;;  %5694 = vst [vmem:[%s7118_s23 + $0x260] sm:$0xff] %v5362_v28   ;;  %6436 = vtanh.f32 %v2178_v30  ;;  %v5918_v37 = vpop.f32.mrb[36].mxu0 }
 0x136   : > { %v6413_v33 = vpop.eup %6412  ;;  %v6046_v38 = vpop.f32.mrb[36].mxu1  ;;  %6438 = vtanh.f32 %v5918_v37 }
 0x137   : > { %v6415_v34 = vpop.eup %6414  ;;  %v1679_v41 = vpop.f32.mrb[37].mxu0  ;;  %6440 = vtanh.f32 %v6046_v38 }
 0x138   : > { %v6417_v35 = vpop.eup %6416  ;;  %v5057_v36 = vpack.c.bf16 %v6415_v34, %v6407_v27  ;;  %v2191_v42 = vpop.f32.mrb[37].mxu1  ;;  %6442 = vtanh.f32 %v1679_v41 }
 0x139   : > { %v6419_v39 = vpop.eup %6418  ;;  %v5377_v40 = vpack.c.bf16 %v6417_v35, %v6409_v31  ;;  %v5919_v45 = vpop.f32.mrb[38].mxu0  ;;  %6444 = vtanh.f32 %v2191_v42 }
 0x13a   : > { %v6421_v43 = vpop.eup %6420  ;;  %5633 = vst [vmem:[%s7118_s23 + $0x78] sm:$0xff] %v5057_v36   ;;  %v5052_v44 = vpack.c.bf16 %v6419_v39, %v6411_v32  ;;  %v6047_v46 = vpop.f32.mrb[38].mxu1  ;;  %6446 = vtanh.f32 %v5919_v45 }
 0x13b   : > { %v6423_v47 = vpop.eup %6422  ;;  %5697 = vst [vmem:[%s7118_s23 + $0x278] sm:$0xff] %v5377_v40   ;;  %v5372_v48 = vpack.c.bf16 %v6421_v43, %v6413_v33  ;;  %v1682_v49 = vpop.f32.mrb[39].mxu0  ;;  %6448 = vtanh.f32 %v6047_v46 }
 0x13c   : > { %v2194_v50 = vpop.f32.mrb[39].mxu1  ;;  %v6425_v51 = vpop.eup %6424  ;;  %5632 = vst [vmem:[%s7118_s23 + $0x70] sm:$0xff] %v5052_v44   ;;  %6450 = vtanh.f32 %v1682_v49 }
 0x13d   : > { %v6427_v52 = vpop.eup %6426  ;;  %5696 = vst [vmem:[%s7118_s23 + $0x270] sm:$0xff] %v5372_v48   ;;  %6452 = vtanh.f32 %v2194_v50  ;;  %v5922_v57 = vpop.f32.mrb[40].mxu0 }
 0x13e   : > { %v6429_v53 = vpop.eup %6428  ;;  %v6050_v58 = vpop.f32.mrb[40].mxu1  ;;  %6454 = vtanh.f32 %v5922_v57 }
 0x13f   : > { %v6431_v54 = vpop.eup %6430  ;;  %v1695_v61 = vpop.f32.mrb[41].mxu0  ;;  %6456 = vtanh.f32 %v6050_v58 }
 0x140   : > { %v6433_v55 = vpop.eup %6432  ;;  %v5067_v56 = vpack.c.bf16 %v6431_v54, %v6423_v47  ;;  %v2207_v62 = vpop.f32.mrb[41].mxu1  ;;  %6458 = vtanh.f32 %v1695_v61 }
 0x141   : > { %v6435_v59 = vpop.eup %6434  ;;  %v5387_v60 = vpack.c.bf16 %v6433_v55, %v6425_v51  ;;  %v5923_v1 = vpop.f32.mrb[42].mxu0  ;;  %6460 = vtanh.f32 %v2207_v62 }
 0x142   : > { %v6437_v63 = vpop.eup %6436  ;;  %5635 = vst [vmem:[%s7118_s23 + $0x88] sm:$0xff] %v5067_v56   ;;  %v5062_v0 = vpack.c.bf16 %v6435_v59, %v6427_v52  ;;  %v6051_v2 = vpop.f32.mrb[42].mxu1  ;;  %6462 = vtanh.f32 %v5923_v1 }
 0x143   : > { %v6439_v3 = vpop.eup %6438  ;;  %5699 = vst [vmem:[%s7118_s23 + $0x288] sm:$0xff] %v5387_v60   ;;  %v5382_v4 = vpack.c.bf16 %v6437_v63, %v6429_v53  ;;  %v1698_v5 = vpop.f32.mrb[43].mxu0  ;;  %6464 = vtanh.f32 %v6051_v2 }
 0x144   : > { %v2210_v6 = vpop.f32.mrb[43].mxu1  ;;  %v6441_v7 = vpop.eup %6440  ;;  %5634 = vst [vmem:[%s7118_s23 + $0x80] sm:$0xff] %v5062_v0   ;;  %6466 = vtanh.f32 %v1698_v5 }
 0x145   : > { %v6443_v8 = vpop.eup %6442  ;;  %5698 = vst [vmem:[%s7118_s23 + $0x280] sm:$0xff] %v5382_v4   ;;  %6468 = vtanh.f32 %v2210_v6  ;;  %v5926_v13 = vpop.f32.mrb[44].mxu0 }
 0x146   : > { %v6445_v9 = vpop.eup %6444  ;;  %v6054_v14 = vpop.f32.mrb[44].mxu1  ;;  %6470 = vtanh.f32 %v5926_v13 }
 0x147   : > { %v6447_v10 = vpop.eup %6446  ;;  %v1711_v17 = vpop.f32.mrb[45].mxu0  ;;  %6472 = vtanh.f32 %v6054_v14 }
 0x148   : > { %v6449_v11 = vpop.eup %6448  ;;  %v5077_v12 = vpack.c.bf16 %v6447_v10, %v6439_v3  ;;  %v2223_v18 = vpop.f32.mrb[45].mxu1  ;;  %6474 = vtanh.f32 %v1711_v17 }
 0x149   : > { %v6451_v15 = vpop.eup %6450  ;;  %v5397_v16 = vpack.c.bf16 %v6449_v11, %v6441_v7  ;;  %v5927_v21 = vpop.f32.mrb[46].mxu0  ;;  %6476 = vtanh.f32 %v2223_v18 }
 0x14a   : > { %v6453_v19 = vpop.eup %6452  ;;  %5637 = vst [vmem:[%s7118_s23 + $0x98] sm:$0xff] %v5077_v12   ;;  %v5072_v20 = vpack.c.bf16 %v6451_v15, %v6443_v8  ;;  %v6055_v22 = vpop.f32.mrb[46].mxu1  ;;  %6478 = vtanh.f32 %v5927_v21 }
 0x14b   : > { %v6455_v23 = vpop.eup %6454  ;;  %5701 = vst [vmem:[%s7118_s23 + $0x298] sm:$0xff] %v5397_v16   ;;  %v5392_v24 = vpack.c.bf16 %v6453_v19, %v6445_v9  ;;  %v1714_v25 = vpop.f32.mrb[47].mxu0  ;;  %6480 = vtanh.f32 %v6055_v22 }
 0x14c   : > { %v2226_v26 = vpop.f32.mrb[47].mxu1  ;;  %v6457_v27 = vpop.eup %6456  ;;  %5636 = vst [vmem:[%s7118_s23 + $0x90] sm:$0xff] %v5072_v20   ;;  %6482 = vtanh.f32 %v1714_v25 }
 0x14d   : > { %v6459_v28 = vpop.eup %6458  ;;  %5700 = vst [vmem:[%s7118_s23 + $0x290] sm:$0xff] %v5392_v24   ;;  %6484 = vtanh.f32 %v2226_v26  ;;  %v5930_v33 = vpop.f32.mrb[48].mxu0 }
 0x14e   : > { %v6461_v29 = vpop.eup %6460  ;;  %v6058_v34 = vpop.f32.mrb[48].mxu1  ;;  %6486 = vtanh.f32 %v5930_v33 }
 0x14f   : > { %v6463_v30 = vpop.eup %6462  ;;  %v1727_v37 = vpop.f32.mrb[49].mxu0  ;;  %6488 = vtanh.f32 %v6058_v34 }
 0x150   : > { %v6465_v31 = vpop.eup %6464  ;;  %v5087_v32 = vpack.c.bf16 %v6463_v30, %v6455_v23  ;;  %v2239_v38 = vpop.f32.mrb[49].mxu1  ;;  %6490 = vtanh.f32 %v1727_v37 }
 0x151   : > { %v6467_v35 = vpop.eup %6466  ;;  %v5407_v36 = vpack.c.bf16 %v6465_v31, %v6457_v27  ;;  %v5931_v41 = vpop.f32.mrb[50].mxu0  ;;  %6492 = vtanh.f32 %v2239_v38 }
 0x152   : > { %v6469_v39 = vpop.eup %6468  ;;  %5639 = vst [vmem:[%s7118_s23 + $0xa8] sm:$0xff] %v5087_v32   ;;  %v5082_v40 = vpack.c.bf16 %v6467_v35, %v6459_v28  ;;  %v6059_v42 = vpop.f32.mrb[50].mxu1  ;;  %6494 = vtanh.f32 %v5931_v41 }
 0x153   : > { %v6471_v43 = vpop.eup %6470  ;;  %5703 = vst [vmem:[%s7118_s23 + $0x2a8] sm:$0xff] %v5407_v36   ;;  %v5402_v44 = vpack.c.bf16 %v6469_v39, %v6461_v29  ;;  %v1730_v45 = vpop.f32.mrb[51].mxu0  ;;  %6496 = vtanh.f32 %v6059_v42 }
 0x154   : > { %v2242_v46 = vpop.f32.mrb[51].mxu1  ;;  %v6473_v47 = vpop.eup %6472  ;;  %5638 = vst [vmem:[%s7118_s23 + $0xa0] sm:$0xff] %v5082_v40   ;;  %6498 = vtanh.f32 %v1730_v45 }
 0x155   : > { %v6475_v48 = vpop.eup %6474  ;;  %5702 = vst [vmem:[%s7118_s23 + $0x2a0] sm:$0xff] %v5402_v44   ;;  %6500 = vtanh.f32 %v2242_v46  ;;  %v5934_v53 = vpop.f32.mrb[52].mxu0 }
 0x156   : > { %v6477_v49 = vpop.eup %6476  ;;  %v6062_v54 = vpop.f32.mrb[52].mxu1  ;;  %6502 = vtanh.f32 %v5934_v53 }
 0x157   : > { %v6479_v50 = vpop.eup %6478  ;;  %v1743_v57 = vpop.f32.mrb[53].mxu0  ;;  %6504 = vtanh.f32 %v6062_v54 }
 0x158   : > { %v6481_v51 = vpop.eup %6480  ;;  %v5097_v52 = vpack.c.bf16 %v6479_v50, %v6471_v43  ;;  %v2255_v58 = vpop.f32.mrb[53].mxu1  ;;  %6506 = vtanh.f32 %v1743_v57 }
 0x159   : > { %v6483_v55 = vpop.eup %6482  ;;  %v5417_v56 = vpack.c.bf16 %v6481_v51, %v6473_v47  ;;  %v5935_v61 = vpop.f32.mrb[54].mxu0  ;;  %6508 = vtanh.f32 %v2255_v58 }
 0x15a   : > { %v6485_v59 = vpop.eup %6484  ;;  %5641 = vst [vmem:[%s7118_s23 + $0xb8] sm:$0xff] %v5097_v52   ;;  %v5092_v60 = vpack.c.bf16 %v6483_v55, %v6475_v48  ;;  %v6063_v62 = vpop.f32.mrb[54].mxu1  ;;  %6510 = vtanh.f32 %v5935_v61 }
 0x15b   : > { %v6487_v63 = vpop.eup %6486  ;;  %5705 = vst [vmem:[%s7118_s23 + $0x2b8] sm:$0xff] %v5417_v56   ;;  %v5412_v0 = vpack.c.bf16 %v6485_v59, %v6477_v49  ;;  %v1746_v1 = vpop.f32.mrb[55].mxu0  ;;  %6512 = vtanh.f32 %v6063_v62 }
 0x15c   : > { %v2258_v2 = vpop.f32.mrb[55].mxu1  ;;  %v6489_v3 = vpop.eup %6488  ;;  %5640 = vst [vmem:[%s7118_s23 + $0xb0] sm:$0xff] %v5092_v60   ;;  %6514 = vtanh.f32 %v1746_v1 }
 0x15d   : > { %v6491_v4 = vpop.eup %6490  ;;  %5704 = vst [vmem:[%s7118_s23 + $0x2b0] sm:$0xff] %v5412_v0   ;;  %6516 = vtanh.f32 %v2258_v2  ;;  %v5938_v9 = vpop.f32.mrb[56].mxu0 }
 0x15e   : > { %v6493_v5 = vpop.eup %6492  ;;  %v6066_v10 = vpop.f32.mrb[56].mxu1  ;;  %6518 = vtanh.f32 %v5938_v9 }
 0x15f   : > { %v6495_v6 = vpop.eup %6494  ;;  %v1759_v13 = vpop.f32.mrb[57].mxu0  ;;  %6520 = vtanh.f32 %v6066_v10 }
 0x160   : > { %v6497_v7 = vpop.eup %6496  ;;  %v5107_v8 = vpack.c.bf16 %v6495_v6, %v6487_v63  ;;  %v2271_v14 = vpop.f32.mrb[57].mxu1  ;;  %6522 = vtanh.f32 %v1759_v13 }
 0x161   : > { %v6499_v11 = vpop.eup %6498  ;;  %v5427_v12 = vpack.c.bf16 %v6497_v7, %v6489_v3  ;;  %v5939_v17 = vpop.f32.mrb[58].mxu0  ;;  %6524 = vtanh.f32 %v2271_v14 }
 0x162   : > { %v6501_v15 = vpop.eup %6500  ;;  %5643 = vst [vmem:[%s7118_s23 + $0xc8] sm:$0xff] %v5107_v8   ;;  %v5102_v16 = vpack.c.bf16 %v6499_v11, %v6491_v4  ;;  %v6067_v18 = vpop.f32.mrb[58].mxu1  ;;  %6526 = vtanh.f32 %v5939_v17 }
 0x163   : > { %v6503_v19 = vpop.eup %6502  ;;  %5707 = vst [vmem:[%s7118_s23 + $0x2c8] sm:$0xff] %v5427_v12   ;;  %v5422_v20 = vpack.c.bf16 %v6501_v15, %v6493_v5  ;;  %v1762_v21 = vpop.f32.mrb[59].mxu0  ;;  %6528 = vtanh.f32 %v6067_v18 }
 0x164   : > { %v2274_v22 = vpop.f32.mrb[59].mxu1  ;;  %v6505_v23 = vpop.eup %6504  ;;  %5642 = vst [vmem:[%s7118_s23 + $0xc0] sm:$0xff] %v5102_v16   ;;  %6530 = vtanh.f32 %v1762_v21 }
 0x165   : > { %v6507_v24 = vpop.eup %6506  ;;  %5706 = vst [vmem:[%s7118_s23 + $0x2c0] sm:$0xff] %v5422_v20   ;;  %6532 = vtanh.f32 %v2274_v22  ;;  %v5942_v29 = vpop.f32.mrb[60].mxu0 }
 0x166   : > { %v6509_v25 = vpop.eup %6508  ;;  %v6070_v30 = vpop.f32.mrb[60].mxu1  ;;  %6534 = vtanh.f32 %v5942_v29 }
 0x167   : > { %v6511_v26 = vpop.eup %6510  ;;  %v1775_v33 = vpop.f32.mrb[61].mxu0  ;;  %6536 = vtanh.f32 %v6070_v30 }
 0x168   : > { %v6513_v27 = vpop.eup %6512  ;;  %v5117_v28 = vpack.c.bf16 %v6511_v26, %v6503_v19  ;;  %v2287_v34 = vpop.f32.mrb[61].mxu1  ;;  %6538 = vtanh.f32 %v1775_v33 }
 0x169   : > { %v6515_v31 = vpop.eup %6514  ;;  %v5437_v32 = vpack.c.bf16 %v6513_v27, %v6505_v23  ;;  %v5943_v37 = vpop.f32.mrb[62].mxu0  ;;  %6540 = vtanh.f32 %v2287_v34 }
 0x16a   : > { %v6517_v35 = vpop.eup %6516  ;;  %5645 = vst [vmem:[%s7118_s23 + $0xd8] sm:$0xff] %v5117_v28   ;;  %v5112_v36 = vpack.c.bf16 %v6515_v31, %v6507_v24  ;;  %v6071_v38 = vpop.f32.mrb[62].mxu1  ;;  %6542 = vtanh.f32 %v5943_v37 }
 0x16b   : > { %v6519_v39 = vpop.eup %6518  ;;  %5709 = vst [vmem:[%s7118_s23 + $0x2d8] sm:$0xff] %v5437_v32   ;;  %v5432_v40 = vpack.c.bf16 %v6517_v35, %v6509_v25  ;;  %v1778_v41 = vpop.f32.mrb[63].mxu0  ;;  %6544 = vtanh.f32 %v6071_v38 }
 0x16c   : > { %v2290_v42 = vpop.f32.mrb[63].mxu1  ;;  %v6521_v43 = vpop.eup %6520  ;;  %5644 = vst [vmem:[%s7118_s23 + $0xd0] sm:$0xff] %v5112_v36   ;;  %6546 = vtanh.f32 %v1778_v41 }
 0x16d   : > { %v6523_v44 = vpop.eup %6522  ;;  %5708 = vst [vmem:[%s7118_s23 + $0x2d0] sm:$0xff] %v5432_v40   ;;  %6548 = vtanh.f32 %v2290_v42  ;;  %v5946_v49 = vpop.f32.mrb[64].mxu0 }
 0x16e   : > { %v6525_v45 = vpop.eup %6524  ;;  %v6074_v50 = vpop.f32.mrb[64].mxu1  ;;  %6550 = vtanh.f32 %v5946_v49 }
 0x16f   : > { %v6527_v46 = vpop.eup %6526  ;;  %v1791_v53 = vpop.f32.mrb[65].mxu0  ;;  %6552 = vtanh.f32 %v6074_v50 }
 0x170   : > { %v6529_v47 = vpop.eup %6528  ;;  %v5127_v48 = vpack.c.bf16 %v6527_v46, %v6519_v39  ;;  %v2303_v54 = vpop.f32.mrb[65].mxu1  ;;  %6554 = vtanh.f32 %v1791_v53 }
 0x171   : > { %v6531_v51 = vpop.eup %6530  ;;  %v5447_v52 = vpack.c.bf16 %v6529_v47, %v6521_v43  ;;  %v5947_v57 = vpop.f32.mrb[66].mxu0  ;;  %6556 = vtanh.f32 %v2303_v54 }
 0x172   : > { %v6533_v55 = vpop.eup %6532  ;;  %5647 = vst [vmem:[%s7118_s23 + $0xe8] sm:$0xff] %v5127_v48   ;;  %v5122_v56 = vpack.c.bf16 %v6531_v51, %v6523_v44  ;;  %v6075_v58 = vpop.f32.mrb[66].mxu1  ;;  %6558 = vtanh.f32 %v5947_v57 }
 0x173   : > { %v6535_v59 = vpop.eup %6534  ;;  %5711 = vst [vmem:[%s7118_s23 + $0x2e8] sm:$0xff] %v5447_v52   ;;  %v5442_v60 = vpack.c.bf16 %v6533_v55, %v6525_v45  ;;  %v1794_v61 = vpop.f32.mrb[67].mxu0  ;;  %6560 = vtanh.f32 %v6075_v58 }
 0x174   : > { %v2306_v62 = vpop.f32.mrb[67].mxu1  ;;  %v6537_v63 = vpop.eup %6536  ;;  %5646 = vst [vmem:[%s7118_s23 + $0xe0] sm:$0xff] %v5122_v56   ;;  %6562 = vtanh.f32 %v1794_v61 }
 0x175   : > { %v6539_v0 = vpop.eup %6538  ;;  %5710 = vst [vmem:[%s7118_s23 + $0x2e0] sm:$0xff] %v5442_v60   ;;  %6564 = vtanh.f32 %v2306_v62  ;;  %v5950_v5 = vpop.f32.mrb[68].mxu0 }
 0x176   : > { %v6541_v1 = vpop.eup %6540  ;;  %v6078_v6 = vpop.f32.mrb[68].mxu1  ;;  %6566 = vtanh.f32 %v5950_v5 }
 0x177   : > { %v6543_v2 = vpop.eup %6542  ;;  %v1807_v9 = vpop.f32.mrb[69].mxu0  ;;  %6568 = vtanh.f32 %v6078_v6 }
 0x178   : > { %v6545_v3 = vpop.eup %6544  ;;  %v5137_v4 = vpack.c.bf16 %v6543_v2, %v6535_v59  ;;  %v2319_v10 = vpop.f32.mrb[69].mxu1  ;;  %6570 = vtanh.f32 %v1807_v9 }
 0x179   : > { %v6547_v7 = vpop.eup %6546  ;;  %v5457_v8 = vpack.c.bf16 %v6545_v3, %v6537_v63  ;;  %v5951_v13 = vpop.f32.mrb[70].mxu0  ;;  %6572 = vtanh.f32 %v2319_v10 }
 0x17a   : > { %v6549_v11 = vpop.eup %6548  ;;  %5649 = vst [vmem:[%s7118_s23 + $0xf8] sm:$0xff] %v5137_v4   ;;  %v5132_v12 = vpack.c.bf16 %v6547_v7, %v6539_v0  ;;  %v6079_v14 = vpop.f32.mrb[70].mxu1  ;;  %6574 = vtanh.f32 %v5951_v13 }
 0x17b   : > { %v6551_v15 = vpop.eup %6550  ;;  %5713 = vst [vmem:[%s7118_s23 + $0x2f8] sm:$0xff] %v5457_v8   ;;  %v5452_v16 = vpack.c.bf16 %v6549_v11, %v6541_v1  ;;  %v1810_v17 = vpop.f32.mrb[71].mxu0  ;;  %6576 = vtanh.f32 %v6079_v14 }
 0x17c   : > { %v2322_v18 = vpop.f32.mrb[71].mxu1  ;;  %v6553_v19 = vpop.eup %6552  ;;  %5648 = vst [vmem:[%s7118_s23 + $0xf0] sm:$0xff] %v5132_v12   ;;  %6578 = vtanh.f32 %v1810_v17 }
 0x17d   : > { %v6555_v20 = vpop.eup %6554  ;;  %5712 = vst [vmem:[%s7118_s23 + $0x2f0] sm:$0xff] %v5452_v16   ;;  %6580 = vtanh.f32 %v2322_v18  ;;  %v5954_v25 = vpop.f32.mrb[72].mxu0 }
 0x17e   : > { %v6557_v21 = vpop.eup %6556  ;;  %v6082_v26 = vpop.f32.mrb[72].mxu1  ;;  %6582 = vtanh.f32 %v5954_v25 }
 0x17f   : > { %v6559_v22 = vpop.eup %6558  ;;  %v1823_v29 = vpop.f32.mrb[73].mxu0  ;;  %6584 = vtanh.f32 %v6082_v26 }
 0x180   : > { %v6561_v23 = vpop.eup %6560  ;;  %v5147_v24 = vpack.c.bf16 %v6559_v22, %v6551_v15  ;;  %v2335_v30 = vpop.f32.mrb[73].mxu1  ;;  %6586 = vtanh.f32 %v1823_v29 }
 0x181   : > { %v6563_v27 = vpop.eup %6562  ;;  %v5467_v28 = vpack.c.bf16 %v6561_v23, %v6553_v19  ;;  %v5955_v33 = vpop.f32.mrb[74].mxu0  ;;  %6588 = vtanh.f32 %v2335_v30 }
 0x182   : > { %v6565_v31 = vpop.eup %6564  ;;  %5651 = vst [vmem:[%s7118_s23 + $0x108] sm:$0xff] %v5147_v24   ;;  %v5142_v32 = vpack.c.bf16 %v6563_v27, %v6555_v20  ;;  %v6083_v34 = vpop.f32.mrb[74].mxu1  ;;  %6590 = vtanh.f32 %v5955_v33 }
 0x183   : > { %v6567_v35 = vpop.eup %6566  ;;  %5715 = vst [vmem:[%s7118_s23 + $0x308] sm:$0xff] %v5467_v28   ;;  %v5462_v36 = vpack.c.bf16 %v6565_v31, %v6557_v21  ;;  %v1826_v37 = vpop.f32.mrb[75].mxu0  ;;  %6592 = vtanh.f32 %v6083_v34 }
 0x184   : > { %v2338_v38 = vpop.f32.mrb[75].mxu1  ;;  %v6569_v39 = vpop.eup %6568  ;;  %5650 = vst [vmem:[%s7118_s23 + $0x100] sm:$0xff] %v5142_v32   ;;  %6594 = vtanh.f32 %v1826_v37 }
 0x185   : > { %v6571_v40 = vpop.eup %6570  ;;  %5714 = vst [vmem:[%s7118_s23 + $0x300] sm:$0xff] %v5462_v36   ;;  %6596 = vtanh.f32 %v2338_v38  ;;  %v5958_v45 = vpop.f32.mrb[76].mxu0 }
 0x186   : > { %v6573_v41 = vpop.eup %6572  ;;  %v6086_v46 = vpop.f32.mrb[76].mxu1  ;;  %6598 = vtanh.f32 %v5958_v45 }
 0x187   : > { %v6575_v42 = vpop.eup %6574  ;;  %v1839_v49 = vpop.f32.mrb[77].mxu0  ;;  %6600 = vtanh.f32 %v6086_v46 }
 0x188   : > { %v6577_v43 = vpop.eup %6576  ;;  %v5157_v44 = vpack.c.bf16 %v6575_v42, %v6567_v35  ;;  %v2351_v50 = vpop.f32.mrb[77].mxu1  ;;  %6602 = vtanh.f32 %v1839_v49 }
 0x189   : > { %v6579_v47 = vpop.eup %6578  ;;  %v5477_v48 = vpack.c.bf16 %v6577_v43, %v6569_v39  ;;  %v5959_v53 = vpop.f32.mrb[78].mxu0  ;;  %6604 = vtanh.f32 %v2351_v50 }
 0x18a   : > { %v6581_v51 = vpop.eup %6580  ;;  %5653 = vst [vmem:[%s7118_s23 + $0x118] sm:$0xff] %v5157_v44   ;;  %v5152_v52 = vpack.c.bf16 %v6579_v47, %v6571_v40  ;;  %v6087_v54 = vpop.f32.mrb[78].mxu1  ;;  %6606 = vtanh.f32 %v5959_v53 }
 0x18b   : > { %v6583_v55 = vpop.eup %6582  ;;  %5717 = vst [vmem:[%s7118_s23 + $0x318] sm:$0xff] %v5477_v48   ;;  %v5472_v56 = vpack.c.bf16 %v6581_v51, %v6573_v41  ;;  %v1842_v57 = vpop.f32.mrb[79].mxu0  ;;  %6608 = vtanh.f32 %v6087_v54 }
 0x18c   : > { %v2354_v58 = vpop.f32.mrb[79].mxu1  ;;  %v6585_v59 = vpop.eup %6584  ;;  %5652 = vst [vmem:[%s7118_s23 + $0x110] sm:$0xff] %v5152_v52   ;;  %6610 = vtanh.f32 %v1842_v57 }
 0x18d   : > { %v6587_v60 = vpop.eup %6586  ;;  %5716 = vst [vmem:[%s7118_s23 + $0x310] sm:$0xff] %v5472_v56   ;;  %6612 = vtanh.f32 %v2354_v58  ;;  %v5962_v1 = vpop.f32.mrb[80].mxu0 }
 0x18e   : > { %v6589_v61 = vpop.eup %6588  ;;  %v6090_v2 = vpop.f32.mrb[80].mxu1  ;;  %6614 = vtanh.f32 %v5962_v1 }
 0x18f   : > { %v6591_v62 = vpop.eup %6590  ;;  %v1855_v5 = vpop.f32.mrb[81].mxu0  ;;  %6616 = vtanh.f32 %v6090_v2 }
 0x190   : > { %v6593_v63 = vpop.eup %6592  ;;  %v5167_v0 = vpack.c.bf16 %v6591_v62, %v6583_v55  ;;  %v2367_v6 = vpop.f32.mrb[81].mxu1  ;;  %6618 = vtanh.f32 %v1855_v5 }
 0x191   : > { %v6595_v3 = vpop.eup %6594  ;;  %v5487_v4 = vpack.c.bf16 %v6593_v63, %v6585_v59  ;;  %v5963_v9 = vpop.f32.mrb[82].mxu0  ;;  %6620 = vtanh.f32 %v2367_v6 }
 0x192   : > { %v6597_v7 = vpop.eup %6596  ;;  %5655 = vst [vmem:[%s7118_s23 + $0x128] sm:$0xff] %v5167_v0   ;;  %v5162_v8 = vpack.c.bf16 %v6595_v3, %v6587_v60  ;;  %v6091_v10 = vpop.f32.mrb[82].mxu1  ;;  %6622 = vtanh.f32 %v5963_v9 }
 0x193   : > { %v6599_v11 = vpop.eup %6598  ;;  %5719 = vst [vmem:[%s7118_s23 + $0x328] sm:$0xff] %v5487_v4   ;;  %v5482_v12 = vpack.c.bf16 %v6597_v7, %v6589_v61  ;;  %v1858_v13 = vpop.f32.mrb[83].mxu0  ;;  %6624 = vtanh.f32 %v6091_v10 }
 0x194   : > { %v2370_v14 = vpop.f32.mrb[83].mxu1  ;;  %v6601_v15 = vpop.eup %6600  ;;  %5654 = vst [vmem:[%s7118_s23 + $0x120] sm:$0xff] %v5162_v8   ;;  %6626 = vtanh.f32 %v1858_v13 }
 0x195   : > { %v6603_v16 = vpop.eup %6602  ;;  %5718 = vst [vmem:[%s7118_s23 + $0x320] sm:$0xff] %v5482_v12   ;;  %6628 = vtanh.f32 %v2370_v14  ;;  %v5966_v21 = vpop.f32.mrb[84].mxu0 }
 0x196   : > { %v6605_v17 = vpop.eup %6604  ;;  %v6094_v22 = vpop.f32.mrb[84].mxu1  ;;  %6630 = vtanh.f32 %v5966_v21 }
 0x197   : > { %v6607_v18 = vpop.eup %6606  ;;  %v1871_v25 = vpop.f32.mrb[85].mxu0  ;;  %6632 = vtanh.f32 %v6094_v22 }
 0x198   : > { %v6609_v19 = vpop.eup %6608  ;;  %v5177_v20 = vpack.c.bf16 %v6607_v18, %v6599_v11  ;;  %v2383_v26 = vpop.f32.mrb[85].mxu1  ;;  %6634 = vtanh.f32 %v1871_v25 }
 0x199   : > { %v6611_v23 = vpop.eup %6610  ;;  %v5497_v24 = vpack.c.bf16 %v6609_v19, %v6601_v15  ;;  %v5967_v29 = vpop.f32.mrb[86].mxu0  ;;  %6636 = vtanh.f32 %v2383_v26 }
 0x19a   : > { %v6613_v27 = vpop.eup %6612  ;;  %5657 = vst [vmem:[%s7118_s23 + $0x138] sm:$0xff] %v5177_v20   ;;  %v5172_v28 = vpack.c.bf16 %v6611_v23, %v6603_v16  ;;  %v6095_v30 = vpop.f32.mrb[86].mxu1  ;;  %6638 = vtanh.f32 %v5967_v29 }
 0x19b   : > { %v6615_v31 = vpop.eup %6614  ;;  %5721 = vst [vmem:[%s7118_s23 + $0x338] sm:$0xff] %v5497_v24   ;;  %v5492_v32 = vpack.c.bf16 %v6613_v27, %v6605_v17  ;;  %v1874_v33 = vpop.f32.mrb[87].mxu0  ;;  %6640 = vtanh.f32 %v6095_v30 }
 0x19c   : > { %v2386_v34 = vpop.f32.mrb[87].mxu1  ;;  %v6617_v35 = vpop.eup %6616  ;;  %5656 = vst [vmem:[%s7118_s23 + $0x130] sm:$0xff] %v5172_v28   ;;  %6642 = vtanh.f32 %v1874_v33 }
 0x19d   : > { %v6619_v36 = vpop.eup %6618  ;;  %5720 = vst [vmem:[%s7118_s23 + $0x330] sm:$0xff] %v5492_v32   ;;  %6644 = vtanh.f32 %v2386_v34  ;;  %v5970_v41 = vpop.f32.mrb[88].mxu0 }
 0x19e   : > { %v6621_v37 = vpop.eup %6620  ;;  %v6098_v42 = vpop.f32.mrb[88].mxu1  ;;  %6646 = vtanh.f32 %v5970_v41 }
 0x19f   : > { %v6623_v38 = vpop.eup %6622  ;;  %v1887_v45 = vpop.f32.mrb[89].mxu0  ;;  %6648 = vtanh.f32 %v6098_v42 }
 0x1a0   : > { %v6625_v39 = vpop.eup %6624  ;;  %v5187_v40 = vpack.c.bf16 %v6623_v38, %v6615_v31  ;;  %v2399_v46 = vpop.f32.mrb[89].mxu1  ;;  %6650 = vtanh.f32 %v1887_v45 }
 0x1a1   : > { %v6627_v43 = vpop.eup %6626  ;;  %v5507_v44 = vpack.c.bf16 %v6625_v39, %v6617_v35  ;;  %v5971_v49 = vpop.f32.mrb[90].mxu0  ;;  %6652 = vtanh.f32 %v2399_v46 }
 0x1a2   : > { %v6629_v47 = vpop.eup %6628  ;;  %5659 = vst [vmem:[%s7118_s23 + $0x148] sm:$0xff] %v5187_v40   ;;  %v5182_v48 = vpack.c.bf16 %v6627_v43, %v6619_v36  ;;  %v6099_v50 = vpop.f32.mrb[90].mxu1  ;;  %6654 = vtanh.f32 %v5971_v49 }
 0x1a3   : > { %v6631_v51 = vpop.eup %6630  ;;  %5723 = vst [vmem:[%s7118_s23 + $0x348] sm:$0xff] %v5507_v44   ;;  %v5502_v52 = vpack.c.bf16 %v6629_v47, %v6621_v37  ;;  %v1890_v53 = vpop.f32.mrb[91].mxu0  ;;  %6656 = vtanh.f32 %v6099_v50 }
 0x1a4   : > { %v2402_v54 = vpop.f32.mrb[91].mxu1  ;;  %v6633_v55 = vpop.eup %6632  ;;  %5658 = vst [vmem:[%s7118_s23 + $0x140] sm:$0xff] %v5182_v48   ;;  %6658 = vtanh.f32 %v1890_v53 }
 0x1a5   : > { %v6635_v56 = vpop.eup %6634  ;;  %5722 = vst [vmem:[%s7118_s23 + $0x340] sm:$0xff] %v5502_v52   ;;  %6660 = vtanh.f32 %v2402_v54  ;;  %v5974_v61 = vpop.f32.mrb[92].mxu0 }
 0x1a6   : > { %v6637_v57 = vpop.eup %6636  ;;  %v6102_v62 = vpop.f32.mrb[92].mxu1  ;;  %6662 = vtanh.f32 %v5974_v61 }
 0x1a7   : > { %v6639_v58 = vpop.eup %6638  ;;  %v1903_v1 = vpop.f32.mrb[93].mxu0  ;;  %6664 = vtanh.f32 %v6102_v62 }
 0x1a8   : > { %v6641_v59 = vpop.eup %6640  ;;  %v5197_v60 = vpack.c.bf16 %v6639_v58, %v6631_v51  ;;  %v2415_v2 = vpop.f32.mrb[93].mxu1  ;;  %6666 = vtanh.f32 %v1903_v1 }
 0x1a9   : > { %v6643_v63 = vpop.eup %6642  ;;  %v5517_v0 = vpack.c.bf16 %v6641_v59, %v6633_v55  ;;  %v5975_v5 = vpop.f32.mrb[94].mxu0  ;;  %6668 = vtanh.f32 %v2415_v2 }
 0x1aa   : > { %v6645_v3 = vpop.eup %6644  ;;  %5661 = vst [vmem:[%s7118_s23 + $0x158] sm:$0xff] %v5197_v60   ;;  %v5192_v4 = vpack.c.bf16 %v6643_v63, %v6635_v56  ;;  %v6103_v6 = vpop.f32.mrb[94].mxu1  ;;  %6670 = vtanh.f32 %v5975_v5 }
 0x1ab   : > { %v6647_v7 = vpop.eup %6646  ;;  %5725 = vst [vmem:[%s7118_s23 + $0x358] sm:$0xff] %v5517_v0   ;;  %v5512_v8 = vpack.c.bf16 %v6645_v3, %v6637_v57  ;;  %v1906_v9 = vpop.f32.mrb[95].mxu0  ;;  %6672 = vtanh.f32 %v6103_v6 }
 0x1ac   : > { %v2418_v10 = vpop.f32.mrb[95].mxu1  ;;  %v6649_v11 = vpop.eup %6648  ;;  %5660 = vst [vmem:[%s7118_s23 + $0x150] sm:$0xff] %v5192_v4   ;;  %6674 = vtanh.f32 %v1906_v9 }
 0x1ad   : > { %v6651_v12 = vpop.eup %6650  ;;  %5724 = vst [vmem:[%s7118_s23 + $0x350] sm:$0xff] %v5512_v8   ;;  %6676 = vtanh.f32 %v2418_v10  ;;  %v5978_v17 = vpop.f32.mrb[96].mxu0 }
 0x1ae   : > { %v6653_v13 = vpop.eup %6652  ;;  %v6106_v18 = vpop.f32.mrb[96].mxu1  ;;  %6678 = vtanh.f32 %v5978_v17 }
 0x1af   : > { %v6655_v14 = vpop.eup %6654  ;;  %v1919_v21 = vpop.f32.mrb[97].mxu0  ;;  %6680 = vtanh.f32 %v6106_v18 }
 0x1b0   : > { %v6657_v15 = vpop.eup %6656  ;;  %v5207_v16 = vpack.c.bf16 %v6655_v14, %v6647_v7  ;;  %v2431_v22 = vpop.f32.mrb[97].mxu1  ;;  %6682 = vtanh.f32 %v1919_v21 }
 0x1b1   : > { %v6659_v19 = vpop.eup %6658  ;;  %v5527_v20 = vpack.c.bf16 %v6657_v15, %v6649_v11  ;;  %v5979_v25 = vpop.f32.mrb[98].mxu0  ;;  %6684 = vtanh.f32 %v2431_v22 }
 0x1b2   : > { %v6661_v23 = vpop.eup %6660  ;;  %5663 = vst [vmem:[%s7118_s23 + $0x168] sm:$0xff] %v5207_v16   ;;  %v5202_v24 = vpack.c.bf16 %v6659_v19, %v6651_v12  ;;  %v6107_v26 = vpop.f32.mrb[98].mxu1  ;;  %6686 = vtanh.f32 %v5979_v25 }
 0x1b3   : > { %v6663_v27 = vpop.eup %6662  ;;  %5727 = vst [vmem:[%s7118_s23 + $0x368] sm:$0xff] %v5527_v20   ;;  %v5522_v28 = vpack.c.bf16 %v6661_v23, %v6653_v13  ;;  %v1922_v29 = vpop.f32.mrb[99].mxu0  ;;  %6688 = vtanh.f32 %v6107_v26 }
 0x1b4   : > { %v2434_v30 = vpop.f32.mrb[99].mxu1  ;;  %v6665_v31 = vpop.eup %6664  ;;  %5662 = vst [vmem:[%s7118_s23 + $0x160] sm:$0xff] %v5202_v24   ;;  %6690 = vtanh.f32 %v1922_v29 }
 0x1b5   : > { %v6667_v32 = vpop.eup %6666  ;;  %5726 = vst [vmem:[%s7118_s23 + $0x360] sm:$0xff] %v5522_v28   ;;  %6692 = vtanh.f32 %v2434_v30  ;;  %v5982_v37 = vpop.f32.mrb[100].mxu0 }
 0x1b6   : > { %v6669_v33 = vpop.eup %6668  ;;  %v6110_v38 = vpop.f32.mrb[100].mxu1  ;;  %6694 = vtanh.f32 %v5982_v37 }
 0x1b7   : > { %v6671_v34 = vpop.eup %6670  ;;  %v1935_v41 = vpop.f32.mrb[101].mxu0  ;;  %6696 = vtanh.f32 %v6110_v38 }
 0x1b8   : > { %v6673_v35 = vpop.eup %6672  ;;  %v5217_v36 = vpack.c.bf16 %v6671_v34, %v6663_v27  ;;  %v2447_v42 = vpop.f32.mrb[101].mxu1  ;;  %6698 = vtanh.f32 %v1935_v41 }
 0x1b9   : > { %v6675_v39 = vpop.eup %6674  ;;  %v5537_v40 = vpack.c.bf16 %v6673_v35, %v6665_v31  ;;  %v5983_v45 = vpop.f32.mrb[102].mxu0  ;;  %6700 = vtanh.f32 %v2447_v42 }
 0x1ba   : > { %v6677_v43 = vpop.eup %6676  ;;  %5665 = vst [vmem:[%s7118_s23 + $0x178] sm:$0xff] %v5217_v36   ;;  %v5212_v44 = vpack.c.bf16 %v6675_v39, %v6667_v32  ;;  %v6111_v46 = vpop.f32.mrb[102].mxu1  ;;  %6702 = vtanh.f32 %v5983_v45 }
 0x1bb   : > { %v6679_v47 = vpop.eup %6678  ;;  %5729 = vst [vmem:[%s7118_s23 + $0x378] sm:$0xff] %v5537_v40   ;;  %v5532_v48 = vpack.c.bf16 %v6677_v43, %v6669_v33  ;;  %v1938_v49 = vpop.f32.mrb[103].mxu0  ;;  %6704 = vtanh.f32 %v6111_v46 }
 0x1bc   : > { %v2450_v50 = vpop.f32.mrb[103].mxu1  ;;  %v6681_v51 = vpop.eup %6680  ;;  %5664 = vst [vmem:[%s7118_s23 + $0x170] sm:$0xff] %v5212_v44   ;;  %6706 = vtanh.f32 %v1938_v49 }
 0x1bd   : > { %v6683_v52 = vpop.eup %6682  ;;  %5728 = vst [vmem:[%s7118_s23 + $0x370] sm:$0xff] %v5532_v48   ;;  %6708 = vtanh.f32 %v2450_v50  ;;  %v5986_v57 = vpop.f32.mrb[104].mxu0 }
 0x1be   : > { %v6685_v53 = vpop.eup %6684  ;;  %v6114_v58 = vpop.f32.mrb[104].mxu1  ;;  %6710 = vtanh.f32 %v5986_v57 }
 0x1bf   : > { %v6687_v54 = vpop.eup %6686  ;;  %v1951_v61 = vpop.f32.mrb[105].mxu0  ;;  %6712 = vtanh.f32 %v6114_v58 }
 0x1c0   : > { %v6689_v55 = vpop.eup %6688  ;;  %v5227_v56 = vpack.c.bf16 %v6687_v54, %v6679_v47  ;;  %v2463_v62 = vpop.f32.mrb[105].mxu1  ;;  %6714 = vtanh.f32 %v1951_v61 }
 0x1c1   : > { %v6691_v59 = vpop.eup %6690  ;;  %v5547_v60 = vpack.c.bf16 %v6689_v55, %v6681_v51  ;;  %v5987_v1 = vpop.f32.mrb[106].mxu0  ;;  %6716 = vtanh.f32 %v2463_v62 }
 0x1c2   : > { %v6693_v63 = vpop.eup %6692  ;;  %5667 = vst [vmem:[%s7118_s23 + $0x188] sm:$0xff] %v5227_v56   ;;  %v5222_v0 = vpack.c.bf16 %v6691_v59, %v6683_v52  ;;  %v6115_v2 = vpop.f32.mrb[106].mxu1  ;;  %6718 = vtanh.f32 %v5987_v1 }
 0x1c3   : > { %v6695_v3 = vpop.eup %6694  ;;  %5731 = vst [vmem:[%s7118_s23 + $0x388] sm:$0xff] %v5547_v60   ;;  %v5542_v4 = vpack.c.bf16 %v6693_v63, %v6685_v53  ;;  %v1954_v5 = vpop.f32.mrb[107].mxu0  ;;  %6720 = vtanh.f32 %v6115_v2 }
 0x1c4   : > { %v2466_v6 = vpop.f32.mrb[107].mxu1  ;;  %v6697_v7 = vpop.eup %6696  ;;  %5666 = vst [vmem:[%s7118_s23 + $0x180] sm:$0xff] %v5222_v0   ;;  %6722 = vtanh.f32 %v1954_v5 }
 0x1c5   : > { %v6699_v8 = vpop.eup %6698  ;;  %5730 = vst [vmem:[%s7118_s23 + $0x380] sm:$0xff] %v5542_v4   ;;  %6724 = vtanh.f32 %v2466_v6  ;;  %v5990_v13 = vpop.f32.mrb[108].mxu0 }
 0x1c6   : > { %v6701_v9 = vpop.eup %6700  ;;  %v6118_v14 = vpop.f32.mrb[108].mxu1  ;;  %6726 = vtanh.f32 %v5990_v13 }
 0x1c7   : > { %v6703_v10 = vpop.eup %6702  ;;  %v1967_v17 = vpop.f32.mrb[109].mxu0  ;;  %6728 = vtanh.f32 %v6118_v14 }
 0x1c8   : > { %v6705_v11 = vpop.eup %6704  ;;  %v5237_v12 = vpack.c.bf16 %v6703_v10, %v6695_v3  ;;  %v2479_v18 = vpop.f32.mrb[109].mxu1  ;;  %6730 = vtanh.f32 %v1967_v17 }
 0x1c9   : > { %v6707_v15 = vpop.eup %6706  ;;  %v5557_v16 = vpack.c.bf16 %v6705_v11, %v6697_v7  ;;  %v5991_v21 = vpop.f32.mrb[110].mxu0  ;;  %6732 = vtanh.f32 %v2479_v18 }
 0x1ca   : > { %v6709_v19 = vpop.eup %6708  ;;  %5669 = vst [vmem:[%s7118_s23 + $0x198] sm:$0xff] %v5237_v12   ;;  %v5232_v20 = vpack.c.bf16 %v6707_v15, %v6699_v8  ;;  %v6119_v22 = vpop.f32.mrb[110].mxu1  ;;  %6734 = vtanh.f32 %v5991_v21 }
 0x1cb   : > { %v6711_v23 = vpop.eup %6710  ;;  %5733 = vst [vmem:[%s7118_s23 + $0x398] sm:$0xff] %v5557_v16   ;;  %v5552_v24 = vpack.c.bf16 %v6709_v19, %v6701_v9  ;;  %v1970_v25 = vpop.f32.mrb[111].mxu0  ;;  %6736 = vtanh.f32 %v6119_v22 }
 0x1cc   : > { %v2482_v26 = vpop.f32.mrb[111].mxu1  ;;  %v6713_v27 = vpop.eup %6712  ;;  %5668 = vst [vmem:[%s7118_s23 + $0x190] sm:$0xff] %v5232_v20   ;;  %6738 = vtanh.f32 %v1970_v25 }
 0x1cd   : > { %v6715_v28 = vpop.eup %6714  ;;  %5732 = vst [vmem:[%s7118_s23 + $0x390] sm:$0xff] %v5552_v24   ;;  %6740 = vtanh.f32 %v2482_v26  ;;  %v5994_v33 = vpop.f32.mrb[112].mxu0 }
 0x1ce   : > { %v6717_v29 = vpop.eup %6716  ;;  %v6122_v34 = vpop.f32.mrb[112].mxu1  ;;  %6742 = vtanh.f32 %v5994_v33 }
 0x1cf   : > { %v6719_v30 = vpop.eup %6718  ;;  %v1983_v37 = vpop.f32.mrb[113].mxu0  ;;  %6744 = vtanh.f32 %v6122_v34 }
 0x1d0   : > { %v6721_v31 = vpop.eup %6720  ;;  %v5247_v32 = vpack.c.bf16 %v6719_v30, %v6711_v23  ;;  %v2495_v38 = vpop.f32.mrb[113].mxu1  ;;  %6746 = vtanh.f32 %v1983_v37 }
 0x1d1   : > { %v6723_v35 = vpop.eup %6722  ;;  %v5567_v36 = vpack.c.bf16 %v6721_v31, %v6713_v27  ;;  %v5995_v41 = vpop.f32.mrb[114].mxu0  ;;  %6748 = vtanh.f32 %v2495_v38 }
 0x1d2   : > { %v6725_v39 = vpop.eup %6724  ;;  %5671 = vst [vmem:[%s7118_s23 + $0x1a8] sm:$0xff] %v5247_v32   ;;  %v5242_v40 = vpack.c.bf16 %v6723_v35, %v6715_v28  ;;  %v6123_v42 = vpop.f32.mrb[114].mxu1  ;;  %6750 = vtanh.f32 %v5995_v41 }
 0x1d3   : > { %v6727_v43 = vpop.eup %6726  ;;  %5735 = vst [vmem:[%s7118_s23 + $0x3a8] sm:$0xff] %v5567_v36   ;;  %v5562_v44 = vpack.c.bf16 %v6725_v39, %v6717_v29  ;;  %v1986_v45 = vpop.f32.mrb[115].mxu0  ;;  %6752 = vtanh.f32 %v6123_v42 }
 0x1d4   : > { %v2498_v46 = vpop.f32.mrb[115].mxu1  ;;  %v6729_v47 = vpop.eup %6728  ;;  %5670 = vst [vmem:[%s7118_s23 + $0x1a0] sm:$0xff] %v5242_v40   ;;  %6754 = vtanh.f32 %v1986_v45 }
 0x1d5   : > { %v6731_v48 = vpop.eup %6730  ;;  %5734 = vst [vmem:[%s7118_s23 + $0x3a0] sm:$0xff] %v5562_v44   ;;  %6756 = vtanh.f32 %v2498_v46  ;;  %v5998_v53 = vpop.f32.mrb[116].mxu0 }
 0x1d6   : > { %v6733_v49 = vpop.eup %6732  ;;  %v6126_v54 = vpop.f32.mrb[116].mxu1  ;;  %6758 = vtanh.f32 %v5998_v53 }
 0x1d7   : > { %v6735_v50 = vpop.eup %6734  ;;  %v1999_v57 = vpop.f32.mrb[117].mxu0  ;;  %6760 = vtanh.f32 %v6126_v54 }
 0x1d8   : > { %v6737_v51 = vpop.eup %6736  ;;  %v5257_v52 = vpack.c.bf16 %v6735_v50, %v6727_v43  ;;  %v2511_v58 = vpop.f32.mrb[117].mxu1  ;;  %6762 = vtanh.f32 %v1999_v57 }
 0x1d9   : > { %v6739_v55 = vpop.eup %6738  ;;  %v5577_v56 = vpack.c.bf16 %v6737_v51, %v6729_v47  ;;  %v5999_v61 = vpop.f32.mrb[118].mxu0  ;;  %6764 = vtanh.f32 %v2511_v58 }
 0x1da   : > { %v6741_v59 = vpop.eup %6740  ;;  %5673 = vst [vmem:[%s7118_s23 + $0x1b8] sm:$0xff] %v5257_v52   ;;  %v5252_v60 = vpack.c.bf16 %v6739_v55, %v6731_v48  ;;  %v6127_v62 = vpop.f32.mrb[118].mxu1  ;;  %6766 = vtanh.f32 %v5999_v61 }
 0x1db   : > { %v6743_v63 = vpop.eup %6742  ;;  %5737 = vst [vmem:[%s7118_s23 + $0x3b8] sm:$0xff] %v5577_v56   ;;  %v5572_v0 = vpack.c.bf16 %v6741_v59, %v6733_v49  ;;  %v2002_v1 = vpop.f32.mrb[119].mxu0  ;;  %6768 = vtanh.f32 %v6127_v62 }
 0x1dc   : > { %v2514_v2 = vpop.f32.mrb[119].mxu1  ;;  %v6745_v3 = vpop.eup %6744  ;;  %5672 = vst [vmem:[%s7118_s23 + $0x1b0] sm:$0xff] %v5252_v60   ;;  %6770 = vtanh.f32 %v2002_v1 }
 0x1dd   : > { %v6747_v4 = vpop.eup %6746  ;;  %5736 = vst [vmem:[%s7118_s23 + $0x3b0] sm:$0xff] %v5572_v0   ;;  %6772 = vtanh.f32 %v2514_v2  ;;  %v6002_v9 = vpop.f32.mrb[120].mxu0 }
 0x1de   : > { %v6749_v5 = vpop.eup %6748  ;;  %v6130_v10 = vpop.f32.mrb[120].mxu1  ;;  %6774 = vtanh.f32 %v6002_v9 }
 0x1df   : > { %v6751_v6 = vpop.eup %6750  ;;  %v2015_v13 = vpop.f32.mrb[121].mxu0  ;;  %6776 = vtanh.f32 %v6130_v10 }
 0x1e0   : > { %v6753_v7 = vpop.eup %6752  ;;  %v5267_v8 = vpack.c.bf16 %v6751_v6, %v6743_v63  ;;  %v2527_v14 = vpop.f32.mrb[121].mxu1  ;;  %6778 = vtanh.f32 %v2015_v13 }
 0x1e1   : > { %v6755_v11 = vpop.eup %6754  ;;  %v5587_v12 = vpack.c.bf16 %v6753_v7, %v6745_v3  ;;  %v6003_v17 = vpop.f32.mrb[122].mxu0  ;;  %6780 = vtanh.f32 %v2527_v14 }
 0x1e2   : > { %v6757_v15 = vpop.eup %6756  ;;  %5675 = vst [vmem:[%s7118_s23 + $0x1c8] sm:$0xff] %v5267_v8   ;;  %v5262_v16 = vpack.c.bf16 %v6755_v11, %v6747_v4  ;;  %v6131_v18 = vpop.f32.mrb[122].mxu1  ;;  %6782 = vtanh.f32 %v6003_v17 }
 0x1e3   : > { %v6759_v19 = vpop.eup %6758  ;;  %5739 = vst [vmem:[%s7118_s23 + $0x3c8] sm:$0xff] %v5587_v12   ;;  %v5582_v20 = vpack.c.bf16 %v6757_v15, %v6749_v5  ;;  %v2018_v21 = vpop.f32.mrb[123].mxu0  ;;  %6784 = vtanh.f32 %v6131_v18 }
 0x1e4   : > { %v2530_v22 = vpop.f32.mrb[123].mxu1  ;;  %v6761_v23 = vpop.eup %6760  ;;  %5674 = vst [vmem:[%s7118_s23 + $0x1c0] sm:$0xff] %v5262_v16   ;;  %6786 = vtanh.f32 %v2018_v21 }
 0x1e5   : > { %v6763_v24 = vpop.eup %6762  ;;  %5738 = vst [vmem:[%s7118_s23 + $0x3c0] sm:$0xff] %v5582_v20   ;;  %6788 = vtanh.f32 %v2530_v22  ;;  %v6006_v29 = vpop.f32.mrb[124].mxu0 }
 0x1e6   : > { %v6765_v25 = vpop.eup %6764  ;;  %v6134_v30 = vpop.f32.mrb[124].mxu1  ;;  %6790 = vtanh.f32 %v6006_v29 }
 0x1e7   : > { %v6767_v26 = vpop.eup %6766  ;;  %v2031_v33 = vpop.f32.mrb[125].mxu0  ;;  %6792 = vtanh.f32 %v6134_v30 }
 0x1e8   : > { %v6769_v27 = vpop.eup %6768  ;;  %v5277_v28 = vpack.c.bf16 %v6767_v26, %v6759_v19  ;;  %v2543_v34 = vpop.f32.mrb[125].mxu1  ;;  %6794 = vtanh.f32 %v2031_v33 }
 0x1e9   : > { %v6771_v31 = vpop.eup %6770  ;;  %v5597_v32 = vpack.c.bf16 %v6769_v27, %v6761_v23  ;;  %v6007_v37 = vpop.f32.mrb[126].mxu0  ;;  %6796 = vtanh.f32 %v2543_v34 }
 0x1ea   : > { %v6773_v35 = vpop.eup %6772  ;;  %5677 = vst [vmem:[%s7118_s23 + $0x1d8] sm:$0xff] %v5277_v28   ;;  %v5272_v36 = vpack.c.bf16 %v6771_v31, %v6763_v24  ;;  %v6135_v38 = vpop.f32.mrb[126].mxu1  ;;  %6798 = vtanh.f32 %v6007_v37 }
 0x1eb   : > { %v6775_v39 = vpop.eup %6774  ;;  %5741 = vst [vmem:[%s7118_s23 + $0x3d8] sm:$0xff] %v5597_v32   ;;  %v5592_v40 = vpack.c.bf16 %v6773_v35, %v6765_v25  ;;  %v2034_v41 = vpop.f32.mrb[127].mxu0  ;;  %6800 = vtanh.f32 %v6135_v38 }
 0x1ec   : > { %v2546_v42 = vpop.f32.mrb[127].mxu1  ;;  %v6777_v43 = vpop.eup %6776  ;;  %5676 = vst [vmem:[%s7118_s23 + $0x1d0] sm:$0xff] %v5272_v36   ;;  %6802 = vtanh.f32 %v2034_v41 }
 0x1ed   : > { %v6779_v44 = vpop.eup %6778  ;;  %5740 = vst [vmem:[%s7118_s23 + $0x3d0] sm:$0xff] %v5592_v40   ;;  %6804 = vtanh.f32 %v2546_v42 }
 0x1ee   : > { %v6781_v45 = vpop.eup %6780 }
 0x1ef   : > { %v6783_v46 = vpop.eup %6782 }
 0x1f0   : > { %v6785_v47 = vpop.eup %6784  ;;  %v5287_v48 = vpack.c.bf16 %v6783_v46, %v6775_v39 }
 0x1f1   : > { %v6787_v49 = vpop.eup %6786  ;;  %v5607_v50 = vpack.c.bf16 %v6785_v47, %v6777_v43 }
 0x1f2   : > { %v6789_v51 = vpop.eup %6788  ;;  %5679 = vst [vmem:[%s7118_s23 + $0x1e8] sm:$0xff] %v5287_v48   ;;  %v5282_v52 = vpack.c.bf16 %v6787_v49, %v6779_v44 }
 0x1f3   : > { %v6791_v53 = vpop.eup %6790  ;;  %5743 = vst [vmem:[%s7118_s23 + $0x3e8] sm:$0xff] %v5607_v50   ;;  %v5602_v54 = vpack.c.bf16 %v6789_v51, %v6781_v45 }
 0x1f4   : > { %v6793_v55 = vpop.eup %6792  ;;  %5678 = vst [vmem:[%s7118_s23 + $0x1e0] sm:$0xff] %v5282_v52  }
 0x1f5   : > { %v6795_v56 = vpop.eup %6794  ;;  %5742 = vst [vmem:[%s7118_s23 + $0x3e0] sm:$0xff] %v5602_v54  }
 0x1f6   : > { %v6797_v57 = vpop.eup %6796 }
 0x1f7   : > { %v6799_v58 = vpop.eup %6798 }
 0x1f8   : > { %v6801_v59 = vpop.eup %6800  ;;  %v5297_v60 = vpack.c.bf16 %v6799_v58, %v6791_v53 }
 0x1f9   : > { %v6803_v61 = vpop.eup %6802  ;;  %v5617_v62 = vpack.c.bf16 %v6801_v59, %v6793_v55 }
 0x1fa   : > { %v6805_v63 = vpop.eup %6804  ;;  %5681 = vst [vmem:[%s7118_s23 + $0x1f8] sm:$0xff] %v5297_v60   ;;  %v5292_v0 = vpack.c.bf16 %v6803_v61, %v6795_v56 }
 0x1fb   : > { %5745 = vst [vmem:[%s7118_s23 + $0x3f8] sm:$0xff] %v5617_v62   ;;  %v5612_v1 = vpack.c.bf16 %v6805_v63, %v6797_v57 }
 0x1fc   : > { %5680 = vst [vmem:[%s7118_s23 + $0x1f0] sm:$0xff] %v5292_v0  }
 0x1fd   : > { %5744 = vst [vmem:[%s7118_s23 + $0x3f0] sm:$0xff] %v5612_v1  }
 0x1fe PF: > { %s12_s11 = sadd.s32 1, %s6828_s11   ;;  %s7280_s9 = smov %s6824_s10 }
 0x1ff   : > { %p9_p5 = scmp.ge.s32.totalorder %s12_s11, 6   ;;  %s7281_s10 = smov %s7283_s12 }
 0x201   :  { %11 = sbr.rel (!%p9_p5) target bundleno = 2 (0x2), region = 61 }

</bundles_post_ra>
